<compile_context>
chip_gen: v5e
topology: v5e:2x2
jax: 0.10.0
libtpu: 0.0.40
codegen_flags: <defaults>
</compile_context>

<pallas_src>
import jax
import jax.numpy as jnp
from jax import lax
from jax.experimental import pallas as pl


_TRANS_B = (((1,), (1,)), ((), ()))   # contract last dim of both operands


# ----------------------------- Pallas kernel ------------------------------- #

def meta_gat_kernel(x_ref, adj_ref, ef_ref, wcat_ref, wajt_ref, m_ref, c_ref,
                    ewts_ref, beff_ref, o_ref):
    """Single invocation: all 5 GAT layers, statically unrolled."""
    N, D = x_ref.shape
    NN, Fe = ef_ref.shape
    L, H, _ = wajt_ref.shape
    LH = L * H
    HD = H * D

    x = x_ref[...]                                   # [N, D] carried node state
    adj = adj_ref[...]                               # [N, N]  adj[i, j]: edge j -> i
    neg_mask = jnp.where(adj > 0.0, 0.0, jnp.float32(-1e30))
    ef = ef_ref[...]                                 # [N*N, Fe]
    ef3 = ef.reshape(N, N, Fe)                       # layout-preserving split

    # Edge-attention term for ALL layers/heads in one MXU dot:
    #   aje[i*N+j, l*H+h] = attj_{l,h} . (edge_emb_l(i,j))
    aje = jnp.dot(ef, m_ref[...], preferred_element_type=jnp.float32) + c_ref[...]
    aje3 = aje.reshape(N, N, LH)

    neg_slope = jnp.float32(0.2)
    inv_H = jnp.float32(1.0 / H)

    for l in range(L):                               # static unroll over layers
        # Theta*x (all heads) and a_i logits (all heads) in ONE dot: [N, H*D+H].
        xcat = jnp.dot(x, wcat_ref[l], preferred_element_type=jnp.float32)
        # a_j logits for all heads as rows: [H, N]  (tiny trans-B dot).
        ajT = lax.dot_general(wajt_ref[l], x, _TRANS_B,
                              preferred_element_type=jnp.float32)

        p_parts, q_parts, xw_parts = [], [], []
        for h in range(H):                           # static unroll over heads
            k = l * H + h
            # logits[i,j] = atti.(Th x_i) + attj.(Th x_j) + attj.e_ij
            logits = (xcat[:, HD + h:HD + h + 1]                 # a_i column [N,1]
                      + ajT[h:h + 1, :]                          # a_j row    [1,N]
                      + jnp.sum(aje3[:, :, k:k + 1], axis=-1))   # a_je       [N,N]
            logits = jnp.where(logits >= 0, logits, neg_slope * logits)   # LeakyReLU
            logits = logits + neg_mask                                    # mask non-edges

            # Masked softmax over sources j.  Self-loops keep the row max
            # finite -> masked entries underflow to exactly 0 and the sum >= 1.
            m = jnp.max(logits, axis=1, keepdims=True)
            p = jnp.exp(logits - m)
            s = jnp.sum(p, axis=1, keepdims=True)
            p = p * pl.reciprocal(s, approx=False)               # exact: keeps 1e-4 tol

            # Edge-feature part of the message, contracted over j first (Fe lanes).
            q = jnp.sum(p[:, :, None] * ef3, axis=1)             # [N, Fe]

            p_parts.append(p)
            q_parts.append(q)
            xw_parts.append(xcat[:, h * D:(h + 1) * D])          # Theta_h x

        # Head-fused aggregation: two MXU dots give sum_h (p_h @ Th x + q_h @ ewt_h).
        P = jnp.concatenate(p_parts, axis=1)        # [N, H*N]
        Q = jnp.concatenate(q_parts, axis=1)        # [N, H*Fe]
        Xs = jnp.concatenate(xw_parts, axis=0)      # [H*N, D]
        agg = (jnp.dot(P, Xs, preferred_element_type=jnp.float32)
               + jnp.dot(Q, ewts_ref[l], preferred_element_type=jnp.float32))

        res = agg * inv_H + beff_ref[l]             # head-mean + (bias + mean_h eb_h)
        if l < L - 1:
            res = jnp.maximum(res, 0.0)             # ReLU between layers; dropout(p=0) no-op
        x = res

    o_ref[...] = x                                  # single store at the end


def meta_gat_forward(x, adj, ef_flat, Wcat, WajT, Mmat, cvec, ewt_stack, bias_eff):
    """x:[N,D] adj:[N,N] ef_flat:[N*N,Fe]; params stacked with leading layer dim L."""
    N, D = x.shape
    NN, Fe = ef_flat.shape
    L, _, Wc = Wcat.shape
    H = WajT.shape[1]
    LH = L * H

    flops = int(2 * NN * Fe * LH                         # aje matmul
                + L * (2 * N * D * Wc                    # x @ [W | Wai]
                       + 2 * H * D * N                   # a_j rows
                       + 2 * N * (H * N) * D             # P @ Xs
                       + 2 * N * (H * Fe) * D            # Q @ ewt_stack
                       + H * (2 * NN * Fe + 10 * N * N)  # q reduce + softmax
                       + 4 * N * D))
    cost = pl.CostEstimate(
        flops=flops,
        transcendentals=L * H * (N * N + N),
        bytes_accessed=4 * (2 * N * D + N * N + NN * Fe + Fe * LH + LH
                            + L * (D * Wc + H * D + H * Fe * D + D)),
    )
    # Everything fits VMEM easily at this size -> no grid, full-array blocks.
    # TODO(synk): for large N add a target-row grid axis (dimension_semantics
    # "parallel") that tiles adj/ef/out over rows, so both v7x TensorCores are
    # used and the O(N^2) operands fit its 64 MiB VMEM.
    return pl.pallas_call(
        meta_gat_kernel,
        out_shape=jax.ShapeDtypeStruct((N, D), jnp.float32),
        cost_estimate=cost,
    )(x, adj, ef_flat, Wcat, WajT, Mmat, cvec, ewt_stack, bias_eff)


# ----------------------- pure-JAX reference (edge list) -------------------- #

def ref_meta_gat(x, src_sl, dst_sl, edge_attr_sl, params, H, D):
    N = x.shape[0]

    def layer(x, W, att, bias, edge_w, edge_b, relu):
        edge_emb = edge_attr_sl @ edge_w.T + edge_b            # [E', H*D]
        xw = x @ W                                             # [N, H*D]
        xj = xw[src_sl].reshape(-1, H, D) + edge_emb.reshape(-1, H, D)
        xi = xw[dst_sl].reshape(-1, H, D)
        alpha = (jnp.concatenate([xi, xj], axis=-1) * att[None]).sum(-1)
        alpha = jnp.where(alpha >= 0, alpha, 0.2 * alpha)
        amax = jax.ops.segment_max(alpha, dst_sl, num_segments=N)
        ea = jnp.exp(alpha - amax[dst_sl])
        denom = jax.ops.segment_sum(ea, dst_sl, num_segments=N)
        w_att = ea / denom[dst_sl]
        msg = xj * w_att[:, :, None]
        aggr = jax.ops.segment_sum(msg, dst_sl, num_segments=N)
        out = aggr.mean(axis=1) + bias
        return jnp.maximum(out, 0.0) if relu else out

    L = len(params)
    for li, (W, att, bias, edge_w, edge_b) in enumerate(params):
        x = layer(x, W, att, bias, edge_w, edge_b, relu=(li < L - 1))
    return x


# ------------------------------------ main ---------------------------------- #

if __name__ == "__main__":
    N, D, Fe, H, L = 8, 32, 16, 2, 5     # nodes, emb_dim, edge_fea_dim, heads, layers

    key = jax.random.PRNGKey(0)
    keys = jax.random.split(key, 2 + 5 * L)

    # node features
    x0 = jax.random.normal(keys[0], (N, D), dtype=jnp.float32)

    # ring graph, both directions (no self loops in the input edge list)
    ar = jnp.arange(N)
    src = jnp.concatenate([ar, (ar + 1) % N])
    dst = jnp.concatenate([(ar + 1) % N, ar])
    E = int(src.shape[0])
    edge_attr = 0.5 * jax.random.normal(keys[1], (E, Fe), dtype=jnp.float32)

    # deterministic synthetic parameters (torch layouts)
    params = []
    for li in range(L):
        kw, ka, kb, kew, keb = keys[2 + 5 * li: 2 + 5 * (li + 1)]
        W = 0.2 * jax.random.normal(kw, (D, H * D), dtype=jnp.float32)         # weight
        att = 0.2 * jax.random.normal(ka, (H, 2 * D), dtype=jnp.float32)       # att[0]
        bias = 0.1 * jax.random.normal(kb, (D,), dtype=jnp.float32)
        edge_w = 0.2 * jax.random.normal(kew, (H * D, Fe), dtype=jnp.float32)  # F.linear layout
        edge_b = 0.1 * jax.random.normal(keb, (H * D,), dtype=jnp.float32)
        params.append((W, att, bias, edge_w, edge_b))

    # ---- glue: densify graph (add self loops, self-loop edge_attr[:,7]=1) ----
    adj = jnp.zeros((N, N), jnp.float32).at[dst, src].set(1.0)
    adj = adj.at[ar, ar].set(1.0)
    Edense = jnp.zeros((N, N, Fe), jnp.float32).at[dst, src].set(edge_attr)
    Edense = Edense.at[ar, ar, 7].set(1.0)
    ef_flat = Edense.reshape(N * N, Fe)

    # ---- glue: fold/repack parameters into the kernel's fused layouts ----
    Wcat_l, WajT_l, M_cols, c_cols, ewts_l, beff_l = [], [], [], [], [], []
    for (W, att, bias, edge_w, edge_b) in params:
        ewt = edge_w.T                              # [Fe, H*D]
        atti, attj = att[:, :D], att[:, D:]         # [H, D] each
        Wai = jnp.stack([W[:, h * D:(h + 1) * D] @ atti[h] for h in range(H)], axis=1)  # [D, H]
        Waj = jnp.stack([W[:, h * D:(h + 1) * D] @ attj[h] for h in range(H)], axis=0)  # [H, D]
        Wcat_l.append(jnp.concatenate([W, Wai], axis=1))                                # [D, H*D+H]
        WajT_l.append(Waj)
        for h in range(H):
            M_cols.append(ewt[:, h * D:(h + 1) * D] @ attj[h])                          # [Fe]
            c_cols.append(jnp.dot(edge_b[h * D:(h + 1) * D], attj[h]))                  # scalar
        ewts_l.append(jnp.concatenate([ewt[:, h * D:(h + 1) * D] for h in range(H)],
                                      axis=0))                                          # [H*Fe, D]
        beff_l.append((bias + jnp.mean(edge_b.reshape(H, D), axis=0)).reshape(1, D))

    Wcat = jnp.stack(Wcat_l)                        # [L, D, H*D + H]
    WajT = jnp.stack(WajT_l)                        # [L, H, D]
    Mmat = jnp.stack(M_cols, axis=1)                # [Fe, L*H]
    cvec = jnp.stack(c_cols).reshape(1, L * H)      # [1, L*H]
    ewt_stack = jnp.stack(ewts_l)                   # [L, H*Fe, D]
    bias_eff = jnp.stack(beff_l)                    # [L, 1, D]

    # ---- run Pallas kernel ----
    out = meta_gat_forward(x0, adj, ef_flat, Wcat, WajT, Mmat, cvec, ewt_stack, bias_eff)
    out = jax.block_until_ready(out)

    # ---- verify against a plain-JAX edge-list reference (PyG semantics) ----
    src_sl = jnp.concatenate([src, ar])
    dst_sl = jnp.concatenate([dst, ar])
    self_attr = jnp.zeros((N, Fe), jnp.float32).at[:, 7].set(1.0)
    edge_attr_sl = jnp.concatenate([edge_attr, self_attr], axis=0)
    ref = ref_meta_gat(x0, src_sl, dst_sl, edge_attr_sl, params, H, D)
    ref = jax.block_until_ready(ref)

    assert out.shape == (N, D)
    assert jnp.allclose(out, ref, rtol=1e-4, atol=1e-4), (
        f"mismatch: max abs err = {float(jnp.max(jnp.abs(out - ref)))}")

    print("KERNEL_OK")
</pallas_src>

<mosaic_0001>
module attributes {stable_mosaic.version = 11 : i64} {
  func.func @meta_gat_kernel(%arg0: memref<8x32xf32, #tpu.memory_space<vmem>>, %arg1: memref<8x8xf32, #tpu.memory_space<vmem>>, %arg2: memref<64x16xf32, #tpu.memory_space<vmem>>, %arg3: memref<5x32x66xf32, #tpu.memory_space<vmem>>, %arg4: memref<5x2x32xf32, #tpu.memory_space<vmem>>, %arg5: memref<16x10xf32, #tpu.memory_space<vmem>>, %arg6: memref<1x10xf32, #tpu.memory_space<vmem>>, %arg7: memref<5x32x32xf32, #tpu.memory_space<vmem>>, %arg8: memref<5x1x32xf32, #tpu.memory_space<vmem>>, %arg9: memref<8x32xf32, #tpu.memory_space<vmem>>) attributes {dimension_semantics = [], scalar_prefetch = 0 : i64, scratch_operands = 0 : i64, tpu.core_type = #tpu.core_type<tc>} {
    %c0 = arith.constant 0 : index
    %c0_0 = arith.constant 0 : index
    %0 = vector.load %arg0[%c0, %c0_0] : memref<8x32xf32, #tpu.memory_space<vmem>>, vector<8x32xf32>
    %c0_1 = arith.constant 0 : index
    %c0_2 = arith.constant 0 : index
    %1 = vector.load %arg1[%c0_1, %c0_2] : memref<8x8xf32, #tpu.memory_space<vmem>>, vector<8x8xf32>
    %cst = arith.constant 0.000000e+00 : f32
    %2 = vector.broadcast %cst : f32 to vector<8x8xf32>
    %3 = arith.cmpf ogt, %1, %2 : vector<8x8xf32>
    %cst_3 = arith.constant 0.000000e+00 : f32
    %cst_4 = arith.constant -1.000000e+30 : f32
    %4 = vector.broadcast %cst_3 : f32 to vector<8x8xf32>
    %5 = vector.broadcast %cst_4 : f32 to vector<8x8xf32>
    %6 = arith.select %3, %4, %5 : vector<8x8xi1>, vector<8x8xf32>
    %c0_5 = arith.constant 0 : index
    %c0_6 = arith.constant 0 : index
    %7 = vector.load %arg2[%c0_5, %c0_6] : memref<64x16xf32, #tpu.memory_space<vmem>>, vector<64x16xf32>
    %8 = vector.shape_cast %7 : vector<64x16xf32> to vector<8x8x16xf32>
    %c0_7 = arith.constant 0 : index
    %c0_8 = arith.constant 0 : index
    %9 = vector.load %arg5[%c0_7, %c0_8] : memref<16x10xf32, #tpu.memory_space<vmem>>, vector<16x10xf32>
    %cst_9 = arith.constant dense<0.000000e+00> : vector<64x10xf32>
    %10 = tpu.matmul %7, %9, %cst_9 {dimension_numbers = #tpu.dot_dimension_numbers<[1], [0], [0], [1], [0, 0, 1, 1], [], []>} : vector<64x16xf32>, vector<16x10xf32>, vector<64x10xf32> -> vector<64x10xf32>
    %c0_10 = arith.constant 0 : index
    %c0_11 = arith.constant 0 : index
    %11 = vector.load %arg6[%c0_10, %c0_11] : memref<1x10xf32, #tpu.memory_space<vmem>>, vector<1x10xf32>
    %12 = vector.broadcast %11 : vector<1x10xf32> to vector<64x10xf32>
    %13 = arith.addf %10, %12 : vector<64x10xf32>
    %14 = vector.shape_cast %13 : vector<64x10xf32> to vector<8x8x10xf32>
    %c0_12 = arith.constant 0 : index
    %c0_13 = arith.constant 0 : index
    %c0_14 = arith.constant 0 : index
    %15 = vector.load %arg3[%c0_12, %c0_13, %c0_14] : memref<5x32x66xf32, #tpu.memory_space<vmem>>, vector<1x32x66xf32>
    %16 = vector.shape_cast %15 : vector<1x32x66xf32> to vector<32x66xf32>
    %cst_15 = arith.constant dense<0.000000e+00> : vector<8x66xf32>
    %17 = tpu.matmul %0, %16, %cst_15 {dimension_numbers = #tpu.dot_dimension_numbers<[1], [0], [0], [1], [0, 0, 1, 1], [], []>} : vector<8x32xf32>, vector<32x66xf32>, vector<8x66xf32> -> vector<8x66xf32>
    %c0_16 = arith.constant 0 : index
    %c0_17 = arith.constant 0 : index
    %c0_18 = arith.constant 0 : index
    %18 = vector.load %arg4[%c0_16, %c0_17, %c0_18] : memref<5x2x32xf32, #tpu.memory_space<vmem>>, vector<1x2x32xf32>
    %19 = vector.shape_cast %18 : vector<1x2x32xf32> to vector<2x32xf32>
    %cst_19 = arith.constant dense<0.000000e+00> : vector<2x8xf32>
    %20 = tpu.matmul %19, %0, %cst_19 {dimension_numbers = #tpu.dot_dimension_numbers<[1], [1], [0], [0], [0, 0, 1, 0], [], []>} : vector<2x32xf32>, vector<8x32xf32>, vector<2x8xf32> -> vector<2x8xf32>
    %21 = vector.extract_strided_slice %17 {offsets = [0, 64], sizes = [8, 1], strides = [1, 1]} : vector<8x66xf32> to vector<8x1xf32>
    %22 = vector.extract_strided_slice %20 {offsets = [0, 0], sizes = [1, 8], strides = [1, 1]} : vector<2x8xf32> to vector<1x8xf32>
    %23 = vector.broadcast %21 : vector<8x1xf32> to vector<8x8xf32>
    %24 = vector.broadcast %22 : vector<1x8xf32> to vector<8x8xf32>
    %25 = arith.addf %23, %24 : vector<8x8xf32>
    %26 = vector.extract_strided_slice %14 {offsets = [0, 0, 0], sizes = [8, 8, 1], strides = [1, 1, 1]} : vector<8x8x10xf32> to vector<8x8x1xf32>
    %cst_20 = arith.constant dense<0.000000e+00> : vector<8x8xf32>
    %27 = vector.multi_reduction <add>, %26, %cst_20 [2] : vector<8x8x1xf32> to vector<8x8xf32>
    %28 = arith.addf %25, %27 : vector<8x8xf32>
    %cst_21 = arith.constant 0.000000e+00 : f32
    %29 = vector.broadcast %cst_21 : f32 to vector<8x8xf32>
    %30 = arith.cmpf oge, %28, %29 : vector<8x8xf32>
    %cst_22 = arith.constant 2.000000e-01 : f32
    %31 = vector.broadcast %cst_22 : f32 to vector<8x8xf32>
    %32 = arith.mulf %31, %28 : vector<8x8xf32>
    %33 = arith.select %30, %28, %32 : vector<8x8xi1>, vector<8x8xf32>
    %34 = arith.addf %33, %6 : vector<8x8xf32>
    %cst_23 = arith.constant dense<0xFF800000> : vector<8xf32>
    %35 = vector.multi_reduction <maximumf>, %34, %cst_23 [1] : vector<8x8xf32> to vector<8xf32>
    %36 = vector.shape_cast %35 : vector<8xf32> to vector<8x1xf32>
    %37 = vector.broadcast %36 : vector<8x1xf32> to vector<8x8xf32>
    %38 = arith.subf %34, %37 : vector<8x8xf32>
    %39 = math.exp %38 : vector<8x8xf32>
    %cst_24 = arith.constant dense<0.000000e+00> : vector<8xf32>
    %40 = vector.multi_reduction <add>, %39, %cst_24 [1] : vector<8x8xf32> to vector<8xf32>
    %41 = vector.shape_cast %40 : vector<8xf32> to vector<8x1xf32>
    %42 = tpu.reciprocal %41 : vector<8x1xf32> -> vector<8x1xf32>
    %43 = vector.broadcast %42 : vector<8x1xf32> to vector<8x8xf32>
    %44 = arith.mulf %39, %43 : vector<8x8xf32>
    %45 = vector.shape_cast %44 : vector<8x8xf32> to vector<8x8x1xf32>
    %46 = vector.broadcast %45 : vector<8x8x1xf32> to vector<8x8x16xf32>
    %47 = arith.mulf %46, %8 : vector<8x8x16xf32>
    %cst_25 = arith.constant dense<0.000000e+00> : vector<8x16xf32>
    %48 = vector.multi_reduction <add>, %47, %cst_25 [1] : vector<8x8x16xf32> to vector<8x16xf32>
    %49 = vector.extract_strided_slice %17 {offsets = [0, 0], sizes = [8, 32], strides = [1, 1]} : vector<8x66xf32> to vector<8x32xf32>
    %50 = vector.extract_strided_slice %17 {offsets = [0, 65], sizes = [8, 1], strides = [1, 1]} : vector<8x66xf32> to vector<8x1xf32>
    %51 = vector.extract_strided_slice %20 {offsets = [1, 0], sizes = [1, 8], strides = [1, 1]} : vector<2x8xf32> to vector<1x8xf32>
    %52 = vector.broadcast %50 : vector<8x1xf32> to vector<8x8xf32>
    %53 = vector.broadcast %51 : vector<1x8xf32> to vector<8x8xf32>
    %54 = arith.addf %52, %53 : vector<8x8xf32>
    %55 = vector.extract_strided_slice %14 {offsets = [0, 0, 1], sizes = [8, 8, 1], strides = [1, 1, 1]} : vector<8x8x10xf32> to vector<8x8x1xf32>
    %cst_26 = arith.constant dense<0.000000e+00> : vector<8x8xf32>
    %56 = vector.multi_reduction <add>, %55, %cst_26 [2] : vector<8x8x1xf32> to vector<8x8xf32>
    %57 = arith.addf %54, %56 : vector<8x8xf32>
    %cst_27 = arith.constant 0.000000e+00 : f32
    %58 = vector.broadcast %cst_27 : f32 to vector<8x8xf32>
    %59 = arith.cmpf oge, %57, %58 : vector<8x8xf32>
    %cst_28 = arith.constant 2.000000e-01 : f32
    %60 = vector.broadcast %cst_28 : f32 to vector<8x8xf32>
    %61 = arith.mulf %60, %57 : vector<8x8xf32>
    %62 = arith.select %59, %57, %61 : vector<8x8xi1>, vector<8x8xf32>
    %63 = arith.addf %62, %6 : vector<8x8xf32>
    %cst_29 = arith.constant dense<0xFF800000> : vector<8xf32>
    %64 = vector.multi_reduction <maximumf>, %63, %cst_29 [1] : vector<8x8xf32> to vector<8xf32>
    %65 = vector.shape_cast %64 : vector<8xf32> to vector<8x1xf32>
    %66 = vector.broadcast %65 : vector<8x1xf32> to vector<8x8xf32>
    %67 = arith.subf %63, %66 : vector<8x8xf32>
    %68 = math.exp %67 : vector<8x8xf32>
    %cst_30 = arith.constant dense<0.000000e+00> : vector<8xf32>
    %69 = vector.multi_reduction <add>, %68, %cst_30 [1] : vector<8x8xf32> to vector<8xf32>
    %70 = vector.shape_cast %69 : vector<8xf32> to vector<8x1xf32>
    %71 = tpu.reciprocal %70 : vector<8x1xf32> -> vector<8x1xf32>
    %72 = vector.broadcast %71 : vector<8x1xf32> to vector<8x8xf32>
    %73 = arith.mulf %68, %72 : vector<8x8xf32>
    %74 = vector.shape_cast %73 : vector<8x8xf32> to vector<8x8x1xf32>
    %75 = vector.broadcast %74 : vector<8x8x1xf32> to vector<8x8x16xf32>
    %76 = arith.mulf %75, %8 : vector<8x8x16xf32>
    %cst_31 = arith.constant dense<0.000000e+00> : vector<8x16xf32>
    %77 = vector.multi_reduction <add>, %76, %cst_31 [1] : vector<8x8x16xf32> to vector<8x16xf32>
    %78 = vector.extract_strided_slice %17 {offsets = [0, 32], sizes = [8, 32], strides = [1, 1]} : vector<8x66xf32> to vector<8x32xf32>
    %79 = tpu.concatenate %44, %73 in 1 : vector<8x8xf32>, vector<8x8xf32> -> vector<8x16xf32>
    %80 = tpu.concatenate %48, %77 in 1 : vector<8x16xf32>, vector<8x16xf32> -> vector<8x32xf32>
    %81 = tpu.concatenate %49, %78 in 0 : vector<8x32xf32>, vector<8x32xf32> -> vector<16x32xf32>
    %cst_32 = arith.constant dense<0.000000e+00> : vector<8x32xf32>
    %82 = tpu.matmul %79, %81, %cst_32 {dimension_numbers = #tpu.dot_dimension_numbers<[1], [0], [0], [1], [0, 0, 1, 1], [], []>} : vector<8x16xf32>, vector<16x32xf32>, vector<8x32xf32> -> vector<8x32xf32>
    %c0_33 = arith.constant 0 : index
    %c0_34 = arith.constant 0 : index
    %c0_35 = arith.constant 0 : index
    %83 = vector.load %arg7[%c0_33, %c0_34, %c0_35] : memref<5x32x32xf32, #tpu.memory_space<vmem>>, vector<1x32x32xf32>
    %84 = vector.shape_cast %83 : vector<1x32x32xf32> to vector<32x32xf32>
    %cst_36 = arith.constant dense<0.000000e+00> : vector<8x32xf32>
    %85 = tpu.matmul %80, %84, %cst_36 {dimension_numbers = #tpu.dot_dimension_numbers<[1], [0], [0], [1], [0, 0, 1, 1], [], []>} : vector<8x32xf32>, vector<32x32xf32>, vector<8x32xf32> -> vector<8x32xf32>
    %86 = arith.addf %82, %85 : vector<8x32xf32>
    %cst_37 = arith.constant 5.000000e-01 : f32
    %87 = vector.broadcast %cst_37 : f32 to vector<8x32xf32>
    %88 = arith.mulf %86, %87 : vector<8x32xf32>
    %c0_38 = arith.constant 0 : index
    %c0_39 = arith.constant 0 : index
    %c0_40 = arith.constant 0 : index
    %89 = vector.load %arg8[%c0_38, %c0_39, %c0_40] : memref<5x1x32xf32, #tpu.memory_space<vmem>>, vector<1x1x32xf32>
    %90 = vector.shape_cast %89 : vector<1x1x32xf32> to vector<1x32xf32>
    %91 = vector.broadcast %90 : vector<1x32xf32> to vector<8x32xf32>
    %92 = arith.addf %88, %91 : vector<8x32xf32>
    %cst_41 = arith.constant 0.000000e+00 : f32
    %93 = vector.broadcast %cst_41 : f32 to vector<8x32xf32>
    %94 = arith.maximumf %92, %93 : vector<8x32xf32>
    %c1 = arith.constant 1 : index
    %c0_42 = arith.constant 0 : index
    %c0_43 = arith.constant 0 : index
    %95 = vector.load %arg3[%c1, %c0_42, %c0_43] : memref<5x32x66xf32, #tpu.memory_space<vmem>>, vector<1x32x66xf32>
    %96 = vector.shape_cast %95 : vector<1x32x66xf32> to vector<32x66xf32>
    %cst_44 = arith.constant dense<0.000000e+00> : vector<8x66xf32>
    %97 = tpu.matmul %94, %96, %cst_44 {dimension_numbers = #tpu.dot_dimension_numbers<[1], [0], [0], [1], [0, 0, 1, 1], [], []>} : vector<8x32xf32>, vector<32x66xf32>, vector<8x66xf32> -> vector<8x66xf32>
    %c1_45 = arith.constant 1 : index
    %c0_46 = arith.constant 0 : index
    %c0_47 = arith.constant 0 : index
    %98 = vector.load %arg4[%c1_45, %c0_46, %c0_47] : memref<5x2x32xf32, #tpu.memory_space<vmem>>, vector<1x2x32xf32>
    %99 = vector.shape_cast %98 : vector<1x2x32xf32> to vector<2x32xf32>
    %cst_48 = arith.constant dense<0.000000e+00> : vector<2x8xf32>
    %100 = tpu.matmul %99, %94, %cst_48 {dimension_numbers = #tpu.dot_dimension_numbers<[1], [1], [0], [0], [0, 0, 1, 0], [], []>} : vector<2x32xf32>, vector<8x32xf32>, vector<2x8xf32> -> vector<2x8xf32>
    %101 = vector.extract_strided_slice %97 {offsets = [0, 64], sizes = [8, 1], strides = [1, 1]} : vector<8x66xf32> to vector<8x1xf32>
    %102 = vector.extract_strided_slice %100 {offsets = [0, 0], sizes = [1, 8], strides = [1, 1]} : vector<2x8xf32> to vector<1x8xf32>
    %103 = vector.broadcast %101 : vector<8x1xf32> to vector<8x8xf32>
    %104 = vector.broadcast %102 : vector<1x8xf32> to vector<8x8xf32>
    %105 = arith.addf %103, %104 : vector<8x8xf32>
    %106 = vector.extract_strided_slice %14 {offsets = [0, 0, 2], sizes = [8, 8, 1], strides = [1, 1, 1]} : vector<8x8x10xf32> to vector<8x8x1xf32>
    %cst_49 = arith.constant dense<0.000000e+00> : vector<8x8xf32>
    %107 = vector.multi_reduction <add>, %106, %cst_49 [2] : vector<8x8x1xf32> to vector<8x8xf32>
    %108 = arith.addf %105, %107 : vector<8x8xf32>
    %cst_50 = arith.constant 0.000000e+00 : f32
    %109 = vector.broadcast %cst_50 : f32 to vector<8x8xf32>
    %110 = arith.cmpf oge, %108, %109 : vector<8x8xf32>
    %cst_51 = arith.constant 2.000000e-01 : f32
    %111 = vector.broadcast %cst_51 : f32 to vector<8x8xf32>
    %112 = arith.mulf %111, %108 : vector<8x8xf32>
    %113 = arith.select %110, %108, %112 : vector<8x8xi1>, vector<8x8xf32>
    %114 = arith.addf %113, %6 : vector<8x8xf32>
    %cst_52 = arith.constant dense<0xFF800000> : vector<8xf32>
    %115 = vector.multi_reduction <maximumf>, %114, %cst_52 [1] : vector<8x8xf32> to vector<8xf32>
    %116 = vector.shape_cast %115 : vector<8xf32> to vector<8x1xf32>
    %117 = vector.broadcast %116 : vector<8x1xf32> to vector<8x8xf32>
    %118 = arith.subf %114, %117 : vector<8x8xf32>
    %119 = math.exp %118 : vector<8x8xf32>
    %cst_53 = arith.constant dense<0.000000e+00> : vector<8xf32>
    %120 = vector.multi_reduction <add>, %119, %cst_53 [1] : vector<8x8xf32> to vector<8xf32>
    %121 = vector.shape_cast %120 : vector<8xf32> to vector<8x1xf32>
    %122 = tpu.reciprocal %121 : vector<8x1xf32> -> vector<8x1xf32>
    %123 = vector.broadcast %122 : vector<8x1xf32> to vector<8x8xf32>
    %124 = arith.mulf %119, %123 : vector<8x8xf32>
    %125 = vector.shape_cast %124 : vector<8x8xf32> to vector<8x8x1xf32>
    %126 = vector.broadcast %125 : vector<8x8x1xf32> to vector<8x8x16xf32>
    %127 = arith.mulf %126, %8 : vector<8x8x16xf32>
    %cst_54 = arith.constant dense<0.000000e+00> : vector<8x16xf32>
    %128 = vector.multi_reduction <add>, %127, %cst_54 [1] : vector<8x8x16xf32> to vector<8x16xf32>
    %129 = vector.extract_strided_slice %97 {offsets = [0, 0], sizes = [8, 32], strides = [1, 1]} : vector<8x66xf32> to vector<8x32xf32>
    %130 = vector.extract_strided_slice %97 {offsets = [0, 65], sizes = [8, 1], strides = [1, 1]} : vector<8x66xf32> to vector<8x1xf32>
    %131 = vector.extract_strided_slice %100 {offsets = [1, 0], sizes = [1, 8], strides = [1, 1]} : vector<2x8xf32> to vector<1x8xf32>
    %132 = vector.broadcast %130 : vector<8x1xf32> to vector<8x8xf32>
    %133 = vector.broadcast %131 : vector<1x8xf32> to vector<8x8xf32>
    %134 = arith.addf %132, %133 : vector<8x8xf32>
    %135 = vector.extract_strided_slice %14 {offsets = [0, 0, 3], sizes = [8, 8, 1], strides = [1, 1, 1]} : vector<8x8x10xf32> to vector<8x8x1xf32>
    %cst_55 = arith.constant dense<0.000000e+00> : vector<8x8xf32>
    %136 = vector.multi_reduction <add>, %135, %cst_55 [2] : vector<8x8x1xf32> to vector<8x8xf32>
    %137 = arith.addf %134, %136 : vector<8x8xf32>
    %cst_56 = arith.constant 0.000000e+00 : f32
    %138 = vector.broadcast %cst_56 : f32 to vector<8x8xf32>
    %139 = arith.cmpf oge, %137, %138 : vector<8x8xf32>
    %cst_57 = arith.constant 2.000000e-01 : f32
    %140 = vector.broadcast %cst_57 : f32 to vector<8x8xf32>
    %141 = arith.mulf %140, %137 : vector<8x8xf32>
    %142 = arith.select %139, %137, %141 : vector<8x8xi1>, vector<8x8xf32>
    %143 = arith.addf %142, %6 : vector<8x8xf32>
    %cst_58 = arith.constant dense<0xFF800000> : vector<8xf32>
    %144 = vector.multi_reduction <maximumf>, %143, %cst_58 [1] : vector<8x8xf32> to vector<8xf32>
    %145 = vector.shape_cast %144 : vector<8xf32> to vector<8x1xf32>
    %146 = vector.broadcast %145 : vector<8x1xf32> to vector<8x8xf32>
    %147 = arith.subf %143, %146 : vector<8x8xf32>
    %148 = math.exp %147 : vector<8x8xf32>
    %cst_59 = arith.constant dense<0.000000e+00> : vector<8xf32>
    %149 = vector.multi_reduction <add>, %148, %cst_59 [1] : vector<8x8xf32> to vector<8xf32>
    %150 = vector.shape_cast %149 : vector<8xf32> to vector<8x1xf32>
    %151 = tpu.reciprocal %150 : vector<8x1xf32> -> vector<8x1xf32>
    %152 = vector.broadcast %151 : vector<8x1xf32> to vector<8x8xf32>
    %153 = arith.mulf %148, %152 : vector<8x8xf32>
    %154 = vector.shape_cast %153 : vector<8x8xf32> to vector<8x8x1xf32>
    %155 = vector.broadcast %154 : vector<8x8x1xf32> to vector<8x8x16xf32>
    %156 = arith.mulf %155, %8 : vector<8x8x16xf32>
    %cst_60 = arith.constant dense<0.000000e+00> : vector<8x16xf32>
    %157 = vector.multi_reduction <add>, %156, %cst_60 [1] : vector<8x8x16xf32> to vector<8x16xf32>
    %158 = vector.extract_strided_slice %97 {offsets = [0, 32], sizes = [8, 32], strides = [1, 1]} : vector<8x66xf32> to vector<8x32xf32>
    %159 = tpu.concatenate %124, %153 in 1 : vector<8x8xf32>, vector<8x8xf32> -> vector<8x16xf32>
    %160 = tpu.concatenate %128, %157 in 1 : vector<8x16xf32>, vector<8x16xf32> -> vector<8x32xf32>
    %161 = tpu.concatenate %129, %158 in 0 : vector<8x32xf32>, vector<8x32xf32> -> vector<16x32xf32>
    %cst_61 = arith.constant dense<0.000000e+00> : vector<8x32xf32>
    %162 = tpu.matmul %159, %161, %cst_61 {dimension_numbers = #tpu.dot_dimension_numbers<[1], [0], [0], [1], [0, 0, 1, 1], [], []>} : vector<8x16xf32>, vector<16x32xf32>, vector<8x32xf32> -> vector<8x32xf32>
    %c1_62 = arith.constant 1 : index
    %c0_63 = arith.constant 0 : index
    %c0_64 = arith.constant 0 : index
    %163 = vector.load %arg7[%c1_62, %c0_63, %c0_64] : memref<5x32x32xf32, #tpu.memory_space<vmem>>, vector<1x32x32xf32>
    %164 = vector.shape_cast %163 : vector<1x32x32xf32> to vector<32x32xf32>
    %cst_65 = arith.constant dense<0.000000e+00> : vector<8x32xf32>
    %165 = tpu.matmul %160, %164, %cst_65 {dimension_numbers = #tpu.dot_dimension_numbers<[1], [0], [0], [1], [0, 0, 1, 1], [], []>} : vector<8x32xf32>, vector<32x32xf32>, vector<8x32xf32> -> vector<8x32xf32>
    %166 = arith.addf %162, %165 : vector<8x32xf32>
    %cst_66 = arith.constant 5.000000e-01 : f32
    %167 = vector.broadcast %cst_66 : f32 to vector<8x32xf32>
    %168 = arith.mulf %166, %167 : vector<8x32xf32>
    %c1_67 = arith.constant 1 : index
    %c0_68 = arith.constant 0 : index
    %c0_69 = arith.constant 0 : index
    %169 = vector.load %arg8[%c1_67, %c0_68, %c0_69] : memref<5x1x32xf32, #tpu.memory_space<vmem>>, vector<1x1x32xf32>
    %170 = vector.shape_cast %169 : vector<1x1x32xf32> to vector<1x32xf32>
    %171 = vector.broadcast %170 : vector<1x32xf32> to vector<8x32xf32>
    %172 = arith.addf %168, %171 : vector<8x32xf32>
    %cst_70 = arith.constant 0.000000e+00 : f32
    %173 = vector.broadcast %cst_70 : f32 to vector<8x32xf32>
    %174 = arith.maximumf %172, %173 : vector<8x32xf32>
    %c2 = arith.constant 2 : index
    %c0_71 = arith.constant 0 : index
    %c0_72 = arith.constant 0 : index
    %175 = vector.load %arg3[%c2, %c0_71, %c0_72] : memref<5x32x66xf32, #tpu.memory_space<vmem>>, vector<1x32x66xf32>
    %176 = vector.shape_cast %175 : vector<1x32x66xf32> to vector<32x66xf32>
    %cst_73 = arith.constant dense<0.000000e+00> : vector<8x66xf32>
    %177 = tpu.matmul %174, %176, %cst_73 {dimension_numbers = #tpu.dot_dimension_numbers<[1], [0], [0], [1], [0, 0, 1, 1], [], []>} : vector<8x32xf32>, vector<32x66xf32>, vector<8x66xf32> -> vector<8x66xf32>
    %c2_74 = arith.constant 2 : index
    %c0_75 = arith.constant 0 : index
    %c0_76 = arith.constant 0 : index
    %178 = vector.load %arg4[%c2_74, %c0_75, %c0_76] : memref<5x2x32xf32, #tpu.memory_space<vmem>>, vector<1x2x32xf32>
    %179 = vector.shape_cast %178 : vector<1x2x32xf32> to vector<2x32xf32>
    %cst_77 = arith.constant dense<0.000000e+00> : vector<2x8xf32>
    %180 = tpu.matmul %179, %174, %cst_77 {dimension_numbers = #tpu.dot_dimension_numbers<[1], [1], [0], [0], [0, 0, 1, 0], [], []>} : vector<2x32xf32>, vector<8x32xf32>, vector<2x8xf32> -> vector<2x8xf32>
    %181 = vector.extract_strided_slice %177 {offsets = [0, 64], sizes = [8, 1], strides = [1, 1]} : vector<8x66xf32> to vector<8x1xf32>
    %182 = vector.extract_strided_slice %180 {offsets = [0, 0], sizes = [1, 8], strides = [1, 1]} : vector<2x8xf32> to vector<1x8xf32>
    %183 = vector.broadcast %181 : vector<8x1xf32> to vector<8x8xf32>
    %184 = vector.broadcast %182 : vector<1x8xf32> to vector<8x8xf32>
    %185 = arith.addf %183, %184 : vector<8x8xf32>
    %186 = vector.extract_strided_slice %14 {offsets = [0, 0, 4], sizes = [8, 8, 1], strides = [1, 1, 1]} : vector<8x8x10xf32> to vector<8x8x1xf32>
    %cst_78 = arith.constant dense<0.000000e+00> : vector<8x8xf32>
    %187 = vector.multi_reduction <add>, %186, %cst_78 [2] : vector<8x8x1xf32> to vector<8x8xf32>
    %188 = arith.addf %185, %187 : vector<8x8xf32>
    %cst_79 = arith.constant 0.000000e+00 : f32
    %189 = vector.broadcast %cst_79 : f32 to vector<8x8xf32>
    %190 = arith.cmpf oge, %188, %189 : vector<8x8xf32>
    %cst_80 = arith.constant 2.000000e-01 : f32
    %191 = vector.broadcast %cst_80 : f32 to vector<8x8xf32>
    %192 = arith.mulf %191, %188 : vector<8x8xf32>
    %193 = arith.select %190, %188, %192 : vector<8x8xi1>, vector<8x8xf32>
    %194 = arith.addf %193, %6 : vector<8x8xf32>
    %cst_81 = arith.constant dense<0xFF800000> : vector<8xf32>
    %195 = vector.multi_reduction <maximumf>, %194, %cst_81 [1] : vector<8x8xf32> to vector<8xf32>
    %196 = vector.shape_cast %195 : vector<8xf32> to vector<8x1xf32>
    %197 = vector.broadcast %196 : vector<8x1xf32> to vector<8x8xf32>
    %198 = arith.subf %194, %197 : vector<8x8xf32>
    %199 = math.exp %198 : vector<8x8xf32>
    %cst_82 = arith.constant dense<0.000000e+00> : vector<8xf32>
    %200 = vector.multi_reduction <add>, %199, %cst_82 [1] : vector<8x8xf32> to vector<8xf32>
    %201 = vector.shape_cast %200 : vector<8xf32> to vector<8x1xf32>
    %202 = tpu.reciprocal %201 : vector<8x1xf32> -> vector<8x1xf32>
    %203 = vector.broadcast %202 : vector<8x1xf32> to vector<8x8xf32>
    %204 = arith.mulf %199, %203 : vector<8x8xf32>
    %205 = vector.shape_cast %204 : vector<8x8xf32> to vector<8x8x1xf32>
    %206 = vector.broadcast %205 : vector<8x8x1xf32> to vector<8x8x16xf32>
    %207 = arith.mulf %206, %8 : vector<8x8x16xf32>
    %cst_83 = arith.constant dense<0.000000e+00> : vector<8x16xf32>
    %208 = vector.multi_reduction <add>, %207, %cst_83 [1] : vector<8x8x16xf32> to vector<8x16xf32>
    %209 = vector.extract_strided_slice %177 {offsets = [0, 0], sizes = [8, 32], strides = [1, 1]} : vector<8x66xf32> to vector<8x32xf32>
    %210 = vector.extract_strided_slice %177 {offsets = [0, 65], sizes = [8, 1], strides = [1, 1]} : vector<8x66xf32> to vector<8x1xf32>
    %211 = vector.extract_strided_slice %180 {offsets = [1, 0], sizes = [1, 8], strides = [1, 1]} : vector<2x8xf32> to vector<1x8xf32>
    %212 = vector.broadcast %210 : vector<8x1xf32> to vector<8x8xf32>
    %213 = vector.broadcast %211 : vector<1x8xf32> to vector<8x8xf32>
    %214 = arith.addf %212, %213 : vector<8x8xf32>
    %215 = vector.extract_strided_slice %14 {offsets = [0, 0, 5], sizes = [8, 8, 1], strides = [1, 1, 1]} : vector<8x8x10xf32> to vector<8x8x1xf32>
    %cst_84 = arith.constant dense<0.000000e+00> : vector<8x8xf32>
    %216 = vector.multi_reduction <add>, %215, %cst_84 [2] : vector<8x8x1xf32> to vector<8x8xf32>
    %217 = arith.addf %214, %216 : vector<8x8xf32>
    %cst_85 = arith.constant 0.000000e+00 : f32
    %218 = vector.broadcast %cst_85 : f32 to vector<8x8xf32>
    %219 = arith.cmpf oge, %217, %218 : vector<8x8xf32>
    %cst_86 = arith.constant 2.000000e-01 : f32
    %220 = vector.broadcast %cst_86 : f32 to vector<8x8xf32>
    %221 = arith.mulf %220, %217 : vector<8x8xf32>
    %222 = arith.select %219, %217, %221 : vector<8x8xi1>, vector<8x8xf32>
    %223 = arith.addf %222, %6 : vector<8x8xf32>
    %cst_87 = arith.constant dense<0xFF800000> : vector<8xf32>
    %224 = vector.multi_reduction <maximumf>, %223, %cst_87 [1] : vector<8x8xf32> to vector<8xf32>
    %225 = vector.shape_cast %224 : vector<8xf32> to vector<8x1xf32>
    %226 = vector.broadcast %225 : vector<8x1xf32> to vector<8x8xf32>
    %227 = arith.subf %223, %226 : vector<8x8xf32>
    %228 = math.exp %227 : vector<8x8xf32>
    %cst_88 = arith.constant dense<0.000000e+00> : vector<8xf32>
    %229 = vector.multi_reduction <add>, %228, %cst_88 [1] : vector<8x8xf32> to vector<8xf32>
    %230 = vector.shape_cast %229 : vector<8xf32> to vector<8x1xf32>
    %231 = tpu.reciprocal %230 : vector<8x1xf32> -> vector<8x1xf32>
    %232 = vector.broadcast %231 : vector<8x1xf32> to vector<8x8xf32>
    %233 = arith.mulf %228, %232 : vector<8x8xf32>
    %234 = vector.shape_cast %233 : vector<8x8xf32> to vector<8x8x1xf32>
    %235 = vector.broadcast %234 : vector<8x8x1xf32> to vector<8x8x16xf32>
    %236 = arith.mulf %235, %8 : vector<8x8x16xf32>
    %cst_89 = arith.constant dense<0.000000e+00> : vector<8x16xf32>
    %237 = vector.multi_reduction <add>, %236, %cst_89 [1] : vector<8x8x16xf32> to vector<8x16xf32>
    %238 = vector.extract_strided_slice %177 {offsets = [0, 32], sizes = [8, 32], strides = [1, 1]} : vector<8x66xf32> to vector<8x32xf32>
    %239 = tpu.concatenate %204, %233 in 1 : vector<8x8xf32>, vector<8x8xf32> -> vector<8x16xf32>
    %240 = tpu.concatenate %208, %237 in 1 : vector<8x16xf32>, vector<8x16xf32> -> vector<8x32xf32>
    %241 = tpu.concatenate %209, %238 in 0 : vector<8x32xf32>, vector<8x32xf32> -> vector<16x32xf32>
    %cst_90 = arith.constant dense<0.000000e+00> : vector<8x32xf32>
    %242 = tpu.matmul %239, %241, %cst_90 {dimension_numbers = #tpu.dot_dimension_numbers<[1], [0], [0], [1], [0, 0, 1, 1], [], []>} : vector<8x16xf32>, vector<16x32xf32>, vector<8x32xf32> -> vector<8x32xf32>
    %c2_91 = arith.constant 2 : index
    %c0_92 = arith.constant 0 : index
    %c0_93 = arith.constant 0 : index
    %243 = vector.load %arg7[%c2_91, %c0_92, %c0_93] : memref<5x32x32xf32, #tpu.memory_space<vmem>>, vector<1x32x32xf32>
    %244 = vector.shape_cast %243 : vector<1x32x32xf32> to vector<32x32xf32>
    %cst_94 = arith.constant dense<0.000000e+00> : vector<8x32xf32>
    %245 = tpu.matmul %240, %244, %cst_94 {dimension_numbers = #tpu.dot_dimension_numbers<[1], [0], [0], [1], [0, 0, 1, 1], [], []>} : vector<8x32xf32>, vector<32x32xf32>, vector<8x32xf32> -> vector<8x32xf32>
    %246 = arith.addf %242, %245 : vector<8x32xf32>
    %cst_95 = arith.constant 5.000000e-01 : f32
    %247 = vector.broadcast %cst_95 : f32 to vector<8x32xf32>
    %248 = arith.mulf %246, %247 : vector<8x32xf32>
    %c2_96 = arith.constant 2 : index
    %c0_97 = arith.constant 0 : index
    %c0_98 = arith.constant 0 : index
    %249 = vector.load %arg8[%c2_96, %c0_97, %c0_98] : memref<5x1x32xf32, #tpu.memory_space<vmem>>, vector<1x1x32xf32>
    %250 = vector.shape_cast %249 : vector<1x1x32xf32> to vector<1x32xf32>
    %251 = vector.broadcast %250 : vector<1x32xf32> to vector<8x32xf32>
    %252 = arith.addf %248, %251 : vector<8x32xf32>
    %cst_99 = arith.constant 0.000000e+00 : f32
    %253 = vector.broadcast %cst_99 : f32 to vector<8x32xf32>
    %254 = arith.maximumf %252, %253 : vector<8x32xf32>
    %c3 = arith.constant 3 : index
    %c0_100 = arith.constant 0 : index
    %c0_101 = arith.constant 0 : index
    %255 = vector.load %arg3[%c3, %c0_100, %c0_101] : memref<5x32x66xf32, #tpu.memory_space<vmem>>, vector<1x32x66xf32>
    %256 = vector.shape_cast %255 : vector<1x32x66xf32> to vector<32x66xf32>
    %cst_102 = arith.constant dense<0.000000e+00> : vector<8x66xf32>
    %257 = tpu.matmul %254, %256, %cst_102 {dimension_numbers = #tpu.dot_dimension_numbers<[1], [0], [0], [1], [0, 0, 1, 1], [], []>} : vector<8x32xf32>, vector<32x66xf32>, vector<8x66xf32> -> vector<8x66xf32>
    %c3_103 = arith.constant 3 : index
    %c0_104 = arith.constant 0 : index
    %c0_105 = arith.constant 0 : index
    %258 = vector.load %arg4[%c3_103, %c0_104, %c0_105] : memref<5x2x32xf32, #tpu.memory_space<vmem>>, vector<1x2x32xf32>
    %259 = vector.shape_cast %258 : vector<1x2x32xf32> to vector<2x32xf32>
    %cst_106 = arith.constant dense<0.000000e+00> : vector<2x8xf32>
    %260 = tpu.matmul %259, %254, %cst_106 {dimension_numbers = #tpu.dot_dimension_numbers<[1], [1], [0], [0], [0, 0, 1, 0], [], []>} : vector<2x32xf32>, vector<8x32xf32>, vector<2x8xf32> -> vector<2x8xf32>
    %261 = vector.extract_strided_slice %257 {offsets = [0, 64], sizes = [8, 1], strides = [1, 1]} : vector<8x66xf32> to vector<8x1xf32>
    %262 = vector.extract_strided_slice %260 {offsets = [0, 0], sizes = [1, 8], strides = [1, 1]} : vector<2x8xf32> to vector<1x8xf32>
    %263 = vector.broadcast %261 : vector<8x1xf32> to vector<8x8xf32>
    %264 = vector.broadcast %262 : vector<1x8xf32> to vector<8x8xf32>
    %265 = arith.addf %263, %264 : vector<8x8xf32>
    %266 = vector.extract_strided_slice %14 {offsets = [0, 0, 6], sizes = [8, 8, 1], strides = [1, 1, 1]} : vector<8x8x10xf32> to vector<8x8x1xf32>
    %cst_107 = arith.constant dense<0.000000e+00> : vector<8x8xf32>
    %267 = vector.multi_reduction <add>, %266, %cst_107 [2] : vector<8x8x1xf32> to vector<8x8xf32>
    %268 = arith.addf %265, %267 : vector<8x8xf32>
    %cst_108 = arith.constant 0.000000e+00 : f32
    %269 = vector.broadcast %cst_108 : f32 to vector<8x8xf32>
    %270 = arith.cmpf oge, %268, %269 : vector<8x8xf32>
    %cst_109 = arith.constant 2.000000e-01 : f32
    %271 = vector.broadcast %cst_109 : f32 to vector<8x8xf32>
    %272 = arith.mulf %271, %268 : vector<8x8xf32>
    %273 = arith.select %270, %268, %272 : vector<8x8xi1>, vector<8x8xf32>
    %274 = arith.addf %273, %6 : vector<8x8xf32>
    %cst_110 = arith.constant dense<0xFF800000> : vector<8xf32>
    %275 = vector.multi_reduction <maximumf>, %274, %cst_110 [1] : vector<8x8xf32> to vector<8xf32>
    %276 = vector.shape_cast %275 : vector<8xf32> to vector<8x1xf32>
    %277 = vector.broadcast %276 : vector<8x1xf32> to vector<8x8xf32>
    %278 = arith.subf %274, %277 : vector<8x8xf32>
    %279 = math.exp %278 : vector<8x8xf32>
    %cst_111 = arith.constant dense<0.000000e+00> : vector<8xf32>
    %280 = vector.multi_reduction <add>, %279, %cst_111 [1] : vector<8x8xf32> to vector<8xf32>
    %281 = vector.shape_cast %280 : vector<8xf32> to vector<8x1xf32>
    %282 = tpu.reciprocal %281 : vector<8x1xf32> -> vector<8x1xf32>
    %283 = vector.broadcast %282 : vector<8x1xf32> to vector<8x8xf32>
    %284 = arith.mulf %279, %283 : vector<8x8xf32>
    %285 = vector.shape_cast %284 : vector<8x8xf32> to vector<8x8x1xf32>
    %286 = vector.broadcast %285 : vector<8x8x1xf32> to vector<8x8x16xf32>
    %287 = arith.mulf %286, %8 : vector<8x8x16xf32>
    %cst_112 = arith.constant dense<0.000000e+00> : vector<8x16xf32>
    %288 = vector.multi_reduction <add>, %287, %cst_112 [1] : vector<8x8x16xf32> to vector<8x16xf32>
    %289 = vector.extract_strided_slice %257 {offsets = [0, 0], sizes = [8, 32], strides = [1, 1]} : vector<8x66xf32> to vector<8x32xf32>
    %290 = vector.extract_strided_slice %257 {offsets = [0, 65], sizes = [8, 1], strides = [1, 1]} : vector<8x66xf32> to vector<8x1xf32>
    %291 = vector.extract_strided_slice %260 {offsets = [1, 0], sizes = [1, 8], strides = [1, 1]} : vector<2x8xf32> to vector<1x8xf32>
    %292 = vector.broadcast %290 : vector<8x1xf32> to vector<8x8xf32>
    %293 = vector.broadcast %291 : vector<1x8xf32> to vector<8x8xf32>
    %294 = arith.addf %292, %293 : vector<8x8xf32>
    %295 = vector.extract_strided_slice %14 {offsets = [0, 0, 7], sizes = [8, 8, 1], strides = [1, 1, 1]} : vector<8x8x10xf32> to vector<8x8x1xf32>
    %cst_113 = arith.constant dense<0.000000e+00> : vector<8x8xf32>
    %296 = vector.multi_reduction <add>, %295, %cst_113 [2] : vector<8x8x1xf32> to vector<8x8xf32>
    %297 = arith.addf %294, %296 : vector<8x8xf32>
    %cst_114 = arith.constant 0.000000e+00 : f32
    %298 = vector.broadcast %cst_114 : f32 to vector<8x8xf32>
    %299 = arith.cmpf oge, %297, %298 : vector<8x8xf32>
    %cst_115 = arith.constant 2.000000e-01 : f32
    %300 = vector.broadcast %cst_115 : f32 to vector<8x8xf32>
    %301 = arith.mulf %300, %297 : vector<8x8xf32>
    %302 = arith.select %299, %297, %301 : vector<8x8xi1>, vector<8x8xf32>
    %303 = arith.addf %302, %6 : vector<8x8xf32>
    %cst_116 = arith.constant dense<0xFF800000> : vector<8xf32>
    %304 = vector.multi_reduction <maximumf>, %303, %cst_116 [1] : vector<8x8xf32> to vector<8xf32>
    %305 = vector.shape_cast %304 : vector<8xf32> to vector<8x1xf32>
    %306 = vector.broadcast %305 : vector<8x1xf32> to vector<8x8xf32>
    %307 = arith.subf %303, %306 : vector<8x8xf32>
    %308 = math.exp %307 : vector<8x8xf32>
    %cst_117 = arith.constant dense<0.000000e+00> : vector<8xf32>
    %309 = vector.multi_reduction <add>, %308, %cst_117 [1] : vector<8x8xf32> to vector<8xf32>
    %310 = vector.shape_cast %309 : vector<8xf32> to vector<8x1xf32>
    %311 = tpu.reciprocal %310 : vector<8x1xf32> -> vector<8x1xf32>
    %312 = vector.broadcast %311 : vector<8x1xf32> to vector<8x8xf32>
    %313 = arith.mulf %308, %312 : vector<8x8xf32>
    %314 = vector.shape_cast %313 : vector<8x8xf32> to vector<8x8x1xf32>
    %315 = vector.broadcast %314 : vector<8x8x1xf32> to vector<8x8x16xf32>
    %316 = arith.mulf %315, %8 : vector<8x8x16xf32>
    %cst_118 = arith.constant dense<0.000000e+00> : vector<8x16xf32>
    %317 = vector.multi_reduction <add>, %316, %cst_118 [1] : vector<8x8x16xf32> to vector<8x16xf32>
    %318 = vector.extract_strided_slice %257 {offsets = [0, 32], sizes = [8, 32], strides = [1, 1]} : vector<8x66xf32> to vector<8x32xf32>
    %319 = tpu.concatenate %284, %313 in 1 : vector<8x8xf32>, vector<8x8xf32> -> vector<8x16xf32>
    %320 = tpu.concatenate %288, %317 in 1 : vector<8x16xf32>, vector<8x16xf32> -> vector<8x32xf32>
    %321 = tpu.concatenate %289, %318 in 0 : vector<8x32xf32>, vector<8x32xf32> -> vector<16x32xf32>
    %cst_119 = arith.constant dense<0.000000e+00> : vector<8x32xf32>
    %322 = tpu.matmul %319, %321, %cst_119 {dimension_numbers = #tpu.dot_dimension_numbers<[1], [0], [0], [1], [0, 0, 1, 1], [], []>} : vector<8x16xf32>, vector<16x32xf32>, vector<8x32xf32> -> vector<8x32xf32>
    %c3_120 = arith.constant 3 : index
    %c0_121 = arith.constant 0 : index
    %c0_122 = arith.constant 0 : index
    %323 = vector.load %arg7[%c3_120, %c0_121, %c0_122] : memref<5x32x32xf32, #tpu.memory_space<vmem>>, vector<1x32x32xf32>
    %324 = vector.shape_cast %323 : vector<1x32x32xf32> to vector<32x32xf32>
    %cst_123 = arith.constant dense<0.000000e+00> : vector<8x32xf32>
    %325 = tpu.matmul %320, %324, %cst_123 {dimension_numbers = #tpu.dot_dimension_numbers<[1], [0], [0], [1], [0, 0, 1, 1], [], []>} : vector<8x32xf32>, vector<32x32xf32>, vector<8x32xf32> -> vector<8x32xf32>
    %326 = arith.addf %322, %325 : vector<8x32xf32>
    %cst_124 = arith.constant 5.000000e-01 : f32
    %327 = vector.broadcast %cst_124 : f32 to vector<8x32xf32>
    %328 = arith.mulf %326, %327 : vector<8x32xf32>
    %c3_125 = arith.constant 3 : index
    %c0_126 = arith.constant 0 : index
    %c0_127 = arith.constant 0 : index
    %329 = vector.load %arg8[%c3_125, %c0_126, %c0_127] : memref<5x1x32xf32, #tpu.memory_space<vmem>>, vector<1x1x32xf32>
    %330 = vector.shape_cast %329 : vector<1x1x32xf32> to vector<1x32xf32>
    %331 = vector.broadcast %330 : vector<1x32xf32> to vector<8x32xf32>
    %332 = arith.addf %328, %331 : vector<8x32xf32>
    %cst_128 = arith.constant 0.000000e+00 : f32
    %333 = vector.broadcast %cst_128 : f32 to vector<8x32xf32>
    %334 = arith.maximumf %332, %333 : vector<8x32xf32>
    %c4 = arith.constant 4 : index
    %c0_129 = arith.constant 0 : index
    %c0_130 = arith.constant 0 : index
    %335 = vector.load %arg3[%c4, %c0_129, %c0_130] : memref<5x32x66xf32, #tpu.memory_space<vmem>>, vector<1x32x66xf32>
    %336 = vector.shape_cast %335 : vector<1x32x66xf32> to vector<32x66xf32>
    %cst_131 = arith.constant dense<0.000000e+00> : vector<8x66xf32>
    %337 = tpu.matmul %334, %336, %cst_131 {dimension_numbers = #tpu.dot_dimension_numbers<[1], [0], [0], [1], [0, 0, 1, 1], [], []>} : vector<8x32xf32>, vector<32x66xf32>, vector<8x66xf32> -> vector<8x66xf32>
    %c4_132 = arith.constant 4 : index
    %c0_133 = arith.constant 0 : index
    %c0_134 = arith.constant 0 : index
    %338 = vector.load %arg4[%c4_132, %c0_133, %c0_134] : memref<5x2x32xf32, #tpu.memory_space<vmem>>, vector<1x2x32xf32>
    %339 = vector.shape_cast %338 : vector<1x2x32xf32> to vector<2x32xf32>
    %cst_135 = arith.constant dense<0.000000e+00> : vector<2x8xf32>
    %340 = tpu.matmul %339, %334, %cst_135 {dimension_numbers = #tpu.dot_dimension_numbers<[1], [1], [0], [0], [0, 0, 1, 0], [], []>} : vector<2x32xf32>, vector<8x32xf32>, vector<2x8xf32> -> vector<2x8xf32>
    %341 = vector.extract_strided_slice %337 {offsets = [0, 64], sizes = [8, 1], strides = [1, 1]} : vector<8x66xf32> to vector<8x1xf32>
    %342 = vector.extract_strided_slice %340 {offsets = [0, 0], sizes = [1, 8], strides = [1, 1]} : vector<2x8xf32> to vector<1x8xf32>
    %343 = vector.broadcast %341 : vector<8x1xf32> to vector<8x8xf32>
    %344 = vector.broadcast %342 : vector<1x8xf32> to vector<8x8xf32>
    %345 = arith.addf %343, %344 : vector<8x8xf32>
    %346 = vector.extract_strided_slice %14 {offsets = [0, 0, 8], sizes = [8, 8, 1], strides = [1, 1, 1]} : vector<8x8x10xf32> to vector<8x8x1xf32>
    %cst_136 = arith.constant dense<0.000000e+00> : vector<8x8xf32>
    %347 = vector.multi_reduction <add>, %346, %cst_136 [2] : vector<8x8x1xf32> to vector<8x8xf32>
    %348 = arith.addf %345, %347 : vector<8x8xf32>
    %cst_137 = arith.constant 0.000000e+00 : f32
    %349 = vector.broadcast %cst_137 : f32 to vector<8x8xf32>
    %350 = arith.cmpf oge, %348, %349 : vector<8x8xf32>
    %cst_138 = arith.constant 2.000000e-01 : f32
    %351 = vector.broadcast %cst_138 : f32 to vector<8x8xf32>
    %352 = arith.mulf %351, %348 : vector<8x8xf32>
    %353 = arith.select %350, %348, %352 : vector<8x8xi1>, vector<8x8xf32>
    %354 = arith.addf %353, %6 : vector<8x8xf32>
    %cst_139 = arith.constant dense<0xFF800000> : vector<8xf32>
    %355 = vector.multi_reduction <maximumf>, %354, %cst_139 [1] : vector<8x8xf32> to vector<8xf32>
    %356 = vector.shape_cast %355 : vector<8xf32> to vector<8x1xf32>
    %357 = vector.broadcast %356 : vector<8x1xf32> to vector<8x8xf32>
    %358 = arith.subf %354, %357 : vector<8x8xf32>
    %359 = math.exp %358 : vector<8x8xf32>
    %cst_140 = arith.constant dense<0.000000e+00> : vector<8xf32>
    %360 = vector.multi_reduction <add>, %359, %cst_140 [1] : vector<8x8xf32> to vector<8xf32>
    %361 = vector.shape_cast %360 : vector<8xf32> to vector<8x1xf32>
    %362 = tpu.reciprocal %361 : vector<8x1xf32> -> vector<8x1xf32>
    %363 = vector.broadcast %362 : vector<8x1xf32> to vector<8x8xf32>
    %364 = arith.mulf %359, %363 : vector<8x8xf32>
    %365 = vector.shape_cast %364 : vector<8x8xf32> to vector<8x8x1xf32>
    %366 = vector.broadcast %365 : vector<8x8x1xf32> to vector<8x8x16xf32>
    %367 = arith.mulf %366, %8 : vector<8x8x16xf32>
    %cst_141 = arith.constant dense<0.000000e+00> : vector<8x16xf32>
    %368 = vector.multi_reduction <add>, %367, %cst_141 [1] : vector<8x8x16xf32> to vector<8x16xf32>
    %369 = vector.extract_strided_slice %337 {offsets = [0, 0], sizes = [8, 32], strides = [1, 1]} : vector<8x66xf32> to vector<8x32xf32>
    %370 = vector.extract_strided_slice %337 {offsets = [0, 65], sizes = [8, 1], strides = [1, 1]} : vector<8x66xf32> to vector<8x1xf32>
    %371 = vector.extract_strided_slice %340 {offsets = [1, 0], sizes = [1, 8], strides = [1, 1]} : vector<2x8xf32> to vector<1x8xf32>
    %372 = vector.broadcast %370 : vector<8x1xf32> to vector<8x8xf32>
    %373 = vector.broadcast %371 : vector<1x8xf32> to vector<8x8xf32>
    %374 = arith.addf %372, %373 : vector<8x8xf32>
    %375 = vector.extract_strided_slice %14 {offsets = [0, 0, 9], sizes = [8, 8, 1], strides = [1, 1, 1]} : vector<8x8x10xf32> to vector<8x8x1xf32>
    %cst_142 = arith.constant dense<0.000000e+00> : vector<8x8xf32>
    %376 = vector.multi_reduction <add>, %375, %cst_142 [2] : vector<8x8x1xf32> to vector<8x8xf32>
    %377 = arith.addf %374, %376 : vector<8x8xf32>
    %cst_143 = arith.constant 0.000000e+00 : f32
    %378 = vector.broadcast %cst_143 : f32 to vector<8x8xf32>
    %379 = arith.cmpf oge, %377, %378 : vector<8x8xf32>
    %cst_144 = arith.constant 2.000000e-01 : f32
    %380 = vector.broadcast %cst_144 : f32 to vector<8x8xf32>
    %381 = arith.mulf %380, %377 : vector<8x8xf32>
    %382 = arith.select %379, %377, %381 : vector<8x8xi1>, vector<8x8xf32>
    %383 = arith.addf %382, %6 : vector<8x8xf32>
    %cst_145 = arith.constant dense<0xFF800000> : vector<8xf32>
    %384 = vector.multi_reduction <maximumf>, %383, %cst_145 [1] : vector<8x8xf32> to vector<8xf32>
    %385 = vector.shape_cast %384 : vector<8xf32> to vector<8x1xf32>
    %386 = vector.broadcast %385 : vector<8x1xf32> to vector<8x8xf32>
    %387 = arith.subf %383, %386 : vector<8x8xf32>
    %388 = math.exp %387 : vector<8x8xf32>
    %cst_146 = arith.constant dense<0.000000e+00> : vector<8xf32>
    %389 = vector.multi_reduction <add>, %388, %cst_146 [1] : vector<8x8xf32> to vector<8xf32>
    %390 = vector.shape_cast %389 : vector<8xf32> to vector<8x1xf32>
    %391 = tpu.reciprocal %390 : vector<8x1xf32> -> vector<8x1xf32>
    %392 = vector.broadcast %391 : vector<8x1xf32> to vector<8x8xf32>
    %393 = arith.mulf %388, %392 : vector<8x8xf32>
    %394 = vector.shape_cast %393 : vector<8x8xf32> to vector<8x8x1xf32>
    %395 = vector.broadcast %394 : vector<8x8x1xf32> to vector<8x8x16xf32>
    %396 = arith.mulf %395, %8 : vector<8x8x16xf32>
    %cst_147 = arith.constant dense<0.000000e+00> : vector<8x16xf32>
    %397 = vector.multi_reduction <add>, %396, %cst_147 [1] : vector<8x8x16xf32> to vector<8x16xf32>
    %398 = vector.extract_strided_slice %337 {offsets = [0, 32], sizes = [8, 32], strides = [1, 1]} : vector<8x66xf32> to vector<8x32xf32>
    %399 = tpu.concatenate %364, %393 in 1 : vector<8x8xf32>, vector<8x8xf32> -> vector<8x16xf32>
    %400 = tpu.concatenate %368, %397 in 1 : vector<8x16xf32>, vector<8x16xf32> -> vector<8x32xf32>
    %401 = tpu.concatenate %369, %398 in 0 : vector<8x32xf32>, vector<8x32xf32> -> vector<16x32xf32>
    %cst_148 = arith.constant dense<0.000000e+00> : vector<8x32xf32>
    %402 = tpu.matmul %399, %401, %cst_148 {dimension_numbers = #tpu.dot_dimension_numbers<[1], [0], [0], [1], [0, 0, 1, 1], [], []>} : vector<8x16xf32>, vector<16x32xf32>, vector<8x32xf32> -> vector<8x32xf32>
    %c4_149 = arith.constant 4 : index
    %c0_150 = arith.constant 0 : index
    %c0_151 = arith.constant 0 : index
    %403 = vector.load %arg7[%c4_149, %c0_150, %c0_151] : memref<5x32x32xf32, #tpu.memory_space<vmem>>, vector<1x32x32xf32>
    %404 = vector.shape_cast %403 : vector<1x32x32xf32> to vector<32x32xf32>
    %cst_152 = arith.constant dense<0.000000e+00> : vector<8x32xf32>
    %405 = tpu.matmul %400, %404, %cst_152 {dimension_numbers = #tpu.dot_dimension_numbers<[1], [0], [0], [1], [0, 0, 1, 1], [], []>} : vector<8x32xf32>, vector<32x32xf32>, vector<8x32xf32> -> vector<8x32xf32>
    %406 = arith.addf %402, %405 : vector<8x32xf32>
    %cst_153 = arith.constant 5.000000e-01 : f32
    %407 = vector.broadcast %cst_153 : f32 to vector<8x32xf32>
    %408 = arith.mulf %406, %407 : vector<8x32xf32>
    %c4_154 = arith.constant 4 : index
    %c0_155 = arith.constant 0 : index
    %c0_156 = arith.constant 0 : index
    %409 = vector.load %arg8[%c4_154, %c0_155, %c0_156] : memref<5x1x32xf32, #tpu.memory_space<vmem>>, vector<1x1x32xf32>
    %410 = vector.shape_cast %409 : vector<1x1x32xf32> to vector<1x32xf32>
    %411 = vector.broadcast %410 : vector<1x32xf32> to vector<8x32xf32>
    %412 = arith.addf %408, %411 : vector<8x32xf32>
    %c0_157 = arith.constant 0 : index
    %c0_158 = arith.constant 0 : index
    %413 = vector.load %arg9[%c0_157, %c0_158] : memref<8x32xf32, #tpu.memory_space<vmem>>, vector<8x32xf32>
    tpu.vector_store %arg9[%c0_157, %c0_158], %412 {strides = array<i32>} : memref<8x32xf32, #tpu.memory_space<vmem>>, vector<8x32xf32>,
    return
  }
}

</mosaic_0001>

<bundles_post_ra>
// kernel: tpu_custom_call.1
= control target key start
LH: loop header
LB: loop body
LE: loop exit
PB: predicated region body
PF: predicated region fallthrough
CT: control target
= control target key end

     0   :  { %14 = vsyncpa [#allocation3], 0  ;;  %s4131_s0 = inlined_call_operand.vmem [shape: f32[8,32], index: 0, kind: input, shape index: {}]   ;;  %s4132_s1 = inlined_call_operand.vmem [shape: f32[8,8], index: 1, kind: input, shape index: {}]   ;;  %s4133_s2 = inlined_call_operand.vmem [shape: f32[64,16], index: 2, kind: input, shape index: {}]   ;;  %s4134_s3 = inlined_call_operand.hbm [shape: f32[5,32,66], index: 3, kind: input, shape index: {}]   ;;  %s4135_s4 = inlined_call_operand.vmem [shape: f32[5,2,32], index: 4, kind: input, shape index: {}]   ;;  %s4136_s5 = inlined_call_operand.vmem [shape: f32[16,10], index: 5, kind: input, shape index: {}]   ;;  %s4137_s6 = inlined_call_operand.vmem [shape: f32[1,10], index: 6, kind: input, shape index: {}]   ;;  %s4138_s7 = inlined_call_operand.hbm [shape: f32[5,32,32], index: 7, kind: input, shape index: {}]   ;;  %s4139_s8 = inlined_call_operand.vmem [shape: f32[5,1,32], index: 8, kind: input, shape index: {}]   ;;  %s4140_s9 = inlined_call_operand.hbm [shape: f32[8,32], index: 9, kind: output, shape index: {}]  }
   0x1   :  { %15 = vsyncpa [#allocation6], 0 }
   0x2   :  { %16 = vsyncpa [#allocation4], 0  ;;  %s27_s11 = sshll.u32 %s4134_s3, 4  ;;  %s3177_s12 = smov [#allocation2]   ;;  %s28_s11 = int_to_ptr.hbm [resolvable:$true] %s27_s11 }
   0x3   :  { %s29_s13 = sshll.u32 %s3177_s12, 4  ;;  %s46_s16 = sshll.u32 %s4138_s7, 4  ;;  %s30_s13 = int_to_ptr.vmem [resolvable:$true] %s29_s13  ;;  %s47_s16 = int_to_ptr.hbm [resolvable:$true] %s46_s16 }
   0x4   :  { %s3178_s17 = smov 128   ;;  %s3179_s18 = smov 8  }
   0x5   :  { %35 = dma.hbm_to_vmem [thread:$0]  %s28_s11, 2560, %s30_s13, [#allocation3], %s3178_s17, %s3178_s17, %s3179_s18  }
   0x6   :  { %s3180_s19 = smov [#allocation5]  }
   0x7   :  { %s48_s20 = sshll.u32 %s3180_s19, 4  ;;  %s49_s20 = int_to_ptr.vmem [resolvable:$true] %s48_s20 }
   0x8   :  { %54 = dma.hbm_to_vmem [thread:$0]  %s47_s16, 2560, %s49_s20, [#allocation6], %s3178_s17, %s3178_s17, %s3179_s18  }
   0x9   :  { %3171 = dma.done.wait [#allocation3], 2560  }
   0xa   :  { %3172 = vsyncadd [#allocation3], 4294964736 }
   0xb   :  { %3173 = dma.done.wait [#allocation6], 2560  }
   0xc   :  { %3174 = vsyncadd [#allocation6], 4294964736  ;;  %v78_v0 = vld [vmem:[%s4136_s5 + $0x8] sm:$0xff]  ;;  %v77_v1 = vld [vmem:[%s4136_s5] sm:$0xff]  ;;  %vm83_vm0 = vcmask 130048   ;;  %vm153_vm1 = vcmask 261120   ;;  %v248_v41 = vlaneseq }
   0xd   :  { %122 = vmatpush.msra.mxu0 %v78_v0  ;;  %v3264_v2 = vld [vmem:[%s4133_s2] sm:$0xff]  ;;  %v3271_v3 = vld [vmem:[%s4133_s2 + $0x8] sm:$0xff]  ;;  %v152_v4 = vld [vmem:[#allocation2 + $0x18] sm:$0xff]  ;;  %v3181_v15 = vmov 1   ;;  %v3182_v33 = vmov 65   ;;  %v3183_v36 = vmov 0  }
   0xe   :  { %v151_v5 = vld [vmem:[#allocation2 + $0x10] sm:$0xff]  ;;  %169 = vmatpush.msra.mxu1 %v152_v4  ;;  %v150_v7 = vld [vmem:[#allocation2 + $0x8] sm:$0xff]  ;;  %v149_v8 = vld [vmem:[#allocation2] sm:$0xff]  ;;  %2981 = vset.pattern.permute.xlu0 %v3181_v15  ;;  %v3184_v37 = vmov 64   ;;  %v3368_v44 = vand.u32 127, %v248_v41  ;;  %vm258_vm2 = vcmask 1041409  }
   0xf   :  { %123 = vmatpush.msra.mxu0 %v77_v1  ;;  %v3278_v6 = vld [vmem:[%s4133_s2 + $0x10] sm:$0xff]  ;;  %v65_v9 = vld [vmem:[%s4131_s0] sm:$0xff]  ;;  %v3290_v10 = vld [vmem:[%s4133_s2 + $0x18] sm:$0xff]  ;;  %2982 = vset.pattern.permute.xlu1 %v3181_v15  ;;  %vm260_vm3 = vcmask 1042434   ;;  %vm262_vm4 = vcmask 1043459   ;;  %vm264_vm5 = vcmask 1044484  }
  0x10   :  { %2920 = vmatmul.msk.f32.vlgmr.msra.gmra.mxu0 %vm83_vm0, %v3264_v2  ;;  %170 = vmatpush.msra.mxu1 %v151_v5  ;;  %v3297_v11 = vld [vmem:[%s4133_s2 + $0x20] sm:$0xff]  ;;  %v3304_v12 = vld [vmem:[%s4133_s2 + $0x28] sm:$0xff]  ;;  %v3311_v13 = vld [vmem:[%s4133_s2 + $0x30] sm:$0xff]  ;;  %vm266_vm6 = vcmask 1045509   ;;  %vm268_vm7 = vcmask 1046534   ;;  %vm270_vm8 = vcmask 1047559  }
  0x11   :  { %2929 = vmatpush.xpose.msk.msra.mxu2 %vm153_vm1, %v65_v9  ;;  %v3318_v14 = vld [vmem:[%s4133_s2 + $0x38] sm:$0xff]  ;;  %2983 = vset.pattern.permute.xlu2 %v3181_v15  ;;  %v3036_v16 = vld [vmem:[%s4137_s6] ss:$0 sm:$0xff]  ;;  %v3185_v15 = vmov -1e+30   ;;  %vm278_vm11 = vcmask 64512  }
  0x12   :  { %171 = vmatpush.msra.mxu1 %v150_v7  ;;  %v177_v20 = vld [vmem:[%s4135_s4] sm:$0x3]  ;;  %s3189_s7 = smov 16   ;;  %s2909_s26 = sshll.u32 %s4140_s9, 4  ;;  %s2910_s26 = int_to_ptr.hbm [resolvable:$true] %s2909_s26 }
  0x13   :  { %v66_v63 = vld [vmem:[%s4132_s1] sm:$0xff]  ;;  %s3187_s1 = smov 96  }
  0x14   :  { %172 = vmatpush.msra.mxu1 %v149_v8  ;;  %2930 = vmatmul.msk.f32.vlgmr.msra.gmra.mxu2 %vm153_vm1, %v177_v20  ;;  %vm67_vm9 = vcmp.gt.f32.partialorder %v66_v63, 0.0 }
  0x15   :  { %2928 = vmatmul.msk.f32.vlgmr.msra.gmra.mxu1 %vm153_vm1, %v65_v9 }
  0x18   :  { %2921 = vmatmul.msk.f32.gmra.mxu0 %vm83_vm0, %v3271_v3 }
  0x20   :  { %2922 = vmatmul.msk.f32.gmra.mxu0 %vm83_vm0, %v3278_v6 }
  0x28   :  { %2923 = vmatmul.msk.f32.gmra.mxu0 %vm83_vm0, %v3290_v10 }
  0x30   :  { %2924 = vmatmul.msk.f32.gmra.mxu0 %vm83_vm0, %v3297_v11 }
  0x38   :  { %2925 = vmatmul.msk.f32.gmra.mxu0 %vm83_vm0, %v3304_v12 }
  0x40   :  { %2926 = vmatmul.msk.f32.gmra.mxu0 %vm83_vm0, %v3311_v13 }
  0x48   :  { %2927 = vmatmul.msk.f32.gmra.mxu0 %vm83_vm0, %v3318_v14 }
  0x8d   :  { %v125_v17 = vpop.f32.mrf.mxu0 }
  0x8e   :  { %v3325_v18 = vadd.f32 %v3036_v16, %v125_v17 }
  0x90   :  { %430 = vperm.xlu0 %2981, %v3325_v18  }
  0x92   :  { %v3349_v32 = vpop.f32.mrf.mxu1 }
  0x95   :  { %v128_v19 = vpop.f32.mrf.mxu0 }
  0x96   :  { %v3331_v21 = vadd.f32 %v3036_v16, %v128_v19 }
  0x97   :  { %v198_v51 = vpop.f32.mrf.mxu2 }
  0x98   :  { %433 = vperm.xlu0 %2981, %v3331_v21   ;;  %v427_v57 = vperm.slane %v198_v51, 1 }
  0x9d   :  { %v131_v22 = vpop.f32.mrf.mxu0 }
  0x9e   :  { %v3335_v23 = vadd.f32 %v3036_v16, %v131_v22 }
  0xa0   :  { %436 = vperm.xlu1 %2982, %v3335_v23  }
  0xa5   :  { %v134_v24 = vpop.f32.mrf.mxu0 }
  0xa6   :  { %v3338_v25 = vadd.f32 %v3036_v16, %v134_v24 }
  0xa8   :  { %439 = vperm.xlu1 %2982, %v3338_v25  }
  0xad   :  { %v137_v26 = vpop.f32.mrf.mxu0 }
  0xae   :  { %v3341_v27 = vadd.f32 %v3036_v16, %v137_v26 }
  0xb0   :  { %442 = vperm.xlu2 %2983, %v3341_v27  }
  0xb5   :  { %v140_v28 = vpop.f32.mrf.mxu0 }
  0xb6   :  { %v3344_v29 = vadd.f32 %v3036_v16, %v140_v28 }
  0xb8   :  { %445 = vperm.xlu2 %2983, %v3344_v29  }
  0xbd   :  { %v143_v30 = vpop.f32.mrf.mxu0 }
  0xbe   :  { %v3347_v31 = vadd.f32 %v3036_v16, %v143_v30 }
  0xc0   :  { %2984 = vset.pattern.permute.xlu2 %v3182_v33  ;;  %448 = vperm.xlu0 %2981, %v3347_v31  }
  0xc1   :  { %424 = vperm.xlu2 %2984, %v3349_v32  }
  0xc5   :  { %v146_v34 = vpop.f32.mrf.mxu0 }
  0xc6   :  { %v3354_v35 = vadd.f32 %v3036_v16, %v146_v34  ;;  %v3388_v16 = vsel %vm67_vm9, 0.0, %v3185_v15 }
  0xc8   :  { %451 = vperm.xlu1 %2982, %v3354_v35   ;;  %2985 = vset.pattern.permute.xlu0 %v3183_v36 }
  0xc9   :  { %225 = vperm.xlu0 %2985, %v3325_v18   ;;  %2987 = vset.pattern.permute.xlu2 %v3183_v36 }
  0xca   :  { %231 = vperm.xlu2 %2987, %v3335_v23  }
  0xd0   :  { %2986 = vset.pattern.permute.xlu1 %v3183_v36 }
  0xd1   :  { %228 = vperm.xlu1 %2986, %v3331_v21   ;;  %240 = vperm.xlu0 %2985, %v3344_v29  }
  0xd2   :  { %237 = vperm.xlu2 %2987, %v3341_v27  }
  0xd9   :  { %234 = vperm.xlu1 %2986, %v3338_v25   ;;  %2988 = vset.pattern.permute.xlu0 %v3184_v37 }
  0xda   :  { %203 = vperm.xlu0 %2988, %v3349_v32   ;;  %246 = vperm.xlu2 %2987, %v3354_v35  }
  0xe1   :  { %243 = vperm.xlu1 %2986, %v3347_v31  }
 0x102   :  { %v431_v38 = vpop.permute.xlu0 %430 }
 0x103   :  { %v453_v48 = vperm.slane %v431_v38, %v3368_v44 }
 0x10a   :  { %v443_v39 = vpop.permute.xlu2 %442  ;;  %v434_v42 = vpop.permute.xlu0 %433 }
 0x10b   :  { %v454_v46 = vperm.slane %v434_v42, %v3368_v44  ;;  %v457_v56 = vperm.slane %v443_v39, %v3368_v44 }
 0x10d   :  { %v461_v50 = vsel %vm258_vm2, %v454_v46, %v453_v48 }
 0x112   :  { %v437_v40 = vpop.permute.xlu1 %436  ;;  %v446_v43 = vpop.permute.xlu2 %445 }
 0x113   :  { %v455_v47 = vperm.slane %v437_v40, %v3368_v44  ;;  %v458_v60 = vperm.slane %v446_v43, %v3368_v44 }
 0x115   :  { %v462_v52 = vsel %vm260_vm3, %v455_v47, %v461_v50 }
 0x11a   :  { %v440_v45 = vpop.permute.xlu1 %439 }
 0x11b   :  { %v456_v49 = vperm.slane %v440_v45, %v3368_v44  ;;  %v425_v53 = vpop.permute.xlu2 %424 }
 0x11c   :  { %v428_v61 = vadd.f32 %v427_v57, %v425_v53 }
 0x11d   :  { %v463_v54 = vsel %vm262_vm4, %v456_v49, %v462_v52  ;;  %v206_v52 = vperm.slane %v198_v51, 0 }
 0x11e   :  { %v464_v58 = vsel %vm264_vm5, %v457_v56, %v463_v54 }
 0x11f   :  { %v465_v0 = vsel %vm266_vm6, %v458_v60, %v464_v58 }
 0x124   :  { %v232_v7 = vpop.permute.xlu2 %231 }
 0x125   :  { %v252_v39 = vperm.slane %v232_v7, %v3368_v44 }
 0x12c   :  { %v238_v28 = vpop.permute.xlu2 %237 }
 0x12d   :  { %v254_v45 = vperm.slane %v238_v28, %v3368_v44 }
 0x132   :  { %v449_v55 = vpop.permute.xlu0 %448 }
 0x133   :  { %v459_v59 = vperm.slane %v449_v55, %v3368_v44 }
 0x134   :  { %v247_v46 = vpop.permute.xlu2 %246 }
 0x135   :  { %v466_v4 = vsel %vm268_vm7, %v459_v59, %v465_v0  ;;  %v257_v54 = vperm.slane %v247_v46, %v3368_v44 }
 0x13a   :  { %v452_v62 = vpop.permute.xlu1 %451 }
 0x13b   :  { %v460_v1 = vperm.slane %v452_v62, %v3368_v44  ;;  %v226_v9 = vpop.permute.xlu0 %225 }
 0x13c   :  { %v250_v30 = vperm.slane %v226_v9, %v3368_v44 }
 0x13d   :  { %v467_v5 = vsel %vm270_vm8, %v460_v1, %v466_v4 }
 0x13e   :  { %v469_v8 = vadd.f32 %v467_v5, %v428_v61 }
 0x140   :  { %vm470_vm10 = vcmp.ge.f32.partialorder %v469_v8, 0.0  ;;  %v471_v17 = vmul.f32 0.2, %v469_v8 }
 0x142   :  { %v472_v19 = vsel %vm470_vm10, %v469_v8, %v471_v17 }
 0x143   :  { %v229_v20 = vpop.permute.xlu1 %228  ;;  %v473_v22 = vadd.f32 %v472_v19, %v3388_v16  ;;  %v241_v34 = vpop.permute.xlu0 %240  ;;  %v3412_v19 = vshrl.u32 %v248_v41, 7 }
 0x144   :  { %v251_v26 = vperm.slane %v229_v20, %v3368_v44  ;;  %v255_v48 = vperm.slane %v241_v34, %v3368_v44 }
 0x145   :  { %v474_v24 = vsel %vm278_vm11, %v473_v22, -inf  ;;  %2989 = vset.pattern.permute.xlu1 %v3412_v19  ;;  %2991 = vset.pattern.permute.xlu0 %v3412_v19 }
 0x146   :  { %475 = vmax.xlane.f32.xlu1 %v474_v24  ;;  %v259_v36 = vsel %vm258_vm2, %v251_v26, %v250_v30  ;;  %2990 = vset.pattern.permute.xlu2 %v3412_v19 }
 0x147   :  { %v261_v42 = vsel %vm260_vm3, %v252_v39, %v259_v36 }
 0x14b   :  { %v235_v38 = vpop.permute.xlu1 %234 }
 0x14c   :  { %v253_v40 = vperm.slane %v235_v38, %v3368_v44  ;;  %v204_v49 = vpop.permute.xlu0 %203 }
 0x14d   :  { %v207_v56 = vadd.f32 %v206_v52, %v204_v49 }
 0x14e   :  { %v263_v43 = vsel %vm262_vm4, %v253_v40, %v261_v42 }
 0x14f   :  { %v265_v47 = vsel %vm264_vm5, %v254_v45, %v263_v43 }
 0x150   :  { %v267_v55 = vsel %vm266_vm6, %v255_v48, %v265_v47 }
 0x153   :  { %v244_v50 = vpop.permute.xlu1 %243 }
 0x154   :  { %v256_v53 = vperm.slane %v244_v50, %v3368_v44 }
 0x156   :  { %v269_v57 = vsel %vm268_vm7, %v256_v53, %v267_v55 }
 0x157   :  { %v271_v58 = vsel %vm270_vm8, %v257_v54, %v269_v57 }
 0x158   :  { %v273_v59 = vadd.f32 %v271_v58, %v207_v56 }
 0x15a   :  { %vm274_vm12 = vcmp.ge.f32.partialorder %v273_v59, 0.0  ;;  %v275_v60 = vmul.f32 0.2, %v273_v59 }
 0x15c   :  { %v276_v61 = vsel %vm274_vm12, %v273_v59, %v275_v60 }
 0x15d   :  { %v277_v62 = vadd.f32 %v276_v61, %v3388_v16 }
 0x15f   :  { %v279_v63 = vsel %vm278_vm11, %v277_v62, -inf }
 0x160   :  { %280 = vmax.xlane.f32.xlu2 %v279_v63 }
 0x1b9   :  { %v476_v51 = vpop.xlane.xlu1 %475 }
 0x1ba   :  { %v477_v0 = vsub.f32 %v473_v22, %v476_v51 }
 0x1bc   :  { %v478_v1 = vmul.f32 1.442695, %v477_v0 }
 0x1be   :  { %3042 = vpow2.f32 %v478_v1 }
 0x1c4   :  { %v3043_v4 = vpop.eup %3042 }
 0x1c5   :  { %v480_v5 = vsel %vm278_vm11, %v3043_v4, 0.0 }
 0x1c6   :  { %481 = vadd.xlane.f32.xlu0 %v480_v5 }
 0x1d3   :  { %v281_v7 = vpop.xlane.xlu2 %280 }
 0x1d4   :  { %v282_v8 = vsub.f32 %v277_v62, %v281_v7 }
 0x1d6   :  { %v283_v9 = vmul.f32 1.442695, %v282_v8 }
 0x1d8   :  { %3044 = vpow2.f32 %v283_v9  ;;  %v3186_v9 = vmov 3  }
 0x1de   :  { %v3045_v15 = vpop.eup %3044 }
 0x1df   :  { %v285_v17 = vsel %vm278_vm11, %v3045_v15, 0.0 }
 0x1e0   :  { %286 = vadd.xlane.f32.xlu2 %v285_v17  ;;  %v3188_v17 = vmov 2  }
 0x239   :  { %v482_v20 = vpop.xlane.xlu0 %481 }
 0x23a   :  { %3046 = vrcp.f32 %v482_v20  ;;  %v494_v28 = vand.u32 2147483648, %v482_v20  ;;  %v492_v34 = vand.u32 2147483647, %v482_v20  ;;  %vm488_vm14 = vweird.f32 %v482_v20 }
 0x23c   :  { %v495_v41 = vor.u32 1.1754944e-38, %v494_v28  ;;  %vm493_vm9 = vcmp.eq.f32.partialorder %v492_v34, 8.507059e+37 }
 0x240   :  { %v3047_v22 = vpop.eup %3046 }
 0x241   :  { %v484_v24 = vmul.f32 %v3047_v22, %v482_v20  ;;  %vm489_vm13 = vweird.f32 %v3047_v22 }
 0x242   :  { %vm490_vm15 = vmor %vm488_vm14, %vm489_vm13 }
 0x243   :  { %v485_v26 = vsub.f32 1.0, %v484_v24 }
 0x245   :  { %v486_v30 = vmul.f32 %v3047_v22, %v485_v26 }
 0x247   :  { %v487_v36 = vadd.f32 %v3047_v22, %v486_v30 }
 0x249   :  { %v491_v38 = vsel %vm490_vm15, %v3047_v22, %v487_v36 }
 0x24a   :  { %v496_v39 = vsel %vm493_vm9, %v495_v41, %v491_v38 }
 0x24b   :  { %v497_v40 = vmul.f32 %v3043_v4, %v496_v39 }
 0x24d   :  { %v512_v42 = vperm.slane %v497_v40, 2  ;;  %v498_v43 = vperm.slane %v497_v40, 0  ;;  %v505_v45 = vperm.slane %v497_v40, 1  ;;  %v519_v47 = vperm.slane %v497_v40, 3 }
 0x24e   :  { %v526_v48 = vperm.slane %v497_v40, 4  ;;  %v533_v53 = vperm.slane %v497_v40, 5  ;;  %v540_v55 = vperm.slane %v497_v40, 6  ;;  %v547_v63 = vperm.slane %v497_v40, 7 }
 0x24f   :  { %517 = vperm.xlu0 %2991, %v512_v42   ;;  %503 = vperm.xlu1 %2989, %v498_v43  }
 0x250   :  { %510 = vperm.xlu2 %2990, %v505_v45  }
 0x253   :  { %v287_v46 = vpop.xlane.xlu2 %286 }
 0x254   :  { %3048 = vrcp.f32 %v287_v46  ;;  %v299_v54 = vand.u32 2147483648, %v287_v46  ;;  %v297_v57 = vand.u32 2147483647, %v287_v46  ;;  %vm293_vm12 = vweird.f32 %v287_v46 }
 0x256   :  { %v300_v59 = vor.u32 1.1754944e-38, %v299_v54  ;;  %vm298_vm14 = vcmp.eq.f32.partialorder %v297_v57, 8.507059e+37 }
 0x257   :  { %524 = vperm.xlu1 %2989, %v519_v47  }
 0x258   :  { %531 = vperm.xlu2 %2990, %v526_v48  }
 0x25a   :  { %v3049_v49 = vpop.eup %3048 }
 0x25b   :  { %v289_v50 = vmul.f32 %v3049_v49, %v287_v46  ;;  %vm294_vm10 = vweird.f32 %v3049_v49 }
 0x25c   :  { %vm295_vm13 = vmor %vm293_vm12, %vm294_vm10 }
 0x25d   :  { %v290_v52 = vsub.f32 1.0, %v289_v50 }
 0x25f   :  { %v291_v56 = vmul.f32 %v3049_v49, %v290_v52  ;;  %538 = vperm.xlu1 %2989, %v533_v53  }
 0x260   :  { %545 = vperm.xlu2 %2990, %v540_v55  }
 0x261   :  { %v292_v58 = vadd.f32 %v3049_v49, %v291_v56 }
 0x263   :  { %v296_v60 = vsel %vm295_vm13, %v3049_v49, %v292_v58 }
 0x264   :  { %v301_v61 = vsel %vm298_vm14, %v300_v59, %v296_v60 }
 0x265   :  { %v3417_v62 = vmul.f32 %v3045_v15, %v301_v61 }
 0x267   :  { %552 = vperm.xlu1 %2989, %v547_v63   ;;  %v324_v51 = vperm.slane %v3417_v62, 3  ;;  %v303_v0 = vperm.slane %v3417_v62, 0  ;;  %v310_v1 = vperm.slane %v3417_v62, 1  ;;  %v345_v4 = vperm.slane %v3417_v62, 6 }
 0x268   :  { %v317_v5 = vperm.slane %v3417_v62, 2  ;;  %v331_v7 = vperm.slane %v3417_v62, 4  ;;  %v338_v8 = vperm.slane %v3417_v62, 5  ;;  %v352_v15 = vperm.slane %v3417_v62, 7 }
 0x269   :  { %329 = vperm.xlu0 %2991, %v324_v51   ;;  %308 = vperm.xlu2 %2990, %v303_v0  }
 0x26f   :  { %315 = vperm.xlu1 %2989, %v310_v1  }
 0x271   :  { %350 = vperm.xlu0 %2991, %v345_v4   ;;  %322 = vperm.xlu2 %2990, %v317_v5  }
 0x277   :  { %336 = vperm.xlu1 %2989, %v331_v7  }
 0x279   :  { %619 = vrot.lane.b32.xlu0 %v497_v40, %s3179_s18  ;;  %343 = vperm.xlu2 %2990, %v338_v8  }
 0x27a   :  { %2993 = vset.pattern.permute.xlu0 %v3186_v9 }
 0x27f   :  { %357 = vperm.xlu1 %2989, %v352_v15  }
 0x281   :  { %977 = vperm.xlu0 %2993, %v3331_v21   ;;  %658 = vrot.lane.b32.xlu2 %v3349_v32, %s3187_s1 }
 0x282   :  { %2992 = vset.pattern.permute.xlu2 %v3186_v9 }
 0x287   :  { %2994 = vset.pattern.permute.xlu1 %v3186_v9 }
 0x289   :  { %992 = vperm.xlu0 %2993, %v3347_v31   ;;  %974 = vperm.xlu2 %2992, %v3325_v18  }
 0x291   :  { %2996 = vset.pattern.permute.xlu0 %v3188_v17  ;;  %983 = vperm.xlu2 %2992, %v3338_v25  }
 0x292   :  { %779 = vperm.xlu0 %2996, %v3325_v18  }
 0x299   :  { %989 = vperm.xlu2 %2992, %v3344_v29  }
 0x29a   :  { %794 = vperm.xlu0 %2996, %v3344_v29  }
 0x2a1   :  { %2995 = vset.pattern.permute.xlu2 %v3182_v33 }
 0x2a2   :  { %2999 = vset.pattern.permute.xlu0 %v3184_v37 }
 0x2aa   :  { %v511_v20 = vpop.permute.xlu2 %510 }
 0x2ab   :  { %v555_v26 = vmul.f32 %v511_v20, %v3271_v3 }
 0x2ad   :  { %v569_v41 = vsel %vm83_vm0, %v555_v26, 0.0 }
 0x2ae   :  { %v570_v43 = vrot.slane %v569_v41, 4 }
 0x2b0   :  { %v571_v49 = vadd.f32 %v570_v43, %v569_v41 }
 0x2b2   :  { %v532_v22 = vpop.permute.xlu2 %531  ;;  %v572_v59 = vrot.slane %v571_v49, 2 }
 0x2b3   :  { %v558_v45 = vmul.f32 %v532_v22, %v3297_v11 }
 0x2b4   :  { %v573_v5 = vadd.f32 %v572_v59, %v571_v49 }
 0x2b5   :  { %v590_v52 = vsel %vm83_vm0, %v558_v45, 0.0 }
 0x2b6   :  { %v591_v60 = vrot.slane %v590_v52, 4 }
 0x2b8   :  { %v592_v7 = vadd.f32 %v591_v60, %v590_v52 }
 0x2ba   :  { %v546_v24 = vpop.permute.xlu2 %545 }
 0x2bb   :  { %v560_v53 = vmul.f32 %v546_v24, %v3311_v13 }
 0x2bd   :  { %v604_v61 = vsel %vm83_vm0, %v560_v53, 0.0 }
 0x2be   :  { %v605_v8 = vrot.slane %v604_v61, 4 }
 0x2c0   :  { %v606_v41 = vadd.f32 %v605_v8, %v604_v61 }
 0x2c1   :  { %v518_v28 = vpop.permute.xlu0 %517  ;;  %v504_v30 = vpop.permute.xlu1 %503 }
 0x2c2   :  { %v556_v34 = vmul.f32 %v518_v28, %v3278_v6  ;;  %v554_v36 = vmul.f32 %v504_v30, %v3264_v2 }
 0x2c3   :  { %v309_v38 = vpop.permute.xlu2 %308 }
 0x2c4   :  { %v562_v39 = vsel %vm83_vm0, %v554_v36, 0.0  ;;  %v576_v40 = vsel %vm83_vm0, %v556_v34, 0.0  ;;  %v359_v24 = vmul.f32 %v309_v38, %v3264_v2  ;;  %v574_v34 = vrot.slane %v573_v5, 1 }
 0x2c5   :  { %v563_v42 = vrot.slane %v562_v39, 4  ;;  %v577_v46 = vrot.slane %v576_v40, 4  ;;  %v593_v36 = vrot.slane %v592_v7, 2  ;;  %v607_v2 = vrot.slane %v606_v41, 2 }
 0x2c6   :  { %v367_v45 = vsel %vm83_vm0, %v359_v24, 0.0  ;;  %v575_v49 = vadd.f32 %v574_v34, %v573_v5 }
 0x2c7   :  { %v564_v47 = vadd.f32 %v563_v42, %v562_v39  ;;  %v578_v55 = vadd.f32 %v577_v46, %v576_v40  ;;  %v368_v52 = vrot.slane %v367_v45, 4 }
 0x2c9   :  { %v525_v48 = vpop.permute.xlu1 %524  ;;  %v565_v56 = vrot.slane %v564_v47, 2  ;;  %v579_v51 = vrot.slane %v578_v55, 2 }
 0x2ca   :  { %v557_v50 = vmul.f32 %v525_v48, %v3290_v10 }
 0x2cb   :  { %v323_v54 = vpop.permute.xlu2 %322  ;;  %v566_v0 = vadd.f32 %v565_v56, %v564_v47  ;;  %v580_v20 = vadd.f32 %v579_v51, %v578_v55 }
 0x2cc   :  { %v583_v57 = vsel %vm83_vm0, %v557_v50, 0.0  ;;  %v361_v39 = vmul.f32 %v323_v54, %v3278_v6  ;;  %v594_v50 = vadd.f32 %v593_v36, %v592_v7 }
 0x2cd   :  { %v584_v58 = vrot.slane %v583_v57, 4  ;;  %v567_v22 = vrot.slane %v566_v0, 1  ;;  %v581_v42 = vrot.slane %v580_v20, 1 }
 0x2ce   :  { %v381_v53 = vsel %vm83_vm0, %v361_v39, 0.0 }
 0x2cf   :  { %v585_v63 = vadd.f32 %v584_v58, %v583_v57  ;;  %v568_v43 = vadd.f32 %v567_v22, %v566_v0  ;;  %v582_v6 = vadd.f32 %v581_v42, %v580_v20  ;;  %v595_v0 = vrot.slane %v594_v50, 1 }
 0x2d0   :  { %v382_v5 = vrot.slane %v381_v53, 4 }
 0x2d1   :  { %v586_v1 = vrot.slane %v585_v63, 2  ;;  %v539_v4 = vpop.permute.xlu1 %538  ;;  %v647_v54 = vsel %vm258_vm2, %v575_v49, %v568_v43 }
 0x2d2   :  { %v559_v9 = vmul.f32 %v539_v4, %v3304_v12  ;;  %v369_v4 = vadd.f32 %v368_v52, %v367_v45  ;;  %v383_v34 = vadd.f32 %v382_v5, %v381_v53 }
 0x2d3   :  { %v344_v15 = vpop.permute.xlu2 %343  ;;  %v587_v28 = vadd.f32 %v586_v1, %v585_v63  ;;  %v608_v1 = vadd.f32 %v607_v2, %v606_v41 }
 0x2d4   :  { %v597_v26 = vsel %vm83_vm0, %v559_v9, 0.0  ;;  %v364_v63 = vmul.f32 %v344_v15, %v3304_v12  ;;  %v648_v9 = vsel %vm260_vm3, %v582_v6, %v647_v54  ;;  %v596_v12 = vadd.f32 %v595_v0, %v594_v50 }
 0x2d5   :  { %v598_v30 = vrot.slane %v597_v26, 4  ;;  %v588_v46 = vrot.slane %v587_v28, 1  ;;  %v609_v15 = vrot.slane %v608_v1, 1 }
 0x2d7   :  { %v599_v40 = vadd.f32 %v598_v30, %v597_v26  ;;  %v589_v60 = vadd.f32 %v588_v46, %v587_v28  ;;  %v610_v50 = vadd.f32 %v609_v15, %v608_v1 }
 0x2d9   :  { %v600_v47 = vrot.slane %v599_v40, 2  ;;  %v553_v48 = vpop.permute.xlu1 %552  ;;  %v649_v26 = vsel %vm262_vm4, %v589_v60, %v648_v9 }
 0x2da   :  { %v561_v38 = vmul.f32 %v553_v48, %v3318_v14  ;;  %v650_v43 = vsel %vm264_vm5, %v596_v12, %v649_v26 }
 0x2db   :  { %v601_v55 = vadd.f32 %v600_v47, %v599_v40  ;;  %v330_v56 = vpop.permute.xlu0 %329  ;;  %v659_v57 = vpop.permute.xlu2 %658 }
 0x2dc   :  { %v611_v58 = vsel %vm83_vm0, %v561_v38, 0.0  ;;  %v362_v59 = vmul.f32 %v330_v56, %v3290_v10  ;;  %705 = vmatpush.msrb.mxu2 %v659_v57  ;;  %v402_v10 = vsel %vm83_vm0, %v364_v63, 0.0 }
 0x2dd   :  { %v602_v61 = vrot.slane %v601_v55, 1  ;;  %v612_v51 = vrot.slane %v611_v58, 4  ;;  %v403_v39 = vrot.slane %v402_v10, 4 }
 0x2de   :  { %706 = vmatpush.msrb.mxu2 %v3349_v32  ;;  %v388_v8 = vsel %vm83_vm0, %v362_v59, 0.0  ;;  %v370_v32 = vrot.slane %v369_v4, 2 }
 0x2df   :  { %v613_v7 = vadd.f32 %v612_v51, %v611_v58  ;;  %v603_v20 = vadd.f32 %v602_v61, %v601_v55  ;;  %v389_v28 = vrot.slane %v388_v8, 4  ;;  %v404_v55 = vadd.f32 %v403_v39, %v402_v10 }
 0x2e0   :  { %v371_v53 = vadd.f32 %v370_v32, %v369_v4 }
 0x2e1   :  { %v614_v22 = vrot.slane %v613_v7, 2  ;;  %v316_v24 = vpop.permute.xlu1 %315  ;;  %v651_v47 = vsel %vm266_vm6, %v603_v20, %v650_v43  ;;  %v390_v48 = vadd.f32 %v389_v28, %v388_v8  ;;  %v405_v0 = vrot.slane %v404_v55, 2 }
 0x2e2   :  { %v360_v30 = vmul.f32 %v316_v24, %v3271_v3  ;;  %v384_v3 = vrot.slane %v383_v34, 2  ;;  %v652_v56 = vsel %vm268_vm7, %v610_v50, %v651_v47  ;;  %v372_v51 = vrot.slane %v371_v53, 1 }
 0x2e3   :  { %v615_v36 = vadd.f32 %v614_v22, %v613_v7  ;;  %v351_v41 = vpop.permute.xlu0 %350  ;;  %v391_v58 = vrot.slane %v390_v48, 2  ;;  %v406_v24 = vadd.f32 %v405_v0, %v404_v55 }
 0x2e4   :  { %v374_v40 = vsel %vm83_vm0, %v360_v30, 0.0  ;;  %v365_v42 = vmul.f32 %v351_v41, %v3311_v13  ;;  %v385_v60 = vadd.f32 %v384_v3, %v383_v34  ;;  %v373_v22 = vadd.f32 %v372_v51, %v371_v53  ;;  %v662_v3 = vld [vmem:[#allocation5 + $0x8] sm:$0xff]  ;;  %v719_v51 = vld [vmem:[#allocation2 + $0x20] sm:$0xff] }
 0x2e5   :  { %v375_v45 = vrot.slane %v374_v40, 4  ;;  %v616_v46 = vrot.slane %v615_v36, 1  ;;  %v392_v9 = vadd.f32 %v391_v58, %v390_v48  ;;  %v407_v32 = vrot.slane %v406_v24, 1  ;;  %v664_v48 = vld [vmem:[#allocation5 + $0x18] sm:$0xff] }
 0x2e6   :  { %v409_v49 = vsel %vm83_vm0, %v365_v42, 0.0  ;;  %680 = vmatpush.msra.mxu3 %v664_v48 }
 0x2e7   :  { %v376_v2 = vadd.f32 %v375_v45, %v374_v40  ;;  %v410_v38 = vrot.slane %v409_v49, 4  ;;  %v617_v52 = vadd.f32 %v616_v46, %v615_v36  ;;  %v393_v15 = vrot.slane %v392_v9, 1 }
 0x2e8   :  { %v408_v42 = vadd.f32 %v407_v32, %v406_v24 }
 0x2e9   :  { %v377_v57 = vrot.slane %v376_v2, 2  ;;  %v411_v13 = vadd.f32 %v410_v38, %v409_v49  ;;  %v337_v6 = vpop.permute.xlu1 %336  ;;  %v653_v54 = vsel %vm270_vm8, %v617_v52, %v652_v56  ;;  %v394_v39 = vadd.f32 %v393_v15, %v392_v9  ;;  %v663_v49 = vld [vmem:[#allocation5 + $0x10] sm:$0xff]  ;;  %v661_v38 = vld [vmem:[#allocation5] sm:$0xff] }
 0x2ea   :  { %v363_v59 = vmul.f32 %v337_v6, %v3297_v11  ;;  %654 = vrot.lane.b32.xlu1 %v653_v54, %s3189_s7  ;;  %v386_v11 = vrot.slane %v385_v60, 1  ;;  %681 = vmatpush.msra.mxu3 %v663_v49 }
 0x2eb   :  { %v378_v61 = vadd.f32 %v377_v57, %v376_v2  ;;  %v620_v63 = vpop.permute.xlu0 %619  ;;  %v412_v7 = vrot.slane %v411_v13, 2 }
 0x2ec   :  { %v395_v1 = vsel %vm83_vm0, %v363_v59, 0.0  ;;  %v622_v4 = vsel %vm278_vm11, %v3417_v62, %v620_v63  ;;  %v387_v30 = vadd.f32 %v386_v11, %v385_v60  ;;  %682 = vmatpush.msra.mxu3 %v662_v3  ;;  %v721_v63 = vld [vmem:[#allocation2 + $0x30] sm:$0xff]  ;;  %v2934_v11 = vld [vmem:[%s4135_s4 + $0x2] sm:$0x3] }
 0x2ed   :  { %v379_v5 = vrot.slane %v378_v61, 1  ;;  %v396_v8 = vrot.slane %v395_v1, 4  ;;  %2932 = vmatmul.msk.f32.vlgmr.msrb.gmra.mxu2 %vm83_vm0, %v622_v4  ;;  %v413_v26 = vadd.f32 %v412_v7, %v411_v13 }
 0x2ee   :  { %683 = vmatpush.msra.mxu3 %v661_v38 }
 0x2ef   :  { %v380_v20 = vadd.f32 %v379_v5, %v378_v61  ;;  %v397_v10 = vadd.f32 %v396_v8, %v395_v1  ;;  %v414_v34 = vrot.slane %v413_v26, 1  ;;  %v722_v61 = vld [vmem:[#allocation2 + $0x38] sm:$0xff]  ;;  %v3037_v5 = vld [vmem:[%s4139_s8] ss:$0 sm:$0xff] }
 0x2f0   :  { %738 = vmatpush.msrb.mxu1 %v722_v61 }
 0x2f1   :  { %v398_v12 = vrot.slane %v397_v10, 2  ;;  %v631_v28 = vsel %vm258_vm2, %v380_v20, %v373_v22  ;;  %v415_v45 = vadd.f32 %v414_v34, %v413_v26  ;;  %v358_v2 = vpop.permute.xlu1 %357 }
 0x2f2   :  { %980 = vperm.xlu1 %2994, %v3335_v23   ;;  %v632_v41 = vsel %vm260_vm3, %v387_v30, %v631_v28  ;;  %v366_v52 = vmul.f32 %v358_v2, %v3318_v14  ;;  %739 = vmatpush.msrb.mxu1 %v721_v63  ;;  %v720_v14 = vld [vmem:[#allocation2 + $0x28] sm:$0xff] }
 0x2f3   :  { %v399_v62 = vadd.f32 %v398_v12, %v397_v10  ;;  %v633_v43 = vsel %vm262_vm4, %v394_v39, %v632_v41  ;;  %v975_v10 = vpop.permute.xlu2 %974  ;;  %v978_v12 = vpop.permute.xlu0 %977 }
 0x2f4   :  { %v416_v53 = vsel %vm83_vm0, %v366_v52, 0.0  ;;  %740 = vmatpush.msrb.mxu1 %v720_v14  ;;  %v998_v15 = vperm.slane %v978_v12, %v3368_v44 }
 0x2f5   :  { %v400_v36 = vrot.slane %v399_v62, 1  ;;  %v417_v55 = vrot.slane %v416_v53, 4 }
 0x2f6   :  { %741 = vmatpush.msrb.mxu1 %v719_v51 }
 0x2f7   :  { %v401_v40 = vadd.f32 %v400_v36, %v399_v62  ;;  %v418_v56 = vadd.f32 %v417_v55, %v416_v53 }
 0x2f9   :  { %v634_v46 = vsel %vm264_vm5, %v401_v40, %v633_v43  ;;  %v419_v57 = vrot.slane %v418_v56, 2 }
 0x2fa   :  { %986 = vperm.xlu1 %2994, %v3341_v27   ;;  %v635_v47 = vsel %vm266_vm6, %v408_v42, %v634_v46 }
 0x2fb   :  { %v636_v50 = vsel %vm268_vm7, %v415_v45, %v635_v47  ;;  %v420_v13 = vadd.f32 %v419_v57, %v418_v56  ;;  %v984_v24 = vpop.permute.xlu2 %983  ;;  %v993_v45 = vpop.permute.xlu0 %992 }
 0x2fc   :  { %v1000_v34 = vperm.slane %v984_v24, %v3368_v44  ;;  %v1003_v49 = vperm.slane %v993_v45, %v3368_v44 }
 0x2fd   :  { %v421_v6 = vrot.slane %v420_v13, 1 }
 0x2ff   :  { %v422_v54 = vadd.f32 %v421_v6, %v420_v13 }
 0x301   :  { %v637_v59 = vsel %vm270_vm8, %v422_v54, %v636_v50 }
 0x302   :  { %995 = vperm.xlu1 %2994, %v3354_v35  }
 0x303   :  { %v990_v36 = vpop.permute.xlu2 %989 }
 0x304   :  { %v1002_v43 = vperm.slane %v990_v36, %v3368_v44  ;;  %v780_v56 = vpop.permute.xlu0 %779 }
 0x305   :  { %v802_v61 = vperm.slane %v780_v56, %v3368_v44 }
 0x30a   :  { %2997 = vset.pattern.permute.xlu1 %v3188_v17 }
 0x30b   :  { %782 = vperm.xlu1 %2997, %v3331_v21  }
 0x30c   :  { %v795_v63 = vpop.permute.xlu0 %794 }
 0x313   :  { %788 = vperm.xlu1 %2997, %v3338_v25  }
 0x31b   :  { %797 = vperm.xlu1 %2997, %v3347_v31  }
 0x323   :  { %3001 = vset.pattern.permute.xlu1 %v3412_v19 }
 0x35c   :  { %v655_v58 = vpop.permute.xlu1 %654 }
 0x35d   :  { %v657_v60 = vsel %vm83_vm0, %v637_v59, %v655_v58 }
 0x35e   :  { %2931 = vmatmul.msk.f32.vlgmr.msra.gmra.mxu3 %vm153_vm1, %v657_v60 }
 0x364   :  { %v981_v22 = vpop.permute.xlu1 %980 }
 0x365   :  { %v999_v28 = vperm.slane %v981_v22, %v3368_v44 }
 0x36c   :  { %v987_v26 = vpop.permute.xlu1 %986 }
 0x36d   :  { %v1001_v32 = vperm.slane %v987_v26, %v3368_v44 }
 0x370   :  { %v708_v0 = vpop.f32.mrf.mxu2 }
 0x374   :  { %v996_v41 = vpop.permute.xlu1 %995 }
 0x375   :  { %v1004_v48 = vperm.slane %v996_v41, %v3368_v44 }
 0x37d   :  { %v783_v38 = vpop.permute.xlu1 %782 }
 0x37e   :  { %v803_v58 = vperm.slane %v783_v38, %v3368_v44 }
 0x380   :  { %v810_v14 = vsel %vm258_vm2, %v803_v58, %v802_v61 }
 0x385   :  { %v789_v59 = vpop.permute.xlu1 %788 }
 0x3e1   :  { %v685_v1 = vpop.f32.mrf.mxu3 }
 0x3e2   :  { %v709_v4 = vadd.f32 %v708_v0, %v685_v1  ;;  %v805_v1 = vperm.slane %v789_v59, %v3368_v44 }
 0x3e4   :  { %v711_v7 = vmul.f32 0.5, %v709_v4 }
 0x3e6   :  { %v716_v8 = vadd.f32 %v3037_v5, %v711_v7 }
 0x3e8   :  { %v717_v9 = vmax.f32 %v716_v8, 0.0  ;;  %v807_v8 = vperm.slane %v795_v63, %v3368_v44 }
 0x3ea   :  { %2933 = vmatmul.msk.f32.vlgmr.msrb.gmra.mxu1 %vm153_vm1, %v717_v9  ;;  %2935 = vmatpush.xpose.msk.msrb.mxu3 %vm153_vm1, %v717_v9  ;;  %v798_v9 = vpop.permute.xlu1 %797 }
 0x3eb   :  { %v808_v22 = vperm.slane %v798_v9, %v3368_v44 }
 0x3ed   :  { %2936 = vmatmul.msk.f32.vlgmr.msrb.gmra.mxu3 %vm153_vm1, %v2934_v11 }
 0x467   :  { %v3510_v20 = vpop.f32.mrf.mxu1 }
 0x468   :  { %773 = vperm.xlu0 %2999, %v3510_v20   ;;  %968 = vperm.xlu2 %2995, %v3510_v20  }
 0x470   :  { %2998 = vset.pattern.permute.xlu2 %v3188_v17  ;;  %3002 = vset.pattern.permute.xlu0 %v3412_v19  ;;  %v997_v17 = vperm.slane %v975_v10, %v3368_v44  ;;  %v768_v40 = vpop.f32.mrf.mxu3 }
 0x471   :  { %785 = vperm.xlu2 %2998, %v3335_v23   ;;  %v971_v46 = vperm.slane %v768_v40, 1  ;;  %v776_v24 = vperm.slane %v768_v40, 0 }
 0x472   :  { %v1005_v30 = vsel %vm258_vm2, %v998_v15, %v997_v17 }
 0x473   :  { %v1006_v62 = vsel %vm260_vm3, %v999_v28, %v1005_v30 }
 0x474   :  { %v1007_v39 = vsel %vm262_vm4, %v1000_v34, %v1006_v62 }
 0x475   :  { %v1008_v42 = vsel %vm264_vm5, %v1001_v32, %v1007_v39 }
 0x476   :  { %v1009_v47 = vsel %vm266_vm6, %v1002_v43, %v1008_v42 }
 0x477   :  { %v1010_v3 = vsel %vm268_vm7, %v1003_v49, %v1009_v47 }
 0x478   :  { %v1011_v52 = vsel %vm270_vm8, %v1004_v48, %v1010_v3 }
 0x479   :  { %791 = vperm.xlu2 %2998, %v3341_v27  }
 0x481   :  { %800 = vperm.xlu2 %2998, %v3354_v35  }
 0x489   :  { %3000 = vset.pattern.permute.xlu2 %v3412_v19 }
 0x4c2   :  { %v969_v50 = vpop.permute.xlu2 %968 }
 0x4c3   :  { %v972_v2 = vadd.f32 %v971_v46, %v969_v50 }
 0x4c5   :  { %v1013_v53 = vadd.f32 %v1011_v52, %v972_v2 }
 0x4c7   :  { %vm1014_vm15 = vcmp.ge.f32.partialorder %v1013_v53, 0.0  ;;  %v1015_v55 = vmul.f32 0.2, %v1013_v53 }
 0x4c9   :  { %v1016_v57 = vsel %vm1014_vm15, %v1013_v53, %v1015_v55 }
 0x4ca   :  { %v1017_v13 = vadd.f32 %v1016_v57, %v3388_v16 }
 0x4cb   :  { %v786_v6 = vpop.permute.xlu2 %785 }
 0x4cc   :  { %v1018_v54 = vsel %vm278_vm11, %v1017_v13, -inf  ;;  %v804_v60 = vperm.slane %v786_v6, %v3368_v44 }
 0x4cd   :  { %1019 = vmax.xlane.f32.xlu1 %v1018_v54 }
 0x4ce   :  { %v811_v51 = vsel %vm260_vm3, %v804_v60, %v810_v14 }
 0x4cf   :  { %v812_v5 = vsel %vm262_vm4, %v805_v1, %v811_v51 }
 0x4d3   :  { %v792_v0 = vpop.permute.xlu2 %791 }
 0x4d4   :  { %v806_v4 = vperm.slane %v792_v0, %v3368_v44 }
 0x4d6   :  { %v813_v7 = vsel %vm264_vm5, %v806_v4, %v812_v5 }
 0x4d7   :  { %v814_v11 = vsel %vm266_vm6, %v807_v8, %v813_v7 }
 0x4d8   :  { %v815_v28 = vsel %vm268_vm7, %v808_v22, %v814_v11 }
 0x4da   :  { %v774_v10 = vpop.permute.xlu0 %773 }
 0x4db   :  { %v801_v26 = vpop.permute.xlu2 %800  ;;  %v777_v15 = vadd.f32 %v776_v24, %v774_v10 }
 0x4dc   :  { %v809_v12 = vperm.slane %v801_v26, %v3368_v44 }
 0x4de   :  { %v816_v17 = vsel %vm270_vm8, %v809_v12, %v815_v28 }
 0x4df   :  { %v818_v30 = vadd.f32 %v816_v17, %v777_v15 }
 0x4e1   :  { %vm819_vm9 = vcmp.ge.f32.partialorder %v818_v30, 0.0  ;;  %v820_v62 = vmul.f32 0.2, %v818_v30 }
 0x4e3   :  { %v821_v32 = vsel %vm819_vm9, %v818_v30, %v820_v62 }
 0x4e4   :  { %v822_v34 = vadd.f32 %v821_v32, %v3388_v16 }
 0x4e6   :  { %v823_v36 = vsel %vm278_vm11, %v822_v34, -inf }
 0x4e7   :  { %824 = vmax.xlane.f32.xlu2 %v823_v36  ;;  %v3190_v36 = vmov 5  }
 0x540   :  { %v1020_v41 = vpop.xlane.xlu1 %1019 }
 0x541   :  { %v1021_v39 = vsub.f32 %v1017_v13, %v1020_v41 }
 0x543   :  { %v1022_v40 = vmul.f32 1.442695, %v1021_v39  ;;  %v3191_v39 = vmov 4  }
 0x545   :  { %3050 = vpow2.f32 %v1022_v40 }
 0x54b   :  { %v3051_v42 = vpop.eup %3050 }
 0x54c   :  { %v1024_v43 = vsel %vm278_vm11, %v3051_v42, 0.0 }
 0x54d   :  { %1025 = vadd.xlane.f32.xlu0 %v1024_v43 }
 0x55a   :  { %v825_v45 = vpop.xlane.xlu2 %824 }
 0x55b   :  { %v826_v46 = vsub.f32 %v822_v34, %v825_v45  ;;  %v3586_v45 = vld [vmem:[%s4133_s2] sm:$0xff] }
 0x55d   :  { %v827_v47 = vmul.f32 1.442695, %v826_v46 }
 0x55f   :  { %3052 = vpow2.f32 %v827_v47 }
 0x565   :  { %v3053_v48 = vpop.eup %3052 }
 0x566   :  { %v829_v49 = vsel %vm278_vm11, %v3053_v48, 0.0 }
 0x567   :  { %830 = vadd.xlane.f32.xlu1 %v829_v49 }
 0x5c0   :  { %v1026_v50 = vpop.xlane.xlu0 %1025 }
 0x5c1   :  { %3054 = vrcp.f32 %v1026_v50  ;;  %v1038_v52 = vand.u32 2147483648, %v1026_v50  ;;  %v1036_v55 = vand.u32 2147483647, %v1026_v50  ;;  %vm1032_vm12 = vweird.f32 %v1026_v50 }
 0x5c3   :  { %v1039_v57 = vor.u32 1.1754944e-38, %v1038_v52  ;;  %vm1037_vm14 = vcmp.eq.f32.partialorder %v1036_v55, 8.507059e+37  ;;  %v3608_v55 = vld [vmem:[%s4133_s2 + $0x8] sm:$0xff] }
 0x5c7   :  { %v3055_v3 = vpop.eup %3054 }
 0x5c8   :  { %v1028_v2 = vmul.f32 %v3055_v3, %v1026_v50  ;;  %vm1033_vm10 = vweird.f32 %v3055_v3 }
 0x5c9   :  { %vm1034_vm13 = vmor %vm1032_vm12, %vm1033_vm10 }
 0x5ca   :  { %v1029_v38 = vsub.f32 1.0, %v1028_v2 }
 0x5cc   :  { %v1030_v53 = vmul.f32 %v3055_v3, %v1029_v38  ;;  %v3601_v38 = vld [vmem:[%s4133_s2 + $0x10] sm:$0xff] }
 0x5ce   :  { %v1031_v56 = vadd.f32 %v3055_v3, %v1030_v53 }
 0x5d0   :  { %v1035_v13 = vsel %vm1034_vm13, %v3055_v3, %v1031_v56 }
 0x5d1   :  { %v1040_v6 = vsel %vm1037_vm14, %v1039_v57, %v1035_v13  ;;  %v3615_v13 = vld [vmem:[%s4133_s2 + $0x28] sm:$0xff] }
 0x5d2   :  { %v1041_v54 = vmul.f32 %v3051_v42, %v1040_v6 }
 0x5d4   :  { %v1056_v58 = vperm.slane %v1041_v54, 2  ;;  %v1042_v59 = vperm.slane %v1041_v54, 0  ;;  %v1049_v60 = vperm.slane %v1041_v54, 1  ;;  %v1063_v63 = vperm.slane %v1041_v54, 3 }
 0x5d5   :  { %v1070_v14 = vperm.slane %v1041_v54, 4  ;;  %v1077_v4 = vperm.slane %v1041_v54, 5  ;;  %v1084_v7 = vperm.slane %v1041_v54, 6  ;;  %v1091_v12 = vperm.slane %v1041_v54, 7 }
 0x5d6   :  { %1061 = vperm.xlu0 %3002, %v1056_v58   ;;  %1047 = vperm.xlu2 %3000, %v1042_v59  }
 0x5d7   :  { %1054 = vperm.xlu1 %3001, %v1049_v60  }
 0x5da   :  { %v831_v61 = vpop.xlane.xlu1 %830 }
 0x5db   :  { %3056 = vrcp.f32 %v831_v61  ;;  %v843_v5 = vand.u32 2147483648, %v831_v61  ;;  %v841_v9 = vand.u32 2147483647, %v831_v61  ;;  %vm837_vm9 = vweird.f32 %v831_v61 }
 0x5dd   :  { %v844_v10 = vor.u32 1.1754944e-38, %v843_v5  ;;  %vm842_vm12 = vcmp.eq.f32.partialorder %v841_v9, 8.507059e+37 }
 0x5de   :  { %1068 = vperm.xlu2 %3000, %v1063_v63  }
 0x5df   :  { %1075 = vperm.xlu1 %3001, %v1070_v14  }
 0x5e1   :  { %v3057_v51 = vpop.eup %3056 }
 0x5e2   :  { %v833_v0 = vmul.f32 %v3057_v51, %v831_v61  ;;  %vm838_vm15 = vweird.f32 %v3057_v51  ;;  %v3623_v61 = vld [vmem:[%s4133_s2 + $0x38] sm:$0xff] }
 0x5e3   :  { %vm839_vm10 = vmor %vm837_vm9, %vm838_vm15 }
 0x5e4   :  { %v834_v1 = vsub.f32 1.0, %v833_v0 }
 0x5e6   :  { %v835_v8 = vmul.f32 %v3057_v51, %v834_v1  ;;  %1082 = vperm.xlu2 %3000, %v1077_v4  }
 0x5e7   :  { %1089 = vperm.xlu1 %3001, %v1084_v7  }
 0x5e8   :  { %v836_v11 = vadd.f32 %v3057_v51, %v835_v8 }
 0x5ea   :  { %v840_v22 = vsel %vm839_vm10, %v3057_v51, %v836_v11 }
 0x5eb   :  { %v845_v24 = vsel %vm842_vm12, %v844_v10, %v840_v22 }
 0x5ec   :  { %v3556_v26 = vmul.f32 %v3053_v48, %v845_v24  ;;  %v3594_v48 = vld [vmem:[%s4133_s2 + $0x18] sm:$0xff] }
 0x5ee   :  { %1096 = vperm.xlu2 %3000, %v1091_v12   ;;  %v861_v15 = vperm.slane %v3556_v26, 2  ;;  %v847_v28 = vperm.slane %v3556_v26, 0  ;;  %v854_v17 = vperm.slane %v3556_v26, 1  ;;  %v882_v30 = vperm.slane %v3556_v26, 5  ;;  %v3631_v12 = vld [vmem:[%s4133_s2 + $0x20] sm:$0xff] }
 0x5ef   :  { %v868_v62 = vperm.slane %v3556_v26, 3  ;;  %v875_v32 = vperm.slane %v3556_v26, 4  ;;  %v889_v34 = vperm.slane %v3556_v26, 6  ;;  %v896_v41 = vperm.slane %v3556_v26, 7 }
 0x5f0   :  { %866 = vperm.xlu0 %3002, %v861_v15   ;;  %852 = vperm.xlu1 %3001, %v847_v28  }
 0x5f6   :  { %859 = vperm.xlu2 %3000, %v854_v17  }
 0x5f8   :  { %887 = vperm.xlu0 %3002, %v882_v30   ;;  %873 = vperm.xlu1 %3001, %v868_v62  }
 0x5fe   :  { %880 = vperm.xlu2 %3000, %v875_v32  }
 0x600   :  { %894 = vperm.xlu1 %3001, %v889_v34   ;;  %3003 = vset.pattern.permute.xlu0 %v3190_v36 }
 0x606   :  { %901 = vperm.xlu2 %3000, %v896_v41  }
 0x608   :  { %1202 = vrot.lane.b32.xlu1 %v3510_v20, %s3187_s1 }
 0x609   :  { %3004 = vset.pattern.permute.xlu1 %v3190_v36 }
 0x60e   :  { %1163 = vrot.lane.b32.xlu2 %v1041_v54, %s3179_s18 }
 0x60f   :  { %3005 = vset.pattern.permute.xlu2 %v3190_v36 }
 0x610   :  { %1523 = vperm.xlu1 %3004, %v3331_v21  }
 0x616   :  { %1526 = vperm.xlu2 %3005, %v3335_v23  }
 0x618   :  { %1529 = vperm.xlu1 %3004, %v3338_v25  }
 0x61e   :  { %1532 = vperm.xlu2 %3005, %v3341_v27  }
 0x620   :  { %1538 = vperm.xlu1 %3004, %v3347_v31  }
 0x626   :  { %1541 = vperm.xlu2 %3005, %v3354_v35  }
 0x628   :  { %3006 = vset.pattern.permute.xlu1 %v3191_v39 }
 0x629   :  { %1325 = vperm.xlu1 %3006, %v3325_v18  }
 0x62e   :  { %3007 = vset.pattern.permute.xlu2 %v3191_v39 }
 0x62f   :  { %1328 = vperm.xlu2 %3007, %v3331_v21  }
 0x630   :  { %v1048_v40 = vpop.permute.xlu2 %1047 }
 0x631   :  { %1331 = vperm.xlu1 %3006, %v3335_v23   ;;  %v1098_v46 = vmul.f32 %v3586_v45, %v1048_v40 }
 0x633   :  { %v1106_v47 = vsel %vm83_vm0, %v1098_v46, 0.0 }
 0x634   :  { %v1107_v50 = vrot.slane %v1106_v47, 4 }
 0x636   :  { %v1108_v58 = vadd.f32 %v1107_v50, %v1106_v47 }
 0x637   :  { %1334 = vperm.xlu2 %3007, %v3338_v25  }
 0x638   :  { %v1069_v42 = vpop.permute.xlu2 %1068  ;;  %v1109_v5 = vrot.slane %v1108_v58, 2 }
 0x639   :  { %1340 = vperm.xlu1 %3006, %v3344_v29   ;;  %v1101_v49 = vmul.f32 %v3594_v48, %v1069_v42 }
 0x63a   :  { %v1110_v30 = vadd.f32 %v1109_v5, %v1108_v58 }
 0x63b   :  { %v1127_v57 = vsel %vm83_vm0, %v1101_v49, 0.0 }
 0x63c   :  { %v1128_v51 = vrot.slane %v1127_v57, 4  ;;  %v1111_v47 = vrot.slane %v1110_v30, 1 }
 0x63e   :  { %v1129_v22 = vadd.f32 %v1128_v51, %v1127_v57 }
 0x63f   :  { %1343 = vperm.xlu2 %3007, %v3347_v31  }
 0x640   :  { %v1083_v43 = vpop.permute.xlu2 %1082  ;;  %v1130_v41 = vrot.slane %v1129_v22, 2 }
 0x641   :  { %1346 = vperm.xlu1 %3006, %v3354_v35   ;;  %v1103_v6 = vmul.f32 %v3615_v13, %v1083_v43 }
 0x643   :  { %v1141_v1 = vsel %vm83_vm0, %v1103_v6, 0.0  ;;  %v3640_v6 = vld [vmem:[%s4133_s2 + $0x30] sm:$0xff] }
 0x644   :  { %v1142_v24 = vrot.slane %v1141_v1, 4 }
 0x646   :  { %v1143_v40 = vadd.f32 %v1142_v24, %v1141_v1 }
 0x647   :  { %3010 = vset.pattern.permute.xlu2 %v3184_v37 }
 0x648   :  { %v1062_v3 = vpop.permute.xlu0 %1061  ;;  %v1097_v2 = vpop.permute.xlu2 %1096 }
 0x649   :  { %v1100_v52 = vmul.f32 %v3601_v38, %v1062_v3  ;;  %v1055_v53 = vpop.permute.xlu1 %1054  ;;  %3011 = vset.pattern.permute.xlu1 %v3412_v19  ;;  %v1105_v63 = vmul.f32 %v3623_v61, %v1097_v2 }
 0x64a   :  { %v1099_v56 = vmul.f32 %v3608_v55, %v1055_v53  ;;  %v1131_v53 = vadd.f32 %v1130_v41, %v1129_v22 }
 0x64b   :  { %v1120_v54 = vsel %vm83_vm0, %v1100_v52, 0.0  ;;  %v1155_v7 = vsel %vm83_vm0, %v1105_v63, 0.0 }
 0x64c   :  { %v1121_v59 = vrot.slane %v1120_v54, 4  ;;  %v1113_v60 = vsel %vm83_vm0, %v1099_v56, 0.0  ;;  %v1156_v17 = vrot.slane %v1155_v7, 4  ;;  %v1144_v56 = vrot.slane %v1143_v40, 2 }
 0x64d   :  { %v1114_v14 = vrot.slane %v1113_v60, 4  ;;  %v1132_v5 = vrot.slane %v1131_v53, 1 }
 0x64e   :  { %v1122_v0 = vadd.f32 %v1121_v59, %v1120_v54  ;;  %v1157_v43 = vadd.f32 %v1156_v17, %v1155_v7  ;;  %v1145_v7 = vadd.f32 %v1144_v56, %v1143_v40 }
 0x64f   :  { %v1115_v4 = vadd.f32 %v1114_v14, %v1113_v60  ;;  %v1112_v60 = vadd.f32 %v1111_v47, %v1110_v30  ;;  %v1133_v17 = vadd.f32 %v1132_v5, %v1131_v53 }
 0x650   :  { %v860_v8 = vpop.permute.xlu2 %859  ;;  %v1123_v9 = vrot.slane %v1122_v0, 2  ;;  %v1158_v58 = vrot.slane %v1157_v43, 2  ;;  %v1146_v30 = vrot.slane %v1145_v7, 1 }
 0x651   :  { %v1116_v11 = vrot.slane %v1115_v4, 2  ;;  %v1076_v10 = vpop.permute.xlu1 %1075  ;;  %v904_v36 = vmul.f32 %v3608_v55, %v860_v8 }
 0x652   :  { %v1102_v15 = vmul.f32 %v3631_v12, %v1076_v10  ;;  %v1124_v32 = vadd.f32 %v1123_v9, %v1122_v0  ;;  %v1159_v9 = vadd.f32 %v1158_v58, %v1157_v43 }
 0x653   :  { %v1117_v28 = vadd.f32 %v1116_v11, %v1115_v4  ;;  %v918_v3 = vsel %vm83_vm0, %v904_v36, 0.0 }
 0x654   :  { %v1134_v62 = vsel %vm83_vm0, %v1102_v15, 0.0  ;;  %v1125_v49 = vrot.slane %v1124_v32, 1  ;;  %v919_v63 = vrot.slane %v918_v3, 4 }
 0x655   :  { %v1135_v34 = vrot.slane %v1134_v62, 4  ;;  %v1118_v42 = vrot.slane %v1117_v28, 1 }
 0x656   :  { %v1126_v51 = vadd.f32 %v1125_v49, %v1124_v32  ;;  %v920_v10 = vadd.f32 %v919_v63, %v918_v3 }
 0x657   :  { %v1136_v46 = vadd.f32 %v1135_v34, %v1134_v62  ;;  %v1119_v57 = vadd.f32 %v1118_v42, %v1117_v28  ;;  %v1160_v42 = vrot.slane %v1159_v9, 1 }
 0x658   :  { %v881_v52 = vpop.permute.xlu2 %880  ;;  %v921_v43 = vrot.slane %v920_v10, 2 }
 0x659   :  { %v1137_v50 = vrot.slane %v1136_v46, 2  ;;  %v1090_v2 = vpop.permute.xlu1 %1089  ;;  %v907_v4 = vmul.f32 %v3631_v12, %v881_v52  ;;  %v1191_v8 = vsel %vm258_vm2, %v1119_v57, %v1112_v60  ;;  %v1147_v52 = vadd.f32 %v1146_v30, %v1145_v7 }
 0x65a   :  { %v1104_v54 = vmul.f32 %v3640_v6, %v1090_v2  ;;  %v1192_v28 = vsel %vm260_vm3, %v1126_v51, %v1191_v8  ;;  %v1161_v58 = vadd.f32 %v1160_v42, %v1159_v9 }
 0x65b   :  { %v1138_v59 = vadd.f32 %v1137_v50, %v1136_v46  ;;  %v939_v15 = vsel %vm83_vm0, %v907_v4, 0.0  ;;  %v1193_v47 = vsel %vm262_vm4, %v1133_v17, %v1192_v28 }
 0x65c   :  { %v1148_v14 = vsel %vm83_vm0, %v1104_v54, 0.0  ;;  %v940_v46 = vrot.slane %v939_v15, 4 }
 0x65d   :  { %v1139_v0 = vrot.slane %v1138_v59, 1  ;;  %v1149_v1 = vrot.slane %v1148_v14, 4 }
 0x65e   :  { %v941_v51 = vadd.f32 %v940_v46, %v939_v15 }
 0x65f   :  { %v1150_v11 = vadd.f32 %v1149_v1, %v1148_v14  ;;  %v1140_v22 = vadd.f32 %v1139_v0, %v1138_v59  ;;  %v922_v59 = vadd.f32 %v921_v43, %v920_v10 }
 0x660   :  { %v902_v36 = vpop.permute.xlu2 %901  ;;  %v942_v30 = vrot.slane %v941_v51, 2 }
 0x661   :  { %v1151_v24 = vrot.slane %v1150_v11, 2  ;;  %v1194_v2 = vsel %vm264_vm5, %v1140_v22, %v1193_v47  ;;  %v910_v53 = vmul.f32 %v3623_v61, %v902_v36  ;;  %v923_v10 = vrot.slane %v922_v59, 1 }
 0x662   :  { %v867_v62 = vpop.permute.xlu0 %866  ;;  %v853_v32 = vpop.permute.xlu1 %852  ;;  %v1195_v14 = vsel %vm266_vm6, %v1147_v52, %v1194_v2  ;;  %v943_v47 = vadd.f32 %v942_v30, %v941_v51 }
 0x663   :  { %v1152_v34 = vadd.f32 %v1151_v24, %v1150_v11  ;;  %v905_v41 = vmul.f32 %v3601_v38, %v867_v62  ;;  %v903_v40 = vmul.f32 %v3586_v45, %v853_v32  ;;  %v960_v1 = vsel %vm83_vm0, %v910_v53, 0.0 }
 0x664   :  { %v961_v28 = vrot.slane %v960_v1, 4 }
 0x665   :  { %v1153_v49 = vrot.slane %v1152_v34, 1  ;;  %v925_v50 = vsel %vm83_vm0, %v905_v41, 0.0  ;;  %v911_v3 = vsel %vm83_vm0, %v903_v40, 0.0  ;;  %v924_v41 = vadd.f32 %v923_v10, %v922_v59 }
 0x666   :  { %v926_v56 = vrot.slane %v925_v50, 4  ;;  %v912_v57 = vrot.slane %v911_v3, 4  ;;  %v962_v43 = vadd.f32 %v961_v28, %v960_v1 }
 0x667   :  { %v1154_v54 = vadd.f32 %v1153_v49, %v1152_v34 }
 0x668   :  { %v927_v60 = vadd.f32 %v926_v56, %v925_v50  ;;  %v913_v63 = vadd.f32 %v912_v57, %v911_v3  ;;  %v963_v56 = vrot.slane %v962_v43, 2 }
 0x669   :  { %v1196_v0 = vsel %vm268_vm7, %v1154_v54, %v1195_v14 }
 0x66a   :  { %v928_v4 = vrot.slane %v927_v60, 2  ;;  %v914_v5 = vrot.slane %v913_v63, 2  ;;  %v888_v8 = vpop.permute.xlu0 %887  ;;  %v874_v7 = vpop.permute.xlu1 %873  ;;  %v1197_v11 = vsel %vm270_vm8, %v1161_v58, %v1196_v0  ;;  %v944_v58 = vrot.slane %v943_v47, 1 }
 0x66b   :  { %v908_v22 = vmul.f32 %v3615_v13, %v888_v8  ;;  %v906_v9 = vmul.f32 %v3594_v48, %v874_v7  ;;  %1198 = vrot.lane.b32.xlu0 %v1197_v11, %s3189_s7  ;;  %v964_v0 = vadd.f32 %v963_v56, %v962_v43  ;;  %v3038_v56 = vld [vmem:[%s4139_s8 + $0x1] ss:$0 sm:$0xff] }
 0x66c   :  { %v915_v24 = vadd.f32 %v914_v5, %v913_v63  ;;  %v929_v62 = vadd.f32 %v928_v4, %v927_v60  ;;  %v945_v4 = vadd.f32 %v944_v58, %v943_v47  ;;  %v1164_v5 = vpop.permute.xlu2 %1163  ;;  %v1268_v47 = vld [vmem:[#allocation2 + $0x58] sm:$0xff] }
 0x66d   :  { %v946_v15 = vsel %vm83_vm0, %v908_v22, 0.0  ;;  %v932_v17 = vsel %vm83_vm0, %v906_v9, 0.0  ;;  %v965_v28 = vrot.slane %v964_v0, 1  ;;  %1284 = vmatpush.msra.mxu3 %v1268_v47 }
 0x66e   :  { %v916_v32 = vrot.slane %v915_v24, 1  ;;  %v947_v34 = vrot.slane %v946_v15, 4  ;;  %v933_v36 = vrot.slane %v932_v17, 4  ;;  %v930_v49 = vrot.slane %v929_v62, 1 }
 0x670   :  { %v917_v40 = vadd.f32 %v916_v32, %v915_v24  ;;  %v948_v42 = vadd.f32 %v947_v34, %v946_v15  ;;  %v934_v46 = vadd.f32 %v933_v36, %v932_v17  ;;  %v931_v59 = vadd.f32 %v930_v49, %v929_v62  ;;  %v1267_v49 = vld [vmem:[#allocation2 + $0x50] sm:$0xff] }
 0x671   :  { %v1166_v15 = vsel %vm278_vm11, %v3556_v26, %v1164_v5  ;;  %v966_v32 = vadd.f32 %v965_v28, %v964_v0  ;;  %v1207_v26 = vld [vmem:[#allocation5 + $0x28] sm:$0xff]  ;;  %1285 = vmatpush.msra.mxu3 %v1267_v49 }
 0x672   :  { %v1175_v50 = vsel %vm258_vm2, %v924_v41, %v917_v40  ;;  %v895_v3 = vpop.permute.xlu1 %894  ;;  %v949_v2 = vrot.slane %v948_v42, 2  ;;  %v935_v52 = vrot.slane %v934_v46, 2  ;;  %v1209_v40 = vld [vmem:[#allocation5 + $0x38] sm:$0xff] }
 0x673   :  { %v909_v53 = vmul.f32 %v3640_v6, %v895_v3  ;;  %1520 = vperm.xlu0 %3003, %v3325_v18   ;;  %v1176_v8 = vsel %vm260_vm3, %v931_v59, %v1175_v50  ;;  %1225 = vmatpush.msra.mxu2 %v1209_v40  ;;  %v1266_v50 = vld [vmem:[#allocation2 + $0x48] sm:$0xff]  ;;  %v1265_v3 = vld [vmem:[#allocation2 + $0x40] sm:$0xff] }
 0x674   :  { %v936_v57 = vadd.f32 %v935_v52, %v934_v46  ;;  %v950_v63 = vadd.f32 %v949_v2, %v948_v42  ;;  %v1208_v42 = vld [vmem:[#allocation5 + $0x30] sm:$0xff]  ;;  %1286 = vmatpush.msra.mxu3 %v1266_v50  ;;  %v2941_v59 = vld [vmem:[%s4135_s4 + $0x4] sm:$0x3] }
 0x675   :  { %v953_v54 = vsel %vm83_vm0, %v909_v53, 0.0  ;;  %1226 = vmatpush.msra.mxu2 %v1208_v42 }
 0x676   :  { %v954_v60 = vrot.slane %v953_v54, 4  ;;  %v937_v14 = vrot.slane %v936_v57, 1  ;;  %v951_v22 = vrot.slane %v950_v63, 1  ;;  %1287 = vmatpush.msra.mxu3 %v1265_v3 }
 0x677   :  { %1227 = vmatpush.msra.mxu2 %v1207_v26 }
 0x678   :  { %v955_v51 = vadd.f32 %v954_v60, %v953_v54  ;;  %v938_v1 = vadd.f32 %v937_v14, %v936_v57  ;;  %v952_v30 = vadd.f32 %v951_v22, %v950_v63  ;;  %v1527_v14 = vpop.permute.xlu2 %1526 }
 0x67a   :  { %v956_v7 = vrot.slane %v955_v51, 2  ;;  %v1203_v11 = vpop.permute.xlu1 %1202  ;;  %v1177_v9 = vsel %vm262_vm4, %v938_v1, %v1176_v8 }
 0x67b   :  { %1535 = vperm.xlu0 %3003, %v3344_v29   ;;  %1250 = vmatpush.msra.mxu1 %v1203_v11  ;;  %v1178_v24 = vsel %vm264_vm5, %v945_v4, %v1177_v9  ;;  %v1545_v9 = vperm.slane %v1527_v14, %v3368_v44 }
 0x67c   :  { %v957_v10 = vadd.f32 %v956_v7, %v955_v51  ;;  %v1179_v34 = vsel %vm266_vm6, %v952_v30, %v1178_v24 }
 0x67d   :  { %1251 = vmatpush.msra.mxu1 %v3510_v20  ;;  %v1206_v20 = vld [vmem:[#allocation5 + $0x20] sm:$0xff] }
 0x67e   :  { %v958_v17 = vrot.slane %v957_v10, 1  ;;  %2938 = vmatmul.msk.f32.vlgmr.msra.gmra.mxu1 %vm83_vm0, %v1166_v15  ;;  %1228 = vmatpush.msra.mxu2 %v1206_v20 }
 0x680   :  { %v959_v62 = vadd.f32 %v958_v17, %v957_v10  ;;  %v1533_v0 = vpop.permute.xlu2 %1532 }
 0x682   :  { %v1180_v36 = vsel %vm268_vm7, %v959_v62, %v1179_v34  ;;  %v1524_v63 = vpop.permute.xlu1 %1523  ;;  %v1547_v62 = vperm.slane %v1533_v0, %v3368_v44 }
 0x683   :  { %v1181_v41 = vsel %vm270_vm8, %v966_v32, %v1180_v36  ;;  %3008 = vset.pattern.permute.xlu0 %v3182_v33  ;;  %v1544_v22 = vperm.slane %v1524_v63, %v3368_v44 }
 0x688   :  { %v1542_v4 = vpop.permute.xlu2 %1541 }
 0x689   :  { %v1550_v20 = vperm.slane %v1542_v4, %v3368_v44 }
 0x68a   :  { %v1530_v51 = vpop.permute.xlu1 %1529 }
 0x68b   :  { %v1546_v28 = vperm.slane %v1530_v51, %v3368_v44 }
 0x690   :  { %v1329_v11 = vpop.permute.xlu2 %1328 }
 0x692   :  { %v1539_v1 = vpop.permute.xlu1 %1538 }
 0x693   :  { %v1549_v40 = vperm.slane %v1539_v1, %v3368_v44 }
 0x698   :  { %v1335_v32 = vpop.permute.xlu2 %1334 }
 0x699   :  { %v1351_v63 = vperm.slane %v1335_v32, %v3368_v44 }
 0x69b   :  { %v1326_v8 = vpop.permute.xlu1 %1325 }
 0x69c   :  { %v1348_v3 = vperm.slane %v1326_v8, %v3368_v44 }
 0x6a0   :  { %v1344_v50 = vpop.permute.xlu2 %1343 }
 0x6a3   :  { %v1332_v15 = vpop.permute.xlu1 %1331 }
 0x6dd   :  { %v1199_v43 = vpop.permute.xlu0 %1198 }
 0x6de   :  { %v1201_v46 = vsel %vm83_vm0, %v1181_v41, %v1199_v43  ;;  %v1341_v43 = vpop.permute.xlu1 %1340 }
 0x6df   :  { %2937 = vmatmul.msk.f32.vlgmr.msra.gmra.mxu2 %vm153_vm1, %v1201_v46 }
 0x6e5   :  { %v1521_v5 = vpop.permute.xlu0 %1520 }
 0x6e6   :  { %v1543_v7 = vperm.slane %v1521_v5, %v3368_v44  ;;  %v1347_v51 = vpop.permute.xlu1 %1346  ;;  %v1353_v5 = vperm.slane %v1341_v43, %v3368_v44 }
 0x6ed   :  { %v1536_v24 = vpop.permute.xlu0 %1535 }
 0x6ee   :  { %v1548_v17 = vperm.slane %v1536_v24, %v3368_v44 }
 0x6fb   :  { %v1253_v2 = vpop.f32.mrf.mxu1 }
 0x762   :  { %v1230_v52 = vpop.f32.mrf.mxu2 }
 0x763   :  { %v1254_v53 = vadd.f32 %v1253_v2, %v1230_v52  ;;  %v1350_v52 = vperm.slane %v1332_v15, %v3368_v44 }
 0x765   :  { %v1256_v57 = vmul.f32 0.5, %v1254_v53  ;;  %v1349_v53 = vperm.slane %v1329_v11, %v3368_v44  ;;  %v1354_v11 = vperm.slane %v1344_v50, %v3368_v44 }
 0x767   :  { %v1262_v54 = vadd.f32 %v3038_v56, %v1256_v57  ;;  %v1356_v57 = vsel %vm258_vm2, %v1349_v53, %v1348_v3 }
 0x769   :  { %v1263_v58 = vmax.f32 %v1262_v54, 0.0 }
 0x76b   :  { %2940 = vmatmul.msk.f32.vlgmr.msra.gmra.mxu3 %vm153_vm1, %v1263_v58  ;;  %2942 = vmatpush.xpose.msk.msrb.mxu2 %vm153_vm1, %v1263_v58  ;;  %v1357_v58 = vsel %vm260_vm3, %v1350_v52, %v1356_v57 }
 0x76e   :  { %2943 = vmatmul.msk.f32.vlgmr.msrb.gmra.mxu2 %vm153_vm1, %v2941_v59 }
 0x7ee   :  { %v3691_v60 = vpop.f32.mrf.mxu3 }
 0x7ef   :  { %1319 = vperm.xlu2 %3010, %v3691_v60   ;;  %1514 = vperm.xlu0 %3008, %v3691_v60  }
 0x7f1   :  { %v1314_v41 = vpop.f32.mrf.mxu2 }
 0x7f2   :  { %v1517_v42 = vperm.slane %v1314_v41, 1  ;;  %v1322_v0 = vperm.slane %v1314_v41, 0 }
 0x7f7   :  { %3009 = vset.pattern.permute.xlu0 %v3191_v39  ;;  %3012 = vset.pattern.permute.xlu2 %v3412_v19  ;;  %v1551_v39 = vsel %vm258_vm2, %v1544_v22, %v1543_v7  ;;  %v1358_v7 = vsel %vm262_vm4, %v1351_v63, %v1357_v58 }
 0x7f8   :  { %1337 = vperm.xlu0 %3009, %v3341_v27   ;;  %v1552_v10 = vsel %vm260_vm3, %v1545_v9, %v1551_v39  ;;  %v1355_v39 = vperm.slane %v1347_v51, %v3368_v44 }
 0x7f9   :  { %v1553_v30 = vsel %vm262_vm4, %v1546_v28, %v1552_v10 }
 0x7fa   :  { %v1554_v34 = vsel %vm264_vm5, %v1547_v62, %v1553_v30 }
 0x7fb   :  { %v1555_v36 = vsel %vm266_vm6, %v1548_v17, %v1554_v34 }
 0x7fc   :  { %v1556_v26 = vsel %vm268_vm7, %v1549_v40, %v1555_v36 }
 0x7fd   :  { %v1557_v49 = vsel %vm270_vm8, %v1550_v20, %v1556_v26 }
 0x800   :  { %3013 = vset.pattern.permute.xlu0 %v3412_v19 }
 0x849   :  { %v1320_v8 = vpop.permute.xlu2 %1319 }
 0x84a   :  { %v1323_v10 = vadd.f32 %v1322_v0, %v1320_v8 }
 0x861   :  { %v1515_v46 = vpop.permute.xlu0 %1514 }
 0x862   :  { %v1518_v47 = vadd.f32 %v1517_v42, %v1515_v46 }
 0x864   :  { %v1559_v2 = vadd.f32 %v1557_v49, %v1518_v47 }
 0x866   :  { %v1561_v56 = vmul.f32 0.2, %v1559_v2  ;;  %vm1560_vm13 = vcmp.ge.f32.partialorder %v1559_v2, 0.0 }
 0x868   :  { %v1562_v54 = vsel %vm1560_vm13, %v1559_v2, %v1561_v56 }
 0x869   :  { %v1563_v59 = vadd.f32 %v1562_v54, %v3388_v16 }
 0x86a   :  { %v1338_v14 = vpop.permute.xlu0 %1337 }
 0x86b   :  { %v1352_v1 = vperm.slane %v1338_v14, %v3368_v44  ;;  %v1564_v4 = vsel %vm278_vm11, %v1563_v59, -inf }
 0x86c   :  { %1565 = vmax.xlane.f32.xlu0 %v1564_v4 }
 0x86d   :  { %v1359_v22 = vsel %vm264_vm5, %v1352_v1, %v1358_v7 }
 0x86e   :  { %v1360_v9 = vsel %vm266_vm6, %v1353_v5, %v1359_v22 }
 0x86f   :  { %v1361_v24 = vsel %vm268_vm7, %v1354_v11, %v1360_v9 }
 0x870   :  { %v1362_v28 = vsel %vm270_vm8, %v1355_v39, %v1361_v24 }
 0x871   :  { %v1364_v15 = vadd.f32 %v1362_v28, %v1323_v10 }
 0x873   :  { %vm1365_vm14 = vcmp.ge.f32.partialorder %v1364_v15, 0.0  ;;  %v1366_v17 = vmul.f32 0.2, %v1364_v15 }
 0x875   :  { %v1367_v30 = vsel %vm1365_vm14, %v1364_v15, %v1366_v17 }
 0x876   :  { %v1368_v62 = vadd.f32 %v1367_v30, %v3388_v16 }
 0x878   :  { %v1369_v32 = vsel %vm278_vm11, %v1368_v62, -inf }
 0x879   :  { %1370 = vmax.xlane.f32.xlu1 %v1369_v32 }
 0x8df   :  { %v1566_v34 = vpop.xlane.xlu0 %1565 }
 0x8e0   :  { %v1567_v36 = vsub.f32 %v1563_v59, %v1566_v34 }
 0x8e2   :  { %v1568_v41 = vmul.f32 1.442695, %v1567_v36 }
 0x8e4   :  { %3058 = vpow2.f32 %v1568_v41 }
 0x8ea   :  { %v3059_v40 = vpop.eup %3058 }
 0x8eb   :  { %v1570_v42 = vsel %vm278_vm11, %v3059_v40, 0.0 }
 0x8ec   :  { %1571 = vadd.xlane.f32.xlu2 %v1570_v42  ;;  %v1371_v26 = vpop.xlane.xlu1 %1370 }
 0x8ed   :  { %v1372_v20 = vsub.f32 %v1368_v62, %v1371_v26 }
 0x8ef   :  { %v1373_v43 = vmul.f32 1.442695, %v1372_v20  ;;  %v3192_v20 = vmov 7  }
 0x8f1   :  { %3060 = vpow2.f32 %v1373_v43 }
 0x8f7   :  { %v3061_v46 = vpop.eup %3060 }
 0x8f8   :  { %v1375_v47 = vsel %vm278_vm11, %v3061_v46, 0.0 }
 0x8f9   :  { %1376 = vadd.xlane.f32.xlu0 %v1375_v47  ;;  %v3193_v47 = vmov 6  }
 0x95f   :  { %v1572_v49 = vpop.xlane.xlu2 %1571 }
 0x960   :  { %3062 = vrcp.f32 %v1572_v49  ;;  %v1584_v52 = vand.u32 2147483648, %v1572_v49  ;;  %v1582_v56 = vand.u32 2147483647, %v1572_v49  ;;  %vm1578_vm9 = vweird.f32 %v1572_v49 }
 0x962   :  { %v1585_v58 = vor.u32 1.1754944e-38, %v1584_v52  ;;  %vm1583_vm12 = vcmp.eq.f32.partialorder %v1582_v56, 8.507059e+37 }
 0x966   :  { %v3063_v50 = vpop.eup %3062 }
 0x967   :  { %v1574_v3 = vmul.f32 %v3063_v50, %v1572_v49  ;;  %vm1579_vm15 = vweird.f32 %v3063_v50 }
 0x968   :  { %vm1580_vm10 = vmor %vm1578_vm9, %vm1579_vm15 }
 0x969   :  { %v1575_v2 = vsub.f32 1.0, %v1574_v3 }
 0x96b   :  { %v1576_v53 = vmul.f32 %v3063_v50, %v1575_v2 }
 0x96c   :  { %v1377_v57 = vpop.xlane.xlu0 %1376 }
 0x96d   :  { %v1577_v54 = vadd.f32 %v3063_v50, %v1576_v53  ;;  %3064 = vrcp.f32 %v1377_v57  ;;  %v1389_v7 = vand.u32 2147483648, %v1377_v57  ;;  %v1387_v22 = vand.u32 2147483647, %v1377_v57 }
 0x96e   :  { %vm1383_vm14 = vweird.f32 %v1377_v57 }
 0x96f   :  { %v1581_v59 = vsel %vm1580_vm10, %v3063_v50, %v1577_v54  ;;  %v1390_v9 = vor.u32 1.1754944e-38, %v1389_v7  ;;  %vm1388_vm9 = vcmp.eq.f32.partialorder %v1387_v22, 8.507059e+37 }
 0x970   :  { %v1586_v63 = vsel %vm1583_vm12, %v1585_v58, %v1581_v59 }
 0x971   :  { %v1587_v14 = vmul.f32 %v3059_v40, %v1586_v63 }
 0x973   :  { %v3065_v51 = vpop.eup %3064  ;;  %v1602_v0 = vperm.slane %v1587_v14, 2  ;;  %v1595_v1 = vperm.slane %v1587_v14, 1  ;;  %v1588_v4 = vperm.slane %v1587_v14, 0  ;;  %v1616_v10 = vperm.slane %v1587_v14, 4 }
 0x974   :  { %v1379_v5 = vmul.f32 %v3065_v51, %v1377_v57  ;;  %vm1384_vm13 = vweird.f32 %v3065_v51  ;;  %v1609_v28 = vperm.slane %v1587_v14, 3  ;;  %v1630_v62 = vperm.slane %v1587_v14, 6 }
 0x975   :  { %1607 = vperm.xlu0 %3013, %v1602_v0   ;;  %1600 = vperm.xlu2 %3012, %v1595_v1   ;;  %vm1385_vm15 = vmor %vm1383_vm14, %vm1384_vm13  ;;  %v1623_v32 = vperm.slane %v1587_v14, 5  ;;  %v1637_v41 = vperm.slane %v1587_v14, 7 }
 0x976   :  { %v1380_v8 = vsub.f32 1.0, %v1379_v5  ;;  %1593 = vperm.xlu1 %3011, %v1588_v4  }
 0x978   :  { %v1381_v11 = vmul.f32 %v3065_v51, %v1380_v8 }
 0x97a   :  { %v1382_v39 = vadd.f32 %v3065_v51, %v1381_v11 }
 0x97c   :  { %v1386_v24 = vsel %vm1385_vm15, %v3065_v51, %v1382_v39 }
 0x97d   :  { %v1391_v15 = vsel %vm1388_vm9, %v1390_v9, %v1386_v24  ;;  %1621 = vperm.xlu2 %3012, %v1616_v10  }
 0x97e   :  { %v3735_v17 = vmul.f32 %v3061_v46, %v1391_v15  ;;  %1614 = vperm.xlu1 %3011, %v1609_v28  }
 0x980   :  { %v1400_v30 = vperm.slane %v3735_v17, 1  ;;  %v1421_v34 = vperm.slane %v3735_v17, 4  ;;  %v1393_v36 = vperm.slane %v3735_v17, 0  ;;  %v1442_v40 = vperm.slane %v3735_v17, 7 }
 0x981   :  { %v1414_v42 = vperm.slane %v3735_v17, 3  ;;  %v1407_v26 = vperm.slane %v3735_v17, 2  ;;  %v1435_v43 = vperm.slane %v3735_v17, 6  ;;  %v1428_v46 = vperm.slane %v3735_v17, 5 }
 0x982   :  { %1405 = vperm.xlu0 %3013, %v1400_v30  }
 0x985   :  { %1635 = vperm.xlu2 %3012, %v1630_v62  }
 0x986   :  { %1628 = vperm.xlu1 %3011, %v1623_v32  }
 0x98a   :  { %1426 = vperm.xlu0 %3013, %v1421_v34  }
 0x98d   :  { %1398 = vperm.xlu2 %3012, %v1393_v36  }
 0x98e   :  { %1642 = vperm.xlu1 %3011, %v1637_v41  }
 0x992   :  { %1447 = vperm.xlu0 %3013, %v1442_v40  }
 0x995   :  { %1419 = vperm.xlu2 %3012, %v1414_v42  }
 0x996   :  { %1412 = vperm.xlu1 %3011, %v1407_v26  }
 0x99a   :  { %3016 = vset.pattern.permute.xlu0 %v3192_v20 }
 0x99d   :  { %1440 = vperm.xlu2 %3012, %v1435_v43  }
 0x99e   :  { %1433 = vperm.xlu1 %3011, %v1428_v46  }
 0x9a5   :  { %1709 = vrot.lane.b32.xlu2 %v1587_v14, %s3179_s18 }
 0x9a6   :  { %1748 = vrot.lane.b32.xlu1 %v3691_v60, %s3187_s1  ;;  %3015 = vset.pattern.permute.xlu2 %v3192_v20 }
 0x9a7   :  { %3014 = vset.pattern.permute.xlu1 %v3192_v20 }
 0x9ad   :  { %2069 = vperm.xlu2 %3015, %v3331_v21  }
 0x9ae   :  { %2066 = vperm.xlu1 %3014, %v3325_v18  }
 0x9b5   :  { %2078 = vperm.xlu2 %3015, %v3341_v27  }
 0x9b6   :  { %2075 = vperm.xlu1 %3014, %v3338_v25  }
 0x9bd   :  { %2084 = vperm.xlu2 %3015, %v3347_v31  }
 0x9be   :  { %2081 = vperm.xlu1 %3014, %v3344_v29  }
 0x9c5   :  { %3018 = vset.pattern.permute.xlu2 %v3193_v47 }
 0x9c6   :  { %1871 = vperm.xlu2 %3018, %v3325_v18   ;;  %3017 = vset.pattern.permute.xlu1 %v3182_v33 }
 0x9ce   :  { %1880 = vperm.xlu2 %3018, %v3338_v25  }
 0x9cf   :  { %v1601_v49 = vpop.permute.xlu2 %1600 }
 0x9d0   :  { %v1645_v2 = vmul.f32 %v3608_v55, %v1601_v49 }
 0x9d2   :  { %v1659_v54 = vsel %vm83_vm0, %v1645_v2, 0.0 }
 0x9d3   :  { %v1660_v51 = vrot.slane %v1659_v54, 4 }
 0x9d5   :  { %v1661_v7 = vadd.f32 %v1660_v51, %v1659_v54 }
 0x9d6   :  { %1886 = vperm.xlu2 %3018, %v3344_v29  }
 0x9d7   :  { %v1622_v50 = vpop.permute.xlu2 %1621  ;;  %v1662_v15 = vrot.slane %v1661_v7, 2 }
 0x9d8   :  { %v1648_v58 = vmul.f32 %v3631_v12, %v1622_v50 }
 0x9d9   :  { %v1663_v43 = vadd.f32 %v1662_v15, %v1661_v7 }
 0x9da   :  { %v1680_v1 = vsel %vm83_vm0, %v1648_v58, 0.0 }
 0x9db   :  { %v1681_v22 = vrot.slane %v1680_v1, 4 }
 0x9dd   :  { %v1682_v62 = vadd.f32 %v1681_v22, %v1680_v1 }
 0x9de   :  { %3021 = vset.pattern.permute.xlu2 %v3184_v37 }
 0x9df   :  { %v1636_v3 = vpop.permute.xlu2 %1635  ;;  %v1683_v50 = vrot.slane %v1682_v62, 2 }
 0x9e0   :  { %v1650_v39 = vmul.f32 %v3640_v6, %v1636_v3 }
 0x9e2   :  { %v1694_v32 = vsel %vm83_vm0, %v1650_v39, 0.0 }
 0x9e3   :  { %v1695_v46 = vrot.slane %v1694_v32, 4 }
 0x9e7   :  { %v1608_v52 = vpop.permute.xlu0 %1607  ;;  %v1399_v0 = vpop.permute.xlu2 %1398 }
 0x9e8   :  { %v1646_v53 = vmul.f32 %v3601_v38, %v1608_v52  ;;  %v1594_v56 = vpop.permute.xlu1 %1593  ;;  %v1449_v3 = vmul.f32 %v3586_v45, %v1399_v0 }
 0x9e9   :  { %v1644_v57 = vmul.f32 %v3586_v45, %v1594_v56 }
 0x9ea   :  { %v1666_v63 = vsel %vm83_vm0, %v1646_v53, 0.0 }
 0x9eb   :  { %v1652_v59 = vsel %vm83_vm0, %v1644_v57, 0.0  ;;  %v1667_v4 = vrot.slane %v1666_v63, 4 }
 0x9ec   :  { %v1653_v14 = vrot.slane %v1652_v59, 4 }
 0x9ed   :  { %v1668_v9 = vadd.f32 %v1667_v4, %v1666_v63  ;;  %v1684_v63 = vadd.f32 %v1683_v50, %v1682_v62 }
 0x9ee   :  { %v1654_v5 = vadd.f32 %v1653_v14, %v1652_v59  ;;  %v1664_v59 = vrot.slane %v1663_v43, 1  ;;  %v1457_v14 = vsel %vm83_vm0, %v1449_v3, 0.0 }
 0x9ef   :  { %v1669_v36 = vrot.slane %v1668_v9, 2  ;;  %v1420_v40 = vpop.permute.xlu2 %1419  ;;  %v1458_v39 = vrot.slane %v1457_v14, 4 }
 0x9f0   :  { %v1615_v8 = vpop.permute.xlu1 %1614  ;;  %v1655_v10 = vrot.slane %v1654_v5, 2  ;;  %v1452_v53 = vmul.f32 %v3594_v48, %v1420_v40 }
 0x9f1   :  { %v1647_v11 = vmul.f32 %v3594_v48, %v1615_v8  ;;  %v1670_v2 = vadd.f32 %v1669_v36, %v1668_v9 }
 0x9f2   :  { %v1656_v41 = vadd.f32 %v1655_v10, %v1654_v5  ;;  %v1478_v45 = vsel %vm83_vm0, %v1452_v53, 0.0 }
 0x9f3   :  { %v1673_v24 = vsel %vm83_vm0, %v1647_v11, 0.0  ;;  %v1671_v1 = vrot.slane %v1670_v2, 1  ;;  %v1665_v11 = vadd.f32 %v1664_v59, %v1663_v43  ;;  %v1459_v43 = vadd.f32 %v1458_v39, %v1457_v14 }
 0x9f4   :  { %v1674_v28 = vrot.slane %v1673_v24, 4  ;;  %v1406_v30 = vpop.permute.xlu0 %1405  ;;  %v1657_v52 = vrot.slane %v1656_v41, 1 }
 0x9f5   :  { %v1450_v26 = vmul.f32 %v3608_v55, %v1406_v30  ;;  %v1696_v55 = vadd.f32 %v1695_v46, %v1694_v32  ;;  %v1672_v62 = vadd.f32 %v1671_v1, %v1670_v2 }
 0x9f6   :  { %v1675_v34 = vadd.f32 %v1674_v28, %v1673_v24  ;;  %v1658_v4 = vadd.f32 %v1657_v52, %v1656_v41  ;;  %v1685_v24 = vrot.slane %v1684_v63, 1  ;;  %v1479_v28 = vrot.slane %v1478_v45, 4 }
 0x9f7   :  { %v1464_v54 = vsel %vm83_vm0, %v1450_v26, 0.0  ;;  %v1697_v22 = vrot.slane %v1696_v55, 2  ;;  %v1441_v9 = vpop.permute.xlu2 %1440 }
 0x9f8   :  { %v1676_v42 = vrot.slane %v1675_v34, 2  ;;  %v1629_v20 = vpop.permute.xlu1 %1628  ;;  %v1465_v0 = vrot.slane %v1464_v54, 4  ;;  %v1737_v32 = vsel %vm258_vm2, %v1665_v11, %v1658_v4  ;;  %v1455_v40 = vmul.f32 %v3640_v6, %v1441_v9 }
 0x9f9   :  { %v1649_v49 = vmul.f32 %v3615_v13, %v1629_v20  ;;  %v1698_v20 = vadd.f32 %v1697_v22, %v1696_v55  ;;  %v1480_v46 = vadd.f32 %v1479_v28, %v1478_v45  ;;  %v1686_v50 = vadd.f32 %v1685_v24, %v1684_v63 }
 0x9fa   :  { %v1677_v57 = vadd.f32 %v1676_v42, %v1675_v34  ;;  %v1466_v34 = vadd.f32 %v1465_v0, %v1464_v54  ;;  %v1499_v2 = vsel %vm83_vm0, %v1455_v40, 0.0  ;;  %v1460_v54 = vrot.slane %v1459_v43, 2 }
 0x9fb   :  { %v1687_v56 = vsel %vm83_vm0, %v1649_v49, 0.0  ;;  %v1699_v6 = vrot.slane %v1698_v20, 1  ;;  %v1481_v55 = vrot.slane %v1480_v46, 2  ;;  %v1500_v1 = vrot.slane %v1499_v2, 4 }
 0x9fc   :  { %v1688_v58 = vrot.slane %v1687_v56, 4  ;;  %v1427_v5 = vpop.permute.xlu0 %1426  ;;  %v1678_v8 = vrot.slane %v1677_v57, 1  ;;  %v1467_v3 = vrot.slane %v1466_v34, 2 }
 0x9fd   :  { %v1453_v30 = vmul.f32 %v3631_v12, %v1427_v5  ;;  %v1738_v12 = vsel %vm260_vm3, %v1672_v62, %v1737_v32  ;;  %v1482_v39 = vadd.f32 %v1481_v55, %v1480_v46 }
 0x9fe   :  { %v1689_v51 = vadd.f32 %v1688_v58, %v1687_v56  ;;  %v1679_v41 = vadd.f32 %v1678_v8, %v1677_v57  ;;  %v1700_v8 = vadd.f32 %v1699_v6, %v1698_v20 }
 0x9ff   :  { %v1483_v40 = vrot.slane %v1482_v39, 1 }
 0xa00   :  { %v1690_v48 = vrot.slane %v1689_v51, 2  ;;  %v1643_v7 = vpop.permute.xlu1 %1642  ;;  %v1739_v57 = vsel %vm262_vm4, %v1679_v41, %v1738_v12  ;;  %v1754_v41 = vld [vmem:[#allocation5 + $0x50] sm:$0xff] }
 0xa01   :  { %v1651_v10 = vmul.f32 %v3623_v61, %v1643_v7  ;;  %v1485_v61 = vsel %vm83_vm0, %v1453_v30, 0.0  ;;  %v1740_v4 = vsel %vm264_vm5, %v1686_v50, %v1739_v57 }
 0xa02   :  { %v1691_v15 = vadd.f32 %v1690_v48, %v1689_v51  ;;  %v1486_v58 = vrot.slane %v1485_v61, 4  ;;  %v1468_v51 = vadd.f32 %v1467_v3, %v1466_v34  ;;  %v1461_v48 = vadd.f32 %v1460_v54, %v1459_v43 }
 0xa03   :  { %v1701_v36 = vsel %vm83_vm0, %v1651_v10, 0.0 }
 0xa04   :  { %v1692_v42 = vrot.slane %v1691_v15, 1  ;;  %v1702_v26 = vrot.slane %v1701_v36, 4  ;;  %v1487_v7 = vadd.f32 %v1486_v58, %v1485_v61  ;;  %v1469_v9 = vrot.slane %v1468_v51, 1  ;;  %v1753_v61 = vld [vmem:[#allocation5 + $0x48] sm:$0xff] }
 0xa05   :  { %v1462_v30 = vrot.slane %v1461_v48, 1 }
 0xa06   :  { %v1703_v49 = vadd.f32 %v1702_v26, %v1701_v36  ;;  %v1693_v52 = vadd.f32 %v1692_v42, %v1691_v15  ;;  %v1488_v62 = vrot.slane %v1487_v7, 2  ;;  %v1755_v36 = vld [vmem:[#allocation5 + $0x58] sm:$0xff]  ;;  %v1470_v42 = vadd.f32 %v1469_v9, %v1468_v51 }
 0xa07   :  { %1771 = vmatpush.msrb.mxu1 %v1755_v36 }
 0xa08   :  { %v1704_v53 = vrot.slane %v1703_v49, 2  ;;  %v1413_v56 = vpop.permute.xlu1 %1412  ;;  %v1741_v5 = vsel %vm266_vm6, %v1693_v52, %v1740_v4  ;;  %v1489_v50 = vadd.f32 %v1488_v62, %v1487_v7  ;;  %v1813_v62 = vld [vmem:[#allocation2 + $0x70] sm:$0xff] }
 0xa09   :  { %v1451_v59 = vmul.f32 %v3601_v38, %v1413_v56  ;;  %v1501_v38 = vadd.f32 %v1500_v1, %v1499_v2  ;;  %v1742_v10 = vsel %vm268_vm7, %v1700_v8, %v1741_v5  ;;  %1772 = vmatpush.msrb.mxu1 %v1754_v41  ;;  %v1710_v56 = vpop.permute.xlu2 %1709 }
 0xa0a   :  { %v1705_v14 = vadd.f32 %v1704_v53, %v1703_v49  ;;  %v1463_v49 = vadd.f32 %v1462_v30, %v1461_v48  ;;  %v1752_v53 = vld [vmem:[#allocation5 + $0x40] sm:$0xff]  ;;  %v1490_v58 = vrot.slane %v1489_v50, 1  ;;  %v1712_v51 = vsel %vm278_vm11, %v3735_v17, %v1710_v56  ;;  %v3817_v17 = vld [vmem:[%s4133_s2 + $0x38] sm:$0xff] }
 0xa0b   :  { %v1471_v63 = vsel %vm83_vm0, %v1451_v59, 0.0  ;;  %v1502_v26 = vrot.slane %v1501_v38, 2  ;;  %1773 = vmatpush.msrb.mxu1 %v1753_v61  ;;  %v1814_v30 = vld [vmem:[#allocation2 + $0x78] sm:$0xff] }
 0xa0c   :  { %v1706_v45 = vrot.slane %v1705_v14, 1  ;;  %v1472_v0 = vrot.slane %v1471_v63, 4  ;;  %v1721_v2 = vsel %vm258_vm2, %v1470_v42, %v1463_v49  ;;  %1830 = vmatpush.msra.mxu2 %v1814_v30  ;;  %v3039_v42 = vld [vmem:[%s4139_s8 + $0x2] ss:$0 sm:$0xff] }
 0xa0d   :  { %v1503_v52 = vadd.f32 %v1502_v26, %v1501_v38  ;;  %1774 = vmatpush.msrb.mxu1 %v1752_v53 }
 0xa0e   :  { %v1473_v11 = vadd.f32 %v1472_v0, %v1471_v63  ;;  %v1707_v22 = vadd.f32 %v1706_v45, %v1705_v14  ;;  %v1491_v63 = vadd.f32 %v1490_v58, %v1489_v50  ;;  %1831 = vmatpush.msra.mxu2 %v1813_v62 }
 0xa0f   :  { %v1504_v14 = vrot.slane %v1503_v52, 1 }
 0xa10   :  { %v1474_v24 = vrot.slane %v1473_v11, 2  ;;  %v1434_v28 = vpop.permute.xlu1 %1433  ;;  %v1743_v15 = vsel %vm270_vm8, %v1707_v22, %v1742_v10 }
 0xa11   :  { %v1454_v32 = vmul.f32 %v3615_v13, %v1434_v28  ;;  %1744 = vrot.lane.b32.xlu0 %v1743_v15, %s3189_s7  ;;  %v1484_v13 = vadd.f32 %v1483_v40, %v1482_v39  ;;  %v1505_v45 = vadd.f32 %v1504_v14, %v1503_v52  ;;  %v2070_v49 = vpop.permute.xlu2 %2069 }
 0xa12   :  { %v1475_v34 = vadd.f32 %v1474_v24, %v1473_v11 }
 0xa13   :  { %v1492_v20 = vsel %vm83_vm0, %v1454_v32, 0.0  ;;  %v1812_v32 = vld [vmem:[#allocation2 + $0x68] sm:$0xff] }
 0xa14   :  { %v1476_v43 = vrot.slane %v1475_v34, 1  ;;  %v1493_v46 = vrot.slane %v1492_v20, 4  ;;  %1832 = vmatpush.msra.mxu2 %v1812_v32 }
 0xa16   :  { %v1477_v3 = vadd.f32 %v1476_v43, %v1475_v34  ;;  %v1494_v12 = vadd.f32 %v1493_v46, %v1492_v20  ;;  %v1811_v34 = vld [vmem:[#allocation2 + $0x60] sm:$0xff] }
 0xa17   :  { %1833 = vmatpush.msra.mxu2 %v1811_v34  ;;  %v2948_v46 = vld [vmem:[%s4135_s4 + $0x6] sm:$0x3] }
 0xa18   :  { %v1722_v57 = vsel %vm260_vm3, %v1477_v3, %v1721_v2  ;;  %v1495_v6 = vrot.slane %v1494_v12, 2  ;;  %v1749_v54 = vpop.permute.xlu1 %1748 }
 0xa19   :  { %2072 = vperm.xlu0 %3016, %v3335_v23   ;;  %1796 = vmatpush.msrb.mxu3 %v1749_v54  ;;  %v1723_v59 = vsel %vm262_vm4, %v1484_v13, %v1722_v57  ;;  %v2079_v3 = vpop.permute.xlu2 %2078 }
 0xa1a   :  { %v1496_v55 = vadd.f32 %v1495_v6, %v1494_v12  ;;  %v1724_v0 = vsel %vm264_vm5, %v1491_v63, %v1723_v59  ;;  %v2093_v59 = vperm.slane %v2079_v3, %v3368_v44 }
 0xa1b   :  { %1797 = vmatpush.msrb.mxu3 %v3691_v60  ;;  %v1448_v60 = vpop.permute.xlu0 %1447 }
 0xa1c   :  { %v1497_v1 = vrot.slane %v1496_v55, 1  ;;  %2945 = vmatmul.msk.f32.vlgmr.msrb.gmra.mxu3 %vm83_vm0, %v1712_v51  ;;  %v1456_v48 = vmul.f32 %v3817_v17, %v1448_v60 }
 0xa1e   :  { %v1498_v4 = vadd.f32 %v1497_v1, %v1496_v55  ;;  %v1506_v7 = vsel %vm83_vm0, %v1456_v48, 0.0 }
 0xa1f   :  { %v1507_v11 = vrot.slane %v1506_v7, 4 }
 0xa20   :  { %v1725_v5 = vsel %vm266_vm6, %v1498_v4, %v1724_v0  ;;  %v2067_v50 = vpop.permute.xlu1 %2066 }
 0xa21   :  { %2087 = vperm.xlu0 %3016, %v3354_v35   ;;  %v1726_v8 = vsel %vm268_vm7, %v1505_v45, %v1725_v5  ;;  %v1508_v22 = vadd.f32 %v1507_v11, %v1506_v7  ;;  %v2089_v2 = vperm.slane %v2067_v50, %v3368_v44  ;;  %v2085_v53 = vpop.permute.xlu2 %2084 }
 0xa22   :  { %v2095_v5 = vperm.slane %v2085_v53, %v3368_v44 }
 0xa23   :  { %v1509_v39 = vrot.slane %v1508_v22, 2 }
 0xa25   :  { %v1510_v9 = vadd.f32 %v1509_v39, %v1508_v22 }
 0xa27   :  { %v1511_v38 = vrot.slane %v1510_v9, 1 }
 0xa28   :  { %v2076_v12 = vpop.permute.xlu1 %2075 }
 0xa29   :  { %3019 = vset.pattern.permute.xlu0 %v3193_v47  ;;  %v1512_v10 = vadd.f32 %v1511_v38, %v1510_v9  ;;  %v2092_v6 = vperm.slane %v2076_v12, %v3368_v44  ;;  %v1872_v51 = vpop.permute.xlu2 %1871 }
 0xa2a   :  { %1874 = vperm.xlu0 %3019, %v3331_v21   ;;  %v1894_v62 = vperm.slane %v1872_v51, %v3368_v44 }
 0xa2b   :  { %v1727_v28 = vsel %vm270_vm8, %v1512_v10, %v1726_v8 }
 0xa30   :  { %v2082_v54 = vpop.permute.xlu1 %2081 }
 0xa31   :  { %v2094_v1 = vperm.slane %v2082_v54, %v3368_v44  ;;  %v1881_v39 = vpop.permute.xlu2 %1880 }
 0xa32   :  { %1889 = vperm.xlu0 %3019, %v3347_v31  }
 0xa39   :  { %v1887_v32 = vpop.permute.xlu2 %1886 }
 0xa3a   :  { %3024 = vset.pattern.permute.xlu0 %v3412_v19 }
 0xa83   :  { %v1745_v24 = vpop.permute.xlu0 %1744 }
 0xa84   :  { %v1747_v15 = vsel %vm83_vm0, %v1727_v28, %v1745_v24 }
 0xa85   :  { %2944 = vmatmul.msk.f32.vlgmr.msrb.gmra.mxu1 %vm153_vm1, %v1747_v15 }
 0xa8b   :  { %v2073_v13 = vpop.permute.xlu0 %2072 }
 0xa8c   :  { %v2091_v52 = vperm.slane %v2073_v13, %v3368_v44 }
 0xa93   :  { %v2088_v14 = vpop.permute.xlu0 %2087 }
 0xa94   :  { %v2096_v45 = vperm.slane %v2088_v14, %v3368_v44 }
 0xa9c   :  { %v1875_v10 = vpop.permute.xlu0 %1874 }
 0xa9d   :  { %v1895_v15 = vperm.slane %v1875_v10, %v3368_v44 }
 0xa9f   :  { %v1799_v36 = vpop.f32.mrf.mxu3  ;;  %v1902_v34 = vsel %vm258_vm2, %v1895_v15, %v1894_v62 }
 0xb02   :  { %v1776_v41 = vpop.f32.mrf.mxu1 }
 0xb03   :  { %v1800_v40 = vadd.f32 %v1799_v36, %v1776_v41 }
 0xb05   :  { %v1802_v26 = vmul.f32 0.5, %v1800_v40  ;;  %v1897_v40 = vperm.slane %v1881_v39, %v3368_v44 }
 0xb07   :  { %v1808_v20 = vadd.f32 %v3039_v42, %v1802_v26 }
 0xb09   :  { %v1809_v43 = vmax.f32 %v1808_v20, 0.0 }
 0xb0b   :  { %2947 = vmatmul.msk.f32.vlgmr.msra.gmra.mxu2 %vm153_vm1, %v1809_v43  ;;  %2949 = vmatpush.xpose.msk.msra.mxu1 %vm153_vm1, %v1809_v43  ;;  %v1899_v43 = vperm.slane %v1887_v32, %v3368_v44 }
 0xb0e   :  { %2950 = vmatmul.msk.f32.vlgmr.msra.gmra.mxu1 %vm153_vm1, %v2948_v46  ;;  %v1890_v46 = vpop.permute.xlu0 %1889 }
 0xb0f   :  { %v1900_v12 = vperm.slane %v1890_v46, %v3368_v44 }
 0xb8b   :  { %v1860_v63 = vpop.f32.mrf.mxu1 }
 0xb8c   :  { %v2063_v4 = vperm.slane %v1860_v63, 1 }
 0xb8e   :  { %v3833_v61 = vpop.f32.mrf.mxu2 }
 0xb8f   :  { %1865 = vperm.xlu2 %3021, %v3833_v61   ;;  %2060 = vperm.xlu1 %3017, %v3833_v61  }
 0xb97   :  { %3020 = vset.pattern.permute.xlu1 %v3193_v47  ;;  %3023 = vset.pattern.permute.xlu2 %v3412_v19  ;;  %v2090_v47 = vperm.slane %v2070_v49, %v3368_v44  ;;  %v1868_v49 = vperm.slane %v1860_v63, 0 }
 0xb98   :  { %1877 = vperm.xlu1 %3020, %v3335_v23  }
 0xb99   :  { %v2097_v56 = vsel %vm258_vm2, %v2090_v47, %v2089_v2 }
 0xb9a   :  { %v2098_v57 = vsel %vm260_vm3, %v2091_v52, %v2097_v56 }
 0xb9b   :  { %v2099_v58 = vsel %vm262_vm4, %v2092_v6, %v2098_v57 }
 0xb9c   :  { %v2100_v55 = vsel %vm264_vm5, %v2093_v59, %v2099_v58 }
 0xb9d   :  { %v2101_v0 = vsel %vm266_vm6, %v2094_v1, %v2100_v55 }
 0xb9e   :  { %v2102_v60 = vsel %vm268_vm7, %v2095_v5, %v2101_v0 }
 0xb9f   :  { %v2103_v7 = vsel %vm270_vm8, %v2096_v45, %v2102_v60 }
 0xba0   :  { %1883 = vperm.xlu1 %3020, %v3341_v27  }
 0xba8   :  { %1892 = vperm.xlu1 %3020, %v3354_v35  }
 0xbb0   :  { %3022 = vset.pattern.permute.xlu1 %v3412_v19 }
 0xbe9   :  { %v1866_v50 = vpop.permute.xlu2 %1865 }
 0xbea   :  { %v1869_v52 = vadd.f32 %v1868_v49, %v1866_v50 }
 0xc01   :  { %v2061_v8 = vpop.permute.xlu1 %2060 }
 0xc02   :  { %v2064_v48 = vadd.f32 %v2063_v4, %v2061_v8 }
 0xc04   :  { %v2105_v11 = vadd.f32 %v2103_v7, %v2064_v48 }
 0xc06   :  { %v2107_v22 = vmul.f32 0.2, %v2105_v11  ;;  %vm2106_vm10 = vcmp.ge.f32.partialorder %v2105_v11, 0.0 }
 0xc08   :  { %v2108_v9 = vsel %vm2106_vm10, %v2105_v11, %v2107_v22 }
 0xc09   :  { %v2109_v38 = vadd.f32 %v2108_v9, %v3388_v16 }
 0xc0a   :  { %v1878_v24 = vpop.permute.xlu1 %1877 }
 0xc0b   :  { %v2110_v28 = vsel %vm278_vm11, %v2109_v38, -inf  ;;  %v1896_v30 = vperm.slane %v1878_v24, %v3368_v44 }
 0xc0c   :  { %2111 = vmax.xlane.f32.xlu0 %v2110_v28 }
 0xc0d   :  { %v1903_v36 = vsel %vm260_vm3, %v1896_v30, %v1902_v34 }
 0xc0e   :  { %v1904_v26 = vsel %vm262_vm4, %v1897_v40, %v1903_v36 }
 0xc12   :  { %v1884_v41 = vpop.permute.xlu1 %1883 }
 0xc13   :  { %v1898_v42 = vperm.slane %v1884_v41, %v3368_v44 }
 0xc15   :  { %v1905_v20 = vsel %vm264_vm5, %v1898_v42, %v1904_v26 }
 0xc16   :  { %v1906_v3 = vsel %vm266_vm6, %v1899_v43, %v1905_v20 }
 0xc17   :  { %v1907_v47 = vsel %vm268_vm7, %v1900_v12, %v1906_v3 }
 0xc1a   :  { %v1893_v13 = vpop.permute.xlu1 %1892 }
 0xc1b   :  { %v1901_v2 = vperm.slane %v1893_v13, %v3368_v44 }
 0xc1d   :  { %v1908_v53 = vsel %vm270_vm8, %v1901_v2, %v1907_v47 }
 0xc1e   :  { %v1910_v56 = vadd.f32 %v1908_v53, %v1869_v52 }
 0xc20   :  { %vm1911_vm12 = vcmp.ge.f32.partialorder %v1910_v56, 0.0  ;;  %v1912_v57 = vmul.f32 0.2, %v1910_v56 }
 0xc22   :  { %v1913_v6 = vsel %vm1911_vm12, %v1910_v56, %v1912_v57 }
 0xc23   :  { %v1914_v54 = vadd.f32 %v1913_v6, %v3388_v16 }
 0xc25   :  { %v1915_v58 = vsel %vm278_vm11, %v1914_v54, -inf }
 0xc26   :  { %1916 = vmax.xlane.f32.xlu1 %v1915_v58 }
 0xc7f   :  { %v2112_v59 = vpop.xlane.xlu0 %2111 }
 0xc80   :  { %v2113_v55 = vsub.f32 %v2109_v38, %v2112_v59 }
 0xc82   :  { %v2114_v14 = vmul.f32 1.442695, %v2113_v55  ;;  %v3194_v55 = vmov 9  }
 0xc84   :  { %3066 = vpow2.f32 %v2114_v14  ;;  %v3195_v14 = vmov 8  }
 0xc8a   :  { %v3067_v51 = vpop.eup %3066 }
 0xc8b   :  { %v2116_v1 = vsel %vm278_vm11, %v3067_v51, 0.0 }
 0xc8c   :  { %2117 = vadd.xlane.f32.xlu2 %v2116_v1 }
 0xc99   :  { %v1917_v63 = vpop.xlane.xlu1 %1916 }
 0xc9a   :  { %v1918_v4 = vsub.f32 %v1914_v54, %v1917_v63 }
 0xc9c   :  { %v1919_v45 = vmul.f32 1.442695, %v1918_v4  ;;  %v3907_v4 = vld [vmem:[%s4133_s2 + $0x8] sm:$0xff] }
 0xc9e   :  { %3068 = vpow2.f32 %v1919_v45 }
 0xca4   :  { %v3069_v0 = vpop.eup %3068 }
 0xca5   :  { %v1921_v5 = vsel %vm278_vm11, %v3069_v0, 0.0 }
 0xca6   :  { %1922 = vadd.xlane.f32.xlu0 %v1921_v5 }
 0xcff   :  { %v2118_v8 = vpop.xlane.xlu2 %2117 }
 0xd00   :  { %3070 = vrcp.f32 %v2118_v8  ;;  %v2130_v11 = vand.u32 2147483648, %v2118_v8  ;;  %v2128_v39 = vand.u32 2147483647, %v2118_v8  ;;  %vm2124_vm14 = vweird.f32 %v2118_v8 }
 0xd02   :  { %v2131_v38 = vor.u32 1.1754944e-38, %v2130_v11  ;;  %vm2129_vm9 = vcmp.eq.f32.partialorder %v2128_v39, 8.507059e+37 }
 0xd06   :  { %v3071_v60 = vpop.eup %3070 }
 0xd07   :  { %v2120_v48 = vmul.f32 %v3071_v60, %v2118_v8  ;;  %vm2125_vm13 = vweird.f32 %v3071_v60 }
 0xd08   :  { %vm2126_vm15 = vmor %vm2124_vm14, %vm2125_vm13 }
 0xd09   :  { %v2121_v7 = vsub.f32 1.0, %v2120_v48 }
 0xd0b   :  { %v2122_v22 = vmul.f32 %v3071_v60, %v2121_v7 }
 0xd0d   :  { %v2123_v9 = vadd.f32 %v3071_v60, %v2122_v22  ;;  %v3928_v22 = vld [vmem:[%s4133_s2 + $0x20] sm:$0xff] }
 0xd0f   :  { %v2127_v10 = vsel %vm2126_vm15, %v3071_v60, %v2123_v9 }
 0xd10   :  { %v2132_v24 = vsel %vm2129_vm9, %v2131_v38, %v2127_v10 }
 0xd11   :  { %v2133_v28 = vmul.f32 %v3067_v51, %v2132_v24  ;;  %v3934_v24 = vld [vmem:[%s4133_s2 + $0x18] sm:$0xff] }
 0xd13   :  { %v2141_v15 = vperm.slane %v2133_v28, 1  ;;  %v2134_v30 = vperm.slane %v2133_v28, 0  ;;  %v2148_v62 = vperm.slane %v2133_v28, 2  ;;  %v2162_v34 = vperm.slane %v2133_v28, 4 }
 0xd14   :  { %v2155_v36 = vperm.slane %v2133_v28, 3  ;;  %v2176_v26 = vperm.slane %v2133_v28, 6  ;;  %v2169_v20 = vperm.slane %v2133_v28, 5  ;;  %v2183_v52 = vperm.slane %v2133_v28, 7 }
 0xd15   :  { %2146 = vperm.xlu2 %3023, %v2141_v15   ;;  %2139 = vperm.xlu1 %3022, %v2134_v30  }
 0xd16   :  { %2153 = vperm.xlu0 %3024, %v2148_v62   ;;  %v3941_v62 = vld [vmem:[%s4133_s2 + $0x30] sm:$0xff] }
 0xd19   :  { %v1923_v32 = vpop.xlane.xlu0 %1922 }
 0xd1a   :  { %3072 = vrcp.f32 %v1923_v32  ;;  %v1935_v43 = vand.u32 2147483648, %v1923_v32  ;;  %v1933_v49 = vand.u32 2147483647, %v1923_v32  ;;  %vm1929_vm12 = vweird.f32 %v1923_v32 }
 0xd1c   :  { %v1936_v3 = vor.u32 1.1754944e-38, %v1935_v43  ;;  %vm1934_vm14 = vcmp.eq.f32.partialorder %v1933_v49, 8.507059e+37 }
 0xd1d   :  { %2167 = vperm.xlu2 %3023, %v2162_v34   ;;  %2160 = vperm.xlu1 %3022, %v2155_v36  }
 0xd20   :  { %v3073_v41 = vpop.eup %3072 }
 0xd21   :  { %v1925_v40 = vmul.f32 %v3073_v41, %v1923_v32  ;;  %vm1930_vm10 = vweird.f32 %v3073_v41 }
 0xd22   :  { %vm1931_vm13 = vmor %vm1929_vm12, %vm1930_vm10 }
 0xd23   :  { %v1926_v42 = vsub.f32 1.0, %v1925_v40 }
 0xd25   :  { %v1927_v46 = vmul.f32 %v3073_v41, %v1926_v42  ;;  %2181 = vperm.xlu2 %3023, %v2176_v26   ;;  %2174 = vperm.xlu1 %3022, %v2169_v20  }
 0xd27   :  { %v1928_v50 = vadd.f32 %v3073_v41, %v1927_v46 }
 0xd29   :  { %v1932_v12 = vsel %vm1931_vm13, %v3073_v41, %v1928_v50 }
 0xd2a   :  { %v1937_v13 = vsel %vm1934_vm14, %v1936_v3, %v1932_v12 }
 0xd2b   :  { %v3879_v2 = vmul.f32 %v3069_v0, %v1937_v13 }
 0xd2d   :  { %2188 = vperm.xlu1 %3022, %v2183_v52   ;;  %v1946_v47 = vperm.slane %v3879_v2, 1  ;;  %v1939_v53 = vperm.slane %v3879_v2, 0  ;;  %v1953_v56 = vperm.slane %v3879_v2, 2  ;;  %v1967_v57 = vperm.slane %v3879_v2, 4 }
 0xd2e   :  { %v1960_v6 = vperm.slane %v3879_v2, 3  ;;  %v1974_v54 = vperm.slane %v3879_v2, 5  ;;  %v1988_v58 = vperm.slane %v3879_v2, 7  ;;  %v1981_v59 = vperm.slane %v3879_v2, 6 }
 0xd2f   :  { %1951 = vperm.xlu0 %3024, %v1946_v47   ;;  %1944 = vperm.xlu2 %3023, %v1939_v53   ;;  %v3949_v47 = vld [vmem:[%s4133_s2 + $0x28] sm:$0xff] }
 0xd35   :  { %1958 = vperm.xlu1 %3022, %v1953_v56  }
 0xd37   :  { %1972 = vperm.xlu0 %3024, %v1967_v57   ;;  %1965 = vperm.xlu2 %3023, %v1960_v6  }
 0xd3d   :  { %1979 = vperm.xlu1 %3022, %v1974_v54  }
 0xd3f   :  { %1993 = vperm.xlu0 %3024, %v1988_v58   ;;  %1986 = vperm.xlu2 %3023, %v1981_v59  }
 0xd45   :  { %2294 = vrot.lane.b32.xlu1 %v3833_v61, %s3187_s1 }
 0xd46   :  { %3025 = vset.pattern.permute.xlu1 %v3194_v55 }
 0xd47   :  { %2255 = vrot.lane.b32.xlu2 %v2133_v28, %s3179_s18  ;;  %3027 = vset.pattern.permute.xlu0 %v3194_v55 }
 0xd48   :  { %3026 = vset.pattern.permute.xlu2 %v3194_v55 }
 0xd4d   :  { %2612 = vperm.xlu1 %3025, %v3325_v18  }
 0xd4f   :  { %2615 = vperm.xlu2 %3026, %v3331_v21  }
 0xd55   :  { %2621 = vperm.xlu1 %3025, %v3338_v25  }
 0xd57   :  { %2624 = vperm.xlu2 %3026, %v3341_v27  }
 0xd5d   :  { %2627 = vperm.xlu1 %3025, %v3344_v29  }
 0xd5f   :  { %2630 = vperm.xlu2 %3026, %v3347_v31  }
 0xd65   :  { %3028 = vset.pattern.permute.xlu1 %v3182_v33 }
 0xd67   :  { %3029 = vset.pattern.permute.xlu2 %v3195_v14 }
 0xd68   :  { %2417 = vperm.xlu2 %3029, %v3325_v18   ;;  %v3913_v18 = vld [vmem:[%s4133_s2] sm:$0xff] }
 0xd6f   :  { %v2147_v51 = vpop.permute.xlu2 %2146 }
 0xd70   :  { %2426 = vperm.xlu2 %3029, %v3338_v25   ;;  %v2191_v33 = vmul.f32 %v3907_v4, %v2147_v51 }
 0xd72   :  { %v2205_v5 = vsel %vm83_vm0, %v2191_v33, 0.0 }
 0xd73   :  { %v2206_v11 = vrot.slane %v2205_v5, 4 }
 0xd75   :  { %v2207_v15 = vadd.f32 %v2206_v11, %v2205_v5 }
 0xd77   :  { %v2168_v1 = vpop.permute.xlu2 %2167  ;;  %v2208_v26 = vrot.slane %v2207_v15, 2 }
 0xd78   :  { %2432 = vperm.xlu2 %3029, %v3344_v29   ;;  %v3919_v29 = vld [vmem:[%s4133_s2 + $0x10] sm:$0xff]  ;;  %v2194_v39 = vmul.f32 %v3928_v22, %v2168_v1 }
 0xd79   :  { %v2209_v56 = vadd.f32 %v2208_v26, %v2207_v15 }
 0xd7a   :  { %v2226_v30 = vsel %vm83_vm0, %v2194_v39, 0.0 }
 0xd7b   :  { %v2227_v42 = vrot.slane %v2226_v30, 4  ;;  %v2210_v33 = vrot.slane %v2209_v56, 1 }
 0xd7d   :  { %v2228_v13 = vadd.f32 %v2227_v42, %v2226_v30 }
 0xd7f   :  { %v2182_v63 = vpop.permute.xlu2 %2181  ;;  %v2229_v1 = vrot.slane %v2228_v13, 2 }
 0xd80   :  { %3032 = vset.pattern.permute.xlu2 %v3184_v37  ;;  %v2196_v32 = vmul.f32 %v3941_v62, %v2182_v63 }
 0xd81   :  { %v2230_v11 = vadd.f32 %v2229_v1, %v2228_v13 }
 0xd82   :  { %v2240_v20 = vsel %vm83_vm0, %v2196_v32, 0.0 }
 0xd83   :  { %v2241_v52 = vrot.slane %v2240_v20, 4 }
 0xd85   :  { %v2242_v63 = vadd.f32 %v2241_v52, %v2240_v20 }
 0xd87   :  { %v2140_v45 = vpop.permute.xlu1 %2139  ;;  %v2243_v39 = vrot.slane %v2242_v63, 2 }
 0xd88   :  { %v2154_v0 = vpop.permute.xlu0 %2153  ;;  %v2190_v25 = vmul.f32 %v3913_v18, %v2140_v45 }
 0xd89   :  { %v2192_v37 = vmul.f32 %v3919_v29, %v2154_v0  ;;  %v1945_v7 = vpop.permute.xlu2 %1944 }
 0xd8a   :  { %v2198_v8 = vsel %vm83_vm0, %v2190_v25, 0.0  ;;  %v1995_v57 = vmul.f32 %v3913_v18, %v1945_v7 }
 0xd8b   :  { %v2212_v60 = vsel %vm83_vm0, %v2192_v37, 0.0  ;;  %v2199_v48 = vrot.slane %v2198_v8, 4 }
 0xd8c   :  { %v2213_v9 = vrot.slane %v2212_v60, 4  ;;  %v2003_v45 = vsel %vm83_vm0, %v1995_v57, 0.0 }
 0xd8d   :  { %v2200_v38 = vadd.f32 %v2199_v48, %v2198_v8 }
 0xd8e   :  { %v2214_v34 = vadd.f32 %v2213_v9, %v2212_v60  ;;  %v2004_v9 = vrot.slane %v2003_v45, 4 }
 0xd8f   :  { %v2161_v10 = vpop.permute.xlu1 %2160  ;;  %v2201_v41 = vrot.slane %v2200_v38, 2 }
 0xd90   :  { %v2193_v28 = vmul.f32 %v3934_v24, %v2161_v10  ;;  %v2215_v49 = vrot.slane %v2214_v34, 2  ;;  %v2211_v10 = vadd.f32 %v2210_v33, %v2209_v56 }
 0xd91   :  { %v1966_v46 = vpop.permute.xlu2 %1965  ;;  %v2202_v50 = vadd.f32 %v2201_v41, %v2200_v38 }
 0xd92   :  { %v2219_v36 = vsel %vm83_vm0, %v2193_v28, 0.0  ;;  %v2216_v6 = vadd.f32 %v2215_v49, %v2214_v34  ;;  %v1998_v54 = vmul.f32 %v3934_v24, %v1966_v46  ;;  %v2244_v46 = vadd.f32 %v2243_v39, %v2242_v63 }
 0xd93   :  { %v2220_v40 = vrot.slane %v2219_v36, 4  ;;  %v2203_v59 = vrot.slane %v2202_v50, 1  ;;  %v2005_v49 = vadd.f32 %v2004_v9, %v2003_v45 }
 0xd94   :  { %v2217_v25 = vrot.slane %v2216_v6, 1  ;;  %v2024_v37 = vsel %vm83_vm0, %v1998_v54, 0.0 }
 0xd95   :  { %v2221_v43 = vadd.f32 %v2220_v40, %v2219_v36  ;;  %v2204_v5 = vadd.f32 %v2203_v59, %v2202_v50  ;;  %v2025_v28 = vrot.slane %v2024_v37, 4 }
 0xd96   :  { %v2218_v32 = vadd.f32 %v2217_v25, %v2216_v6 }
 0xd97   :  { %v2222_v3 = vrot.slane %v2221_v43, 2  ;;  %v2175_v12 = vpop.permute.xlu1 %2174  ;;  %v2283_v40 = vsel %vm258_vm2, %v2211_v10, %v2204_v5 }
 0xd98   :  { %v2195_v53 = vmul.f32 %v3949_v47, %v2175_v12 }
 0xd99   :  { %v2223_v55 = vadd.f32 %v2222_v3, %v2221_v43  ;;  %v1987_v48 = vpop.permute.xlu2 %1986  ;;  %v2231_v43 = vrot.slane %v2230_v11, 1  ;;  %v2026_v3 = vadd.f32 %v2025_v28, %v2024_v37 }
 0xd9a   :  { %v2233_v58 = vsel %vm83_vm0, %v2195_v53, 0.0  ;;  %v2001_v34 = vmul.f32 %v3941_v62, %v1987_v48  ;;  %v2284_v53 = vsel %vm260_vm3, %v2218_v32, %v2283_v40 }
 0xd9b   :  { %v2234_v51 = vrot.slane %v2233_v58, 4  ;;  %v2224_v8 = vrot.slane %v2223_v55, 1  ;;  %v2232_v59 = vadd.f32 %v2231_v43, %v2230_v11  ;;  %v2027_v63 = vrot.slane %v2026_v3, 2 }
 0xd9c   :  { %v2045_v52 = vsel %vm83_vm0, %v2001_v34, 0.0 }
 0xd9d   :  { %v2235_v0 = vadd.f32 %v2234_v51, %v2233_v58  ;;  %v2225_v42 = vadd.f32 %v2224_v8, %v2223_v55  ;;  %v2245_v55 = vrot.slane %v2244_v46, 1  ;;  %v2006_v51 = vrot.slane %v2005_v49, 2 }
 0xd9e   :  { %v2046_v25 = vrot.slane %v2045_v52, 4 }
 0xd9f   :  { %v2236_v60 = vrot.slane %v2235_v0, 2  ;;  %v2189_v7 = vpop.permute.xlu1 %2188  ;;  %v2285_v58 = vsel %vm262_vm4, %v2225_v42, %v2284_v53  ;;  %v2246_v39 = vadd.f32 %v2245_v55, %v2244_v46  ;;  %v2007_v9 = vadd.f32 %v2006_v51, %v2005_v49 }
 0xda0   :  { %v2197_v38 = vmul.f32 %v3817_v17, %v2189_v7  ;;  %v2286_v8 = vsel %vm264_vm5, %v2232_v59, %v2285_v58  ;;  %v2047_v32 = vadd.f32 %v2046_v25, %v2045_v52 }
 0xda1   :  { %v2237_v15 = vadd.f32 %v2236_v60, %v2235_v0  ;;  %v1952_v30 = vpop.permute.xlu0 %1951 }
 0xda2   :  { %v2247_v36 = vsel %vm83_vm0, %v2197_v38, 0.0  ;;  %v1996_v41 = vmul.f32 %v3907_v4, %v1952_v30  ;;  %v2028_v30 = vadd.f32 %v2027_v63, %v2026_v3 }
 0xda3   :  { %v2238_v26 = vrot.slane %v2237_v15, 1  ;;  %v2248_v20 = vrot.slane %v2247_v36, 4 }
 0xda4   :  { %v2010_v50 = vsel %vm83_vm0, %v1996_v41, 0.0 }
 0xda5   :  { %v2249_v12 = vadd.f32 %v2248_v20, %v2247_v36  ;;  %v2011_v13 = vrot.slane %v2010_v50, 4  ;;  %v2239_v56 = vadd.f32 %v2238_v26, %v2237_v15  ;;  %v2008_v20 = vrot.slane %v2007_v9, 1 }
 0xda7   :  { %v2250_v57 = vrot.slane %v2249_v12, 2  ;;  %v2012_v6 = vadd.f32 %v2011_v13, %v2010_v50  ;;  %v1959_v54 = vpop.permute.xlu1 %1958  ;;  %v2287_v11 = vsel %vm266_vm6, %v2239_v56, %v2286_v8  ;;  %v2029_v50 = vrot.slane %v2028_v30, 1 }
 0xda8   :  { %v1997_v1 = vmul.f32 %v3919_v29, %v1959_v54  ;;  %v2288_v36 = vsel %vm268_vm7, %v2246_v39, %v2287_v11  ;;  %v2009_v54 = vadd.f32 %v2008_v20, %v2007_v9 }
 0xda9   :  { %v2251_v33 = vadd.f32 %v2250_v57, %v2249_v12  ;;  %v2013_v45 = vrot.slane %v2012_v6, 2  ;;  %v1973_v0 = vpop.permute.xlu0 %1972  ;;  %v2048_v12 = vrot.slane %v2047_v32, 2  ;;  %v2301_v57 = vld [vmem:[#allocation5 + $0x78] sm:$0xff]  ;;  %v2030_v55 = vadd.f32 %v2029_v50, %v2028_v30 }
 0xdaa   :  { %v2017_v37 = vsel %vm83_vm0, %v1997_v1, 0.0  ;;  %v1999_v5 = vmul.f32 %v3928_v22, %v1973_v0  ;;  %2317 = vmatpush.msra.mxu3 %v2301_v57 }
 0xdab   :  { %v2252_v60 = vrot.slane %v2251_v33, 1  ;;  %v2014_v48 = vadd.f32 %v2013_v45, %v2012_v6  ;;  %v2018_v7 = vrot.slane %v2017_v37, 4  ;;  %v2300_v6 = vld [vmem:[#allocation5 + $0x70] sm:$0xff]  ;;  %v2049_v51 = vadd.f32 %v2048_v12, %v2047_v32  ;;  %v2256_v45 = vpop.permute.xlu2 %2255 }
 0xdac   :  { %v2031_v38 = vsel %vm83_vm0, %v1999_v5, 0.0  ;;  %2318 = vmatpush.msra.mxu3 %v2300_v6  ;;  %v2298_v5 = vld [vmem:[#allocation5 + $0x60] sm:$0xff] }
 0xdad   :  { %v2019_v10 = vadd.f32 %v2018_v7, %v2017_v37  ;;  %v2032_v28 = vrot.slane %v2031_v38, 4  ;;  %v2253_v15 = vadd.f32 %v2252_v60, %v2251_v33  ;;  %v2015_v34 = vrot.slane %v2014_v48, 1  ;;  %v2299_v33 = vld [vmem:[#allocation5 + $0x68] sm:$0xff] }
 0xdae   :  { %2319 = vmatpush.msra.mxu3 %v2299_v33  ;;  %v2258_v7 = vsel %vm278_vm11, %v3879_v2, %v2256_v45 }
 0xdaf   :  { %v2020_v41 = vrot.slane %v2019_v10, 2  ;;  %v2033_v40 = vadd.f32 %v2032_v28, %v2031_v38  ;;  %v1980_v42 = vpop.permute.xlu1 %1979  ;;  %v2289_v26 = vsel %vm270_vm8, %v2253_v15, %v2288_v36  ;;  %v2016_v13 = vadd.f32 %v2015_v34, %v2014_v48 }
 0xdb0   :  { %v2000_v43 = vmul.f32 %v3949_v47, %v1980_v42  ;;  %2290 = vrot.lane.b32.xlu0 %v2289_v26, %s3189_s7  ;;  %v2050_v48 = vrot.slane %v2049_v51, 1  ;;  %2320 = vmatpush.msra.mxu3 %v2298_v5 }
 0xdb1   :  { %v2021_v46 = vadd.f32 %v2020_v41, %v2019_v10  ;;  %v2034_v49 = vrot.slane %v2033_v40, 2  ;;  %v2267_v1 = vsel %vm258_vm2, %v2016_v13, %v2009_v54  ;;  %v3040_v13 = vld [vmem:[%s4139_s8 + $0x3] ss:$0 sm:$0xff] }
 0xdb2   :  { %v2038_v3 = vsel %vm83_vm0, %v2000_v43, 0.0  ;;  %v2051_v38 = vadd.f32 %v2050_v48, %v2049_v51  ;;  %v2359_v43 = vld [vmem:[#allocation2 + $0x90] sm:$0xff] }
 0xdb3   :  { %v2022_v52 = vrot.slane %v2021_v46, 1  ;;  %v2035_v53 = vadd.f32 %v2034_v49, %v2033_v40  ;;  %v2039_v56 = vrot.slane %v2038_v3, 4  ;;  %v2616_v6 = vpop.permute.xlu2 %2615 }
 0xdb5   :  { %v2023_v58 = vadd.f32 %v2022_v52, %v2021_v46  ;;  %v2040_v59 = vadd.f32 %v2039_v56, %v2038_v3  ;;  %v2036_v63 = vrot.slane %v2035_v53, 1  ;;  %v2357_v46 = vld [vmem:[#allocation2 + $0x80] sm:$0xff]  ;;  %v2955_v56 = vld [vmem:[%s4135_s4 + $0x8] sm:$0x3] }
 0xdb7   :  { %v2268_v0 = vsel %vm260_vm3, %v2023_v58, %v2267_v1  ;;  %v2041_v25 = vrot.slane %v2040_v59, 2  ;;  %v2295_v37 = vpop.permute.xlu1 %2294  ;;  %v2037_v11 = vadd.f32 %v2036_v63, %v2035_v53 }
 0xdb8   :  { %2618 = vperm.xlu0 %3027, %v3335_v23   ;;  %2342 = vmatpush.msrb.mxu2 %v2295_v37  ;;  %v2269_v8 = vsel %vm262_vm4, %v2030_v55, %v2268_v0 }
 0xdb9   :  { %v2042_v60 = vadd.f32 %v2041_v25, %v2040_v59  ;;  %v2270_v10 = vsel %vm264_vm5, %v2037_v11, %v2269_v8 }
 0xdba   :  { %2343 = vmatpush.msrb.mxu2 %v3833_v61  ;;  %v1994_v61 = vpop.permute.xlu0 %1993 }
 0xdbb   :  { %v2043_v39 = vrot.slane %v2042_v60, 1  ;;  %2952 = vmatmul.msk.f32.vlgmr.msrb.gmra.mxu2 %vm83_vm0, %v2258_v7  ;;  %v2002_v2 = vmul.f32 %v3817_v17, %v1994_v61  ;;  %v2358_v17 = vld [vmem:[#allocation2 + $0x88] sm:$0xff]  ;;  %v2625_v58 = vpop.permute.xlu2 %2624 }
 0xdbc   :  { %v2639_v45 = vperm.slane %v2625_v58, %v3368_v44 }
 0xdbd   :  { %v2044_v9 = vadd.f32 %v2043_v39, %v2042_v60  ;;  %v2052_v30 = vsel %vm83_vm0, %v2002_v2, 0.0 }
 0xdbe   :  { %v2053_v32 = vrot.slane %v2052_v30, 4 }
 0xdbf   :  { %v2271_v28 = vsel %vm266_vm6, %v2044_v9, %v2270_v10  ;;  %v2613_v54 = vpop.permute.xlu1 %2612 }
 0xdc0   :  { %2633 = vperm.xlu0 %3027, %v3354_v35   ;;  %v2272_v15 = vsel %vm268_vm7, %v2051_v38, %v2271_v28  ;;  %v2054_v34 = vadd.f32 %v2053_v32, %v2052_v30  ;;  %v2635_v51 = vperm.slane %v2613_v54, %v3368_v44 }
 0xdc2   :  { %v2055_v36 = vrot.slane %v2054_v34, 2 }
 0xdc3   :  { %v2631_v63 = vpop.permute.xlu2 %2630 }
 0xdc4   :  { %v2056_v41 = vadd.f32 %v2055_v36, %v2054_v34  ;;  %v2641_v11 = vperm.slane %v2631_v63, %v3368_v44 }
 0xdc6   :  { %v2057_v40 = vrot.slane %v2056_v41, 1 }
 0xdc7   :  { %v2622_v59 = vpop.permute.xlu1 %2621 }
 0xdc8   :  { %3030 = vset.pattern.permute.xlu0 %v3195_v14  ;;  %v2058_v42 = vadd.f32 %v2057_v40, %v2056_v41 }
 0xdc9   :  { %2420 = vperm.xlu0 %3030, %v3331_v21  }
 0xdca   :  { %v2273_v20 = vsel %vm270_vm8, %v2058_v42, %v2272_v15 }
 0xdcb   :  { %v2418_v37 = vpop.permute.xlu2 %2417 }
 0xdcc   :  { %v2440_v42 = vperm.slane %v2418_v37, %v3368_v44 }
 0xdcf   :  { %v2628_v33 = vpop.permute.xlu1 %2627 }
 0xdd0   :  { %v2640_v5 = vperm.slane %v2628_v33, %v3368_v44 }
 0xdd1   :  { %2435 = vperm.xlu0 %3030, %v3347_v31   ;;  %v2360_v31 = vld [vmem:[#allocation2 + $0x98] sm:$0xff] }
 0xdd2   :  { %2376 = vmatpush.msrb.mxu1 %v2360_v31 }
 0xdd3   :  { %v2427_v61 = vpop.permute.xlu2 %2426 }
 0xdd4   :  { %2377 = vmatpush.msrb.mxu1 %v2359_v43  ;;  %v2443_v43 = vperm.slane %v2427_v61, %v3368_v44 }
 0xdd6   :  { %2378 = vmatpush.msrb.mxu1 %v2358_v17 }
 0xdd8   :  { %2379 = vmatpush.msrb.mxu1 %v2357_v46 }
 0xdd9   :  { %3035 = vset.pattern.permute.xlu0 %v3412_v19 }
 0xe22   :  { %v2291_v26 = vpop.permute.xlu0 %2290 }
 0xe23   :  { %v2293_v21 = vsel %vm83_vm0, %v2273_v20, %v2291_v26  ;;  %v2433_v26 = vpop.permute.xlu2 %2432 }
 0xe24   :  { %2951 = vmatmul.msk.f32.vlgmr.msra.gmra.mxu3 %vm153_vm1, %v2293_v21 }
 0xe2a   :  { %v2619_v55 = vpop.permute.xlu0 %2618 }
 0xe2b   :  { %v2637_v1 = vperm.slane %v2619_v55, %v3368_v44 }
 0xe32   :  { %v2634_v25 = vpop.permute.xlu0 %2633 }
 0xe33   :  { %v2642_v48 = vperm.slane %v2634_v25, %v3368_v44 }
 0xe3b   :  { %v2421_v32 = vpop.permute.xlu0 %2420 }
 0xe3c   :  { %v2441_v41 = vperm.slane %v2421_v32, %v3368_v44 }
 0xe3e   :  { %v2345_v49 = vpop.f32.mrf.mxu2  ;;  %v2448_v20 = vsel %vm258_vm2, %v2441_v41, %v2440_v42 }
 0xea7   :  { %v2322_v50 = vpop.f32.mrf.mxu3 }
 0xea8   :  { %v2346_v12 = vadd.f32 %v2345_v49, %v2322_v50  ;;  %v2445_v50 = vperm.slane %v2433_v26, %v3368_v44 }
 0xeaa   :  { %v2348_v3 = vmul.f32 0.5, %v2346_v12  ;;  %v2436_v12 = vpop.permute.xlu0 %2435 }
 0xeac   :  { %v2354_v52 = vadd.f32 %v3040_v13, %v2348_v3 }
 0xeae   :  { %v2355_v53 = vmax.f32 %v2354_v52, 0.0 }
 0xeb0   :  { %2954 = vmatmul.msk.f32.vlgmr.msrb.gmra.mxu1 %vm153_vm1, %v2355_v53  ;;  %2956 = vmatpush.xpose.msk.msrb.mxu3 %vm153_vm1, %v2355_v53  ;;  %v2446_v53 = vperm.slane %v2436_v12, %v3368_v44 }
 0xeb3   :  { %2957 = vmatmul.msk.f32.vlgmr.msrb.gmra.mxu3 %vm153_vm1, %v2955_v56 }
 0xf2d   :  { %v4007_v57 = vpop.f32.mrf.mxu1 }
 0xf2e   :  { %2411 = vperm.xlu2 %3032, %v4007_v57   ;;  %2606 = vperm.xlu1 %3028, %v4007_v57  }
 0xf36   :  { %3031 = vset.pattern.permute.xlu1 %v3195_v14  ;;  %3033 = vset.pattern.permute.xlu2 %v3412_v19  ;;  %v2636_v14 = vperm.slane %v2616_v6, %v3368_v44  ;;  %v2406_v8 = vpop.f32.mrf.mxu3 }
 0xf37   :  { %2423 = vperm.xlu1 %3031, %v3335_v23   ;;  %v2609_v60 = vperm.slane %v2406_v8, 1  ;;  %v2414_v13 = vperm.slane %v2406_v8, 0 }
 0xf38   :  { %v2643_v23 = vsel %vm258_vm2, %v2636_v14, %v2635_v51 }
 0xf3f   :  { %2429 = vperm.xlu1 %3031, %v3341_v27   ;;  %v2644_v27 = vsel %vm260_vm3, %v2637_v1, %v2643_v23 }
 0xf47   :  { %2438 = vperm.xlu1 %3031, %v3354_v35   ;;  %v2638_v35 = vperm.slane %v2622_v59, %v3368_v44 }
 0xf4f   :  { %3034 = vset.pattern.permute.xlu1 %v3412_v19  ;;  %v2645_v19 = vsel %vm262_vm4, %v2638_v35, %v2644_v27 }
 0xf50   :  { %v2646_v0 = vsel %vm264_vm5, %v2639_v45, %v2645_v19 }
 0xf51   :  { %v2647_v7 = vsel %vm266_vm6, %v2640_v5, %v2646_v0 }
 0xf52   :  { %v2648_v9 = vsel %vm268_vm7, %v2641_v11, %v2647_v7 }
 0xf53   :  { %v2649_v10 = vsel %vm270_vm8, %v2642_v48, %v2648_v9 }
 0xf88   :  { %v2412_v3 = vpop.permute.xlu2 %2411 }
 0xf89   :  { %v2415_v54 = vadd.f32 %v2414_v13, %v2412_v3 }
 0xfa0   :  { %v2607_v39 = vpop.permute.xlu1 %2606 }
 0xfa1   :  { %v2610_v38 = vadd.f32 %v2609_v60, %v2607_v39 }
 0xfa3   :  { %v2651_v28 = vadd.f32 %v2649_v10, %v2610_v38 }
 0xfa5   :  { %v2653_v15 = vmul.f32 0.2, %v2651_v28  ;;  %vm2652_vm15 = vcmp.ge.f32.partialorder %v2651_v28, 0.0 }
 0xfa7   :  { %v2654_v2 = vsel %vm2652_vm15, %v2651_v28, %v2653_v15 }
 0xfa8   :  { %v2655_v30 = vadd.f32 %v2654_v2, %v3388_v16 }
 0xfa9   :  { %v2424_v34 = vpop.permute.xlu1 %2423 }
 0xfaa   :  { %v2656_v36 = vsel %vm278_vm11, %v2655_v30, -inf  ;;  %v2442_v40 = vperm.slane %v2424_v34, %v3368_v44 }
 0xfab   :  { %2657 = vmax.xlane.f32.xlu0 %v2656_v36 }
 0xfac   :  { %v2449_v21 = vsel %vm260_vm3, %v2442_v40, %v2448_v20 }
 0xfad   :  { %v2450_v46 = vsel %vm262_vm4, %v2443_v43, %v2449_v21 }
 0xfb1   :  { %v2430_v31 = vpop.permute.xlu1 %2429 }
 0xfb2   :  { %v2444_v17 = vperm.slane %v2430_v31, %v3368_v44 }
 0xfb4   :  { %v2451_v49 = vsel %vm264_vm5, %v2444_v17, %v2450_v46 }
 0xfb5   :  { %v2452_v52 = vsel %vm266_vm6, %v2445_v50, %v2451_v49 }
 0xfb6   :  { %v2453_v58 = vsel %vm268_vm7, %v2446_v53, %v2452_v52 }
 0xfb9   :  { %v2439_v56 = vpop.permute.xlu1 %2438 }
 0xfba   :  { %v2447_v6 = vperm.slane %v2439_v56, %v3368_v44 }
 0xfbc   :  { %v2454_v59 = vsel %vm270_vm8, %v2447_v6, %v2453_v58 }
 0xfbd   :  { %v2456_v55 = vadd.f32 %v2454_v59, %v2415_v54 }
 0xfbf   :  { %vm2457_vm9 = vcmp.ge.f32.partialorder %v2456_v55, 0.0  ;;  %v2458_v51 = vmul.f32 0.2, %v2456_v55 }
 0xfc1   :  { %v2459_v1 = vsel %vm2457_vm9, %v2456_v55, %v2458_v51 }
 0xfc2   :  { %v2460_v14 = vadd.f32 %v2459_v1, %v3388_v16 }
 0xfc4   :  { %v2461_v63 = vsel %vm278_vm11, %v2460_v14, -inf }
 0xfc5   :  { %2462 = vmax.xlane.f32.xlu1 %v2461_v63 }
0x101e   :  { %v2658_v23 = vpop.xlane.xlu0 %2657 }
0x101f   :  { %v2659_v27 = vsub.f32 %v2655_v30, %v2658_v23 }
0x1021   :  { %v2660_v35 = vmul.f32 1.442695, %v2659_v27 }
0x1023   :  { %3074 = vpow2.f32 %v2660_v35 }
0x1029   :  { %v3075_v33 = vpop.eup %3074 }
0x102a   :  { %v2662_v44 = vsel %vm278_vm11, %v3075_v33, 0.0 }
0x102b   :  { %2663 = vadd.xlane.f32.xlu2 %v2662_v44 }
0x1038   :  { %v2463_v19 = vpop.xlane.xlu1 %2462 }
0x1039   :  { %v2464_v45 = vsub.f32 %v2460_v14, %v2463_v19 }
0x103b   :  { %v2465_v0 = vmul.f32 1.442695, %v2464_v45 }
0x103d   :  { %3076 = vpow2.f32 %v2465_v0 }
0x1043   :  { %v3077_v25 = vpop.eup %3076 }
0x1044   :  { %v2467_v37 = vsel %vm278_vm11, %v3077_v25, 0.0 }
0x1045   :  { %2468 = vadd.xlane.f32.xlu0 %v2467_v37  ;;  %v4076_v37 = vld [vmem:[%s4133_s2 + $0x38] sm:$0xff] }
0x109e   :  { %v2664_v16 = vpop.xlane.xlu2 %2663 }
0x109f   :  { %3078 = vrcp.f32 %v2664_v16  ;;  %v2676_v48 = vand.u32 2147483648, %v2664_v16  ;;  %v2674_v11 = vand.u32 2147483647, %v2664_v16  ;;  %vm2670_vm12 = vweird.f32 %v2664_v16 }
0x10a1   :  { %v2677_v9 = vor.u32 1.1754944e-38, %v2676_v48  ;;  %vm2675_vm14 = vcmp.eq.f32.partialorder %v2674_v11, 8.507059e+37 }
0x10a5   :  { %v3079_v5 = vpop.eup %3078 }
0x10a6   :  { %v2666_v8 = vmul.f32 %v3079_v5, %v2664_v16  ;;  %vm2671_vm10 = vweird.f32 %v3079_v5 }
0x10a7   :  { %vm2672_vm13 = vmor %vm2670_vm12, %vm2671_vm10 }
0x10a8   :  { %v2667_v60 = vsub.f32 1.0, %v2666_v8 }
0x10aa   :  { %v2668_v7 = vmul.f32 %v3079_v5, %v2667_v60 }
0x10ac   :  { %v2669_v39 = vadd.f32 %v3079_v5, %v2668_v7 }
0x10ae   :  { %v2673_v38 = vsel %vm2672_vm13, %v3079_v5, %v2669_v39 }
0x10af   :  { %v2678_v10 = vsel %vm2675_vm14, %v2677_v9, %v2673_v38 }
0x10b0   :  { %v2679_v28 = vmul.f32 %v3075_v33, %v2678_v10 }
0x10b2   :  { %v2680_v15 = vperm.slane %v2679_v28, 0  ;;  %v2687_v61 = vperm.slane %v2679_v28, 1  ;;  %v2694_v2 = vperm.slane %v2679_v28, 2  ;;  %v2701_v32 = vperm.slane %v2679_v28, 3 }
0x10b3   :  { %v2708_v34 = vperm.slane %v2679_v28, 4  ;;  %v2715_v42 = vperm.slane %v2679_v28, 5  ;;  %v2722_v26 = vperm.slane %v2679_v28, 6  ;;  %v2729_v12 = vperm.slane %v2679_v28, 7 }
0x10b4   :  { %2685 = vperm.xlu2 %3033, %v2680_v15   ;;  %2692 = vperm.xlu1 %3034, %v2687_v61  }
0x10b5   :  { %2699 = vperm.xlu0 %3035, %v2694_v2  }
0x10b8   :  { %v2469_v30 = vpop.xlane.xlu0 %2468 }
0x10b9   :  { %3080 = vrcp.f32 %v2469_v30  ;;  %v2481_v20 = vand.u32 2147483648, %v2469_v30  ;;  %v2479_v31 = vand.u32 2147483647, %v2469_v30  ;;  %vm2475_vm9 = vweird.f32 %v2469_v30 }
0x10bb   :  { %v2482_v17 = vor.u32 1.1754944e-38, %v2481_v20  ;;  %vm2480_vm12 = vcmp.eq.f32.partialorder %v2479_v31, 8.507059e+37 }
0x10bc   :  { %2706 = vperm.xlu2 %3033, %v2701_v32   ;;  %2713 = vperm.xlu1 %3034, %v2708_v34  }
0x10bf   :  { %v3081_v36 = vpop.eup %3080 }
0x10c0   :  { %v2471_v41 = vmul.f32 %v3081_v36, %v2469_v30  ;;  %vm2476_vm15 = vweird.f32 %v3081_v36 }
0x10c1   :  { %vm2477_vm10 = vmor %vm2475_vm9, %vm2476_vm15 }
0x10c2   :  { %v2472_v40 = vsub.f32 1.0, %v2471_v41 }
0x10c4   :  { %v2473_v21 = vmul.f32 %v3081_v36, %v2472_v40  ;;  %2720 = vperm.xlu2 %3033, %v2715_v42   ;;  %2727 = vperm.xlu1 %3034, %v2722_v26  }
0x10c6   :  { %v2474_v43 = vadd.f32 %v3081_v36, %v2473_v21 }
0x10c8   :  { %v2478_v46 = vsel %vm2477_vm10, %v3081_v36, %v2474_v43 }
0x10c9   :  { %v2483_v49 = vsel %vm2480_vm12, %v2482_v17, %v2478_v46 }
0x10ca   :  { %v4053_v50 = vmul.f32 %v3077_v25, %v2483_v49 }
0x10cc   :  { %2734 = vperm.xlu2 %3033, %v2729_v12   ;;  %v2492_v13 = vperm.slane %v4053_v50, 1  ;;  %v2485_v3 = vperm.slane %v4053_v50, 0  ;;  %v2499_v52 = vperm.slane %v4053_v50, 2  ;;  %v2513_v53 = vperm.slane %v4053_v50, 4 }
0x10cd   :  { %v2506_v56 = vperm.slane %v4053_v50, 3  ;;  %v2520_v6 = vperm.slane %v4053_v50, 5  ;;  %v2534_v54 = vperm.slane %v4053_v50, 7  ;;  %v2527_v58 = vperm.slane %v4053_v50, 6 }
0x10ce   :  { %2497 = vperm.xlu0 %3035, %v2492_v13   ;;  %2490 = vperm.xlu1 %3034, %v2485_v3  }
0x10d4   :  { %2504 = vperm.xlu2 %3033, %v2499_v52  }
0x10d6   :  { %2518 = vperm.xlu0 %3035, %v2513_v53   ;;  %2511 = vperm.xlu1 %3034, %v2506_v56  }
0x10dc   :  { %2525 = vperm.xlu2 %3033, %v2520_v6  }
0x10de   :  { %2539 = vperm.xlu0 %3035, %v2534_v54   ;;  %2532 = vperm.xlu1 %3034, %v2527_v58  }
0x10e6   :  { %2801 = vrot.lane.b32.xlu0 %v2679_v28, %s3179_s18  ;;  %2840 = vrot.lane.b32.xlu1 %v4007_v57, %s3187_s1 }
0x110e   :  { %v2686_v59 = vpop.permute.xlu2 %2685 }
0x110f   :  { %v2736_v51 = vmul.f32 %v3913_v18, %v2686_v59 }
0x1111   :  { %v2744_v14 = vsel %vm83_vm0, %v2736_v51, 0.0 }
0x1112   :  { %v2745_v23 = vrot.slane %v2744_v14, 4 }
0x1114   :  { %v2746_v25 = vadd.f32 %v2745_v23, %v2744_v14 }
0x1116   :  { %v2707_v55 = vpop.permute.xlu2 %2706  ;;  %v2747_v9 = vrot.slane %v2746_v25, 2 }
0x1117   :  { %v2739_v63 = vmul.f32 %v3934_v24, %v2707_v55 }
0x1118   :  { %v2748_v41 = vadd.f32 %v2747_v9, %v2746_v25  ;;  %v2845_v9 = vld [vmem:[#allocation5 + $0x88] sm:$0xff] }
0x1119   :  { %v2765_v19 = vsel %vm83_vm0, %v2739_v63, 0.0 }
0x111a   :  { %v2766_v48 = vrot.slane %v2765_v19, 4  ;;  %v2749_v46 = vrot.slane %v2748_v41, 1 }
0x111c   :  { %v2767_v61 = vadd.f32 %v2766_v48, %v2765_v19  ;;  %v2750_v59 = vadd.f32 %v2749_v46, %v2748_v41 }
0x111e   :  { %v2721_v1 = vpop.permute.xlu2 %2720  ;;  %v2768_v20 = vrot.slane %v2767_v61, 2 }
0x111f   :  { %v2741_v45 = vmul.f32 %v3949_v47, %v2721_v1 }
0x1120   :  { %v2769_v52 = vadd.f32 %v2768_v20, %v2767_v61 }
0x1121   :  { %v2779_v11 = vsel %vm83_vm0, %v2741_v45, 0.0 }
0x1122   :  { %v2780_v2 = vrot.slane %v2779_v11, 4  ;;  %v2770_v23 = vrot.slane %v2769_v52, 1 }
0x1124   :  { %v2781_v21 = vadd.f32 %v2780_v2, %v2779_v11 }
0x1126   :  { %v2735_v27 = vpop.permute.xlu2 %2734  ;;  %v2693_v35 = vpop.permute.xlu1 %2692  ;;  %v2782_v53 = vrot.slane %v2781_v21, 2 }
0x1127   :  { %v2700_v33 = vpop.permute.xlu0 %2699  ;;  %v2737_v44 = vmul.f32 %v3907_v4, %v2693_v35  ;;  %v2743_v16 = vmul.f32 %v4076_v37, %v2735_v27 }
0x1128   :  { %v2738_v0 = vmul.f32 %v3919_v29, %v2700_v33  ;;  %v2783_v27 = vadd.f32 %v2782_v53, %v2781_v21 }
0x1129   :  { %v2751_v5 = vsel %vm83_vm0, %v2737_v44, 0.0  ;;  %v2793_v38 = vsel %vm83_vm0, %v2743_v16, 0.0  ;;  %v2847_v16 = vld [vmem:[#allocation5 + $0x98] sm:$0xff] }
0x112a   :  { %v2758_v8 = vsel %vm83_vm0, %v2738_v0, 0.0  ;;  %v2752_v60 = vrot.slane %v2751_v5, 4  ;;  %v2794_v34 = vrot.slane %v2793_v38, 4  ;;  %2863 = vmatpush.msra.mxu2 %v2847_v16 }
0x112b   :  { %v2759_v7 = vrot.slane %v2758_v8, 4 }
0x112c   :  { %v2753_v39 = vadd.f32 %v2752_v60, %v2751_v5  ;;  %v2795_v43 = vadd.f32 %v2794_v34, %v2793_v38  ;;  %v2846_v5 = vld [vmem:[#allocation5 + $0x90] sm:$0xff]  ;;  %v2784_v60 = vrot.slane %v2783_v27, 1 }
0x112d   :  { %v2760_v10 = vadd.f32 %v2759_v7, %v2758_v8  ;;  %v2771_v8 = vadd.f32 %v2770_v23, %v2769_v52  ;;  %2864 = vmatpush.msra.mxu2 %v2846_v5 }
0x112e   :  { %v2754_v28 = vrot.slane %v2753_v39, 2  ;;  %v2714_v15 = vpop.permute.xlu1 %2713  ;;  %v2505_v49 = vpop.permute.xlu2 %2504  ;;  %v2796_v54 = vrot.slane %v2795_v43, 2  ;;  %v2785_v34 = vadd.f32 %v2784_v60, %v2783_v27 }
0x112f   :  { %v2761_v30 = vrot.slane %v2760_v10, 2  ;;  %v2740_v32 = vmul.f32 %v3928_v22, %v2714_v15  ;;  %v2543_v1 = vmul.f32 %v3919_v29, %v2505_v49  ;;  %2865 = vmatpush.msra.mxu2 %v2845_v9 }
0x1130   :  { %v2755_v36 = vadd.f32 %v2754_v28, %v2753_v39  ;;  %v2797_v33 = vadd.f32 %v2796_v54, %v2795_v43 }
0x1131   :  { %v2772_v40 = vsel %vm83_vm0, %v2740_v32, 0.0  ;;  %v2762_v42 = vadd.f32 %v2761_v30, %v2760_v10  ;;  %v2563_v45 = vsel %vm83_vm0, %v2543_v1, 0.0  ;;  %v2844_v32 = vld [vmem:[#allocation5 + $0x80] sm:$0xff] }
0x1132   :  { %v2773_v26 = vrot.slane %v2772_v40, 4  ;;  %v2756_v31 = vrot.slane %v2755_v36, 1  ;;  %v2798_v29 = vrot.slane %v2797_v33, 1  ;;  %v2564_v38 = vrot.slane %v2563_v45, 4  ;;  %2866 = vmatpush.msra.mxu2 %v2844_v32 }
0x1133   :  { %v2763_v12 = vrot.slane %v2762_v42, 1 }
0x1134   :  { %v2774_v17 = vadd.f32 %v2773_v26, %v2772_v40  ;;  %v2757_v56 = vadd.f32 %v2756_v31, %v2755_v36  ;;  %v2799_v26 = vadd.f32 %v2798_v29, %v2797_v33 }
0x1135   :  { %v2764_v51 = vadd.f32 %v2763_v12, %v2762_v42 }
0x1136   :  { %v2775_v13 = vrot.slane %v2774_v17, 2  ;;  %v2728_v3 = vpop.permute.xlu1 %2727  ;;  %v2829_v35 = vsel %vm258_vm2, %v2757_v56, %v2750_v59  ;;  %v2526_v48 = vpop.permute.xlu2 %2525 }
0x1137   :  { %v2742_v6 = vmul.f32 %v3941_v62, %v2728_v3  ;;  %v2830_v19 = vsel %vm260_vm3, %v2764_v51, %v2829_v35  ;;  %v2546_v61 = vmul.f32 %v3949_v47, %v2526_v48 }
0x1138   :  { %v2776_v58 = vadd.f32 %v2775_v13, %v2774_v17  ;;  %v2831_v15 = vsel %vm262_vm4, %v2771_v8, %v2830_v19 }
0x1139   :  { %v2786_v55 = vsel %vm83_vm0, %v2742_v6, 0.0  ;;  %v2584_v47 = vsel %vm83_vm0, %v2546_v61, 0.0 }
0x113a   :  { %v2777_v14 = vrot.slane %v2776_v58, 1  ;;  %v2787_v63 = vrot.slane %v2786_v55, 4  ;;  %v2585_v52 = vrot.slane %v2584_v47, 4 }
0x113c   :  { %v2788_v44 = vadd.f32 %v2787_v63, %v2786_v55  ;;  %v2778_v0 = vadd.f32 %v2777_v14, %v2776_v58  ;;  %v2586_v23 = vadd.f32 %v2585_v52, %v2584_v47  ;;  %v3041_v52 = vld [vmem:[%s4139_s8 + $0x4] ss:$0 sm:$0xff] }
0x113e   :  { %v2789_v25 = vrot.slane %v2788_v44, 2  ;;  %v2832_v30 = vsel %vm264_vm5, %v2778_v0, %v2831_v15  ;;  %v2587_v16 = vrot.slane %v2586_v23, 2 }
0x113f   :  { %v2833_v20 = vsel %vm266_vm6, %v2785_v34, %v2832_v30 }
0x1140   :  { %v2790_v7 = vadd.f32 %v2789_v25, %v2788_v44  ;;  %v2498_v11 = vpop.permute.xlu0 %2497  ;;  %v2491_v39 = vpop.permute.xlu1 %2490 }
0x1141   :  { %v2542_v10 = vmul.f32 %v3907_v4, %v2498_v11  ;;  %v2541_v28 = vmul.f32 %v3913_v18, %v2491_v39  ;;  %v2565_v18 = vadd.f32 %v2564_v38, %v2563_v45 }
0x1142   :  { %v2791_v2 = vrot.slane %v2790_v7, 1 }
0x1143   :  { %v2556_v36 = vsel %vm83_vm0, %v2542_v10, 0.0  ;;  %v2549_v41 = vsel %vm83_vm0, %v2541_v28, 0.0  ;;  %v2566_v3 = vrot.slane %v2565_v18, 2  ;;  %v2588_v28 = vadd.f32 %v2587_v16, %v2586_v23 }
0x1144   :  { %v2792_v40 = vadd.f32 %v2791_v2, %v2790_v7  ;;  %v2557_v42 = vrot.slane %v2556_v36, 4  ;;  %v2550_v4 = vrot.slane %v2549_v41, 4 }
0x1145   :  { %v2567_v63 = vadd.f32 %v2566_v3, %v2565_v18 }
0x1146   :  { %v2558_v21 = vadd.f32 %v2557_v42, %v2556_v36  ;;  %v2551_v31 = vadd.f32 %v2550_v4, %v2549_v41  ;;  %v2834_v43 = vsel %vm268_vm7, %v2792_v40, %v2833_v20  ;;  %v2589_v40 = vrot.slane %v2588_v28, 1 }
0x1147   :  { %v2835_v17 = vsel %vm270_vm8, %v2799_v26, %v2834_v43  ;;  %v2568_v25 = vrot.slane %v2567_v63, 1 }
0x1148   :  { %v2559_v46 = vrot.slane %v2558_v21, 2  ;;  %v2552_v49 = vrot.slane %v2551_v31, 2  ;;  %v2519_v12 = vpop.permute.xlu0 %2518  ;;  %2836 = vrot.lane.b32.xlu2 %v2835_v17, %s3189_s7  ;;  %v2512_v13 = vpop.permute.xlu1 %2511  ;;  %s3196_s7 = smov [#allocation7]  }
0x1149   :  { %v2545_v53 = vmul.f32 %v3928_v22, %v2519_v12  ;;  %v2544_v56 = vmul.f32 %v3934_v24, %v2512_v13  ;;  %v2569_v10 = vadd.f32 %v2568_v25, %v2567_v63  ;;  %s2907_s23 = sshll.u32 %s3196_s7, 4  ;;  %s2908_s23 = int_to_ptr.vmem [resolvable:$true] %s2907_s23 }
0x114a   :  { %v2560_v6 = vadd.f32 %v2559_v46, %v2558_v21  ;;  %v2553_v54 = vadd.f32 %v2552_v49, %v2551_v31  ;;  %v2590_v21 = vadd.f32 %v2589_v40, %v2588_v28 }
0x114b   :  { %v2577_v58 = vsel %vm83_vm0, %v2545_v53, 0.0  ;;  %v2570_v59 = vsel %vm83_vm0, %v2544_v56, 0.0 }
0x114c   :  { %v2561_v55 = vrot.slane %v2560_v6, 1  ;;  %v2554_v51 = vrot.slane %v2553_v54, 1  ;;  %v2578_v1 = vrot.slane %v2577_v58, 4  ;;  %v2571_v14 = vrot.slane %v2570_v59, 4 }
0x114e   :  { %v2562_v27 = vadd.f32 %v2561_v55, %v2560_v6  ;;  %v2555_v35 = vadd.f32 %v2554_v51, %v2553_v54  ;;  %v2579_v33 = vadd.f32 %v2578_v1, %v2577_v58  ;;  %v2572_v44 = vadd.f32 %v2571_v14, %v2570_v59 }
0x1150   :  { %v2813_v22 = vsel %vm258_vm2, %v2562_v27, %v2555_v35  ;;  %v2580_v19 = vrot.slane %v2579_v33, 2  ;;  %v2573_v24 = vrot.slane %v2572_v44, 2  ;;  %v2540_v45 = vpop.permute.xlu0 %2539  ;;  %v2533_v0 = vpop.permute.xlu1 %2532 }
0x1151   :  { %v2548_v5 = vmul.f32 %v4076_v37, %v2540_v45  ;;  %v2547_v8 = vmul.f32 %v3941_v62, %v2533_v0  ;;  %v2814_v37 = vsel %vm260_vm3, %v2569_v10, %v2813_v22 }
0x1152   :  { %v2581_v60 = vadd.f32 %v2580_v19, %v2579_v33  ;;  %v2574_v48 = vadd.f32 %v2573_v24, %v2572_v44 }
0x1153   :  { %v2598_v29 = vsel %vm83_vm0, %v2548_v5, 0.0  ;;  %v2591_v7 = vsel %vm83_vm0, %v2547_v8, 0.0 }
0x1154   :  { %v2582_v11 = vrot.slane %v2581_v60, 1  ;;  %v2575_v39 = vrot.slane %v2574_v48, 1  ;;  %v2599_v9 = vrot.slane %v2598_v29, 4  ;;  %v2592_v38 = vrot.slane %v2591_v7, 4 }
0x1156   :  { %v2583_v15 = vadd.f32 %v2582_v11, %v2581_v60  ;;  %v2576_v61 = vadd.f32 %v2575_v39, %v2574_v48  ;;  %v2600_v2 = vadd.f32 %v2599_v9, %v2598_v29  ;;  %v2593_v30 = vadd.f32 %v2592_v38, %v2591_v7 }
0x1158   :  { %v2815_v62 = vsel %vm262_vm4, %v2576_v61, %v2814_v37  ;;  %v2601_v32 = vrot.slane %v2600_v2, 2  ;;  %v2594_v34 = vrot.slane %v2593_v30, 2  ;;  %v2802_v36 = vpop.permute.xlu0 %2801  ;;  %v2841_v41 = vpop.permute.xlu1 %2840 }
0x1159   :  { %2888 = vmatpush.msra.mxu1 %v2841_v41  ;;  %v2816_v42 = vsel %vm264_vm5, %v2583_v15, %v2815_v62  ;;  %v2804_v18 = vsel %vm278_vm11, %v4053_v50, %v2802_v36 }
0x115a   :  { %v2602_v4 = vadd.f32 %v2601_v32, %v2600_v2  ;;  %v2595_v26 = vadd.f32 %v2594_v34, %v2593_v30  ;;  %v2817_v17 = vsel %vm266_vm6, %v2590_v21, %v2816_v42 }
0x115b   :  { %2889 = vmatpush.msra.mxu1 %v4007_v57 }
0x115c   :  { %v2603_v20 = vrot.slane %v2602_v4, 1  ;;  %v2596_v47 = vrot.slane %v2595_v26, 1  ;;  %2959 = vmatmul.msk.f32.vlgmr.msra.gmra.mxu1 %vm83_vm0, %v2804_v18 }
0x115e   :  { %v2604_v31 = vadd.f32 %v2603_v20, %v2602_v4  ;;  %v2597_v43 = vadd.f32 %v2596_v47, %v2595_v26 }
0x1160   :  { %v2818_v46 = vsel %vm268_vm7, %v2597_v43, %v2817_v17 }
0x1161   :  { %v2819_v49 = vsel %vm270_vm8, %v2604_v31, %v2818_v46 }
0x11a2   :  { %v2837_v12 = vpop.permute.xlu2 %2836 }
0x11a3   :  { %v2839_v13 = vsel %vm83_vm0, %v2819_v49, %v2837_v12 }
0x11a4   :  { %2958 = vmatmul.msk.f32.vlgmr.msra.gmra.mxu2 %vm153_vm1, %v2839_v13 }
0x11d9   :  { %v2891_v50 = vpop.f32.mrf.mxu1 }
0x1227   :  { %v2868_v57 = vpop.f32.mrf.mxu2 }
0x1228   :  { %v2892_v3 = vadd.f32 %v2891_v50, %v2868_v57 }
0x122a   :  { %v2894_v53 = vmul.f32 0.5, %v2892_v3 }
0x122c   :  { %v2900_v56 = vadd.f32 %v3041_v52, %v2894_v53 }
0x122e   :  { %2901 = vst.msk [vmem:[#allocation7] sm:$0xff] %vm153_vm1, %v2900_v56 }
0x122f   :  { %2912 = dma.vmem_to_hbm [thread:$0]  %s2908_s23, 128, %s2910_s26, [#allocation4]  }
0x1230   :  { %3175 = dma.done.wait [#allocation4], 128  }
0x1231   :  { %3176 = vsyncadd [#allocation4], 4294967168 }
0x1232   :  { %2917 = vsyncpa [#allocation3], 1 }
0x1233   :  { %2918 = vsyncpa [#allocation6], 1 }
0x1234   :  { %2919 = vsyncpa [#allocation4], 1 }

</bundles_post_ra>
